<compile_context>
chip_gen: v7x
topology: tpu7x:2x2x1
jax: 0.10.0
libtpu: 0.0.40
codegen_flags: <defaults>
</compile_context>

<pallas_src>
import math
import jax
import jax.numpy as jnp
from jax import lax
from jax.experimental import pallas as pl
from jax.experimental.pallas import tpu as pltpu

# ----------------------------- hyperparameters -------------------------------
VOCAB = 64      # vocab_size
D = 32          # max_embedding_size (hidden)
LAYERS = 2      # layers_num
SEGS = 2        # segment_num
MAXLEN = 128    # positional table (>= L)
H = 4           # attention_head_num
DK = 8          # d_k
DV = 8          # d_v
HID = 64        # hidden_layer_size (FFN)
B = 2           # batch
L = 8           # sequence length
M = 4           # number of masked positions
EPS = 1e-5      # nn.LayerNorm default eps

BL = B * L              # flattened token rows
NSEL = B * M + B        # gathered rows: masked positions + one [CLS] per batch
QKV = 3 * H * DK        # fused q/k/v channel count (96)

# ------------------- packed-parameter slab layout (static) --------------------
# w32 slab: lane width 32
OFF_WQKVT = 0                          # + l*QKV : (QKV, D) transposed fused QKV weight
OFF_WO    = LAYERS * QKV               # + l*H*DV: (H*DV, D) attention output proj
OFF_WF2   = OFF_WO + LAYERS * H * DV   # + l*HID : (HID, D) FFN second linear
OFF_LIN   = OFF_WF2 + LAYERS * HID     # (D, D)  masked-LM linear
OFF_FC    = OFF_LIN + D                # (D, D)  pooler fc
OFF_CLS   = OFF_FC + D                 # (D, D)  classifier weight (cols 2.. zero)
OFF_BQKVT = OFF_CLS + D                # + l*QKV : fused QKV bias column (lane 0)
W32_ROWS  = OFF_BQKVT + LAYERS * QKV   # 672

# w64 slab: lane width 64
OFF_WF1 = 0                            # + l*D : (D, HID)
OFF_DEC = LAYERS * D                   # (D, VOCAB) tied decoder weight
W64_ROWS = OFF_DEC + D                 # 96

# bias slab: lane width 64, one row per bias / LayerNorm parameter
BI_EMB_G, BI_EMB_B = 0, 1
BI_LAYER = 2                           # + l*7 : [bo, g1, b1, bf1, bf2, g2, b2]
BI_LIN_B = BI_LAYER + LAYERS * 7       # 16
BI_NG, BI_NB, BI_DEC_B, BI_FC_B, BI_CLS_B = 17, 18, 19, 20, 21
BIAS_ROWS = 22
BIAS_W = 64

# data slab (per call): lane width 32
R_EMB, R_MASK, R_SEL = 0, BL, BL + B
DATA_ROWS = BL + B + NSEL              # 28


def _layer_norm(x, g, b):
    mu = jnp.mean(x, axis=-1, keepdims=True)
    var = jnp.mean(jnp.square(x - mu), axis=-1, keepdims=True)
    return (x - mu) * jax.lax.rsqrt(var + EPS) * g + b


# --------------------------- fused forward kernel -----------------------------
def bert_kernel(data_ref, w32_ref, w64_ref, bias_ref, out_ref):
    f32 = jnp.float32

    def brow(i, w=D):                       # (1, w) bias / LN row
        return bias_ref[i:i + 1, 0:w]

    # embedding LayerNorm (token+pos+segment sums precomputed in JAX)
    x = _layer_norm(data_ref[R_EMB:R_EMB + BL, :], brow(BI_EMB_G), brow(BI_EMB_B))
    mask_add = data_ref[R_MASK:R_MASK + B, 0:L]          # (B, L) additive pad mask
    sel = data_ref[R_SEL:R_SEL + NSEL, 0:BL]             # (NSEL, BL) one-hot gather

    for l in range(LAYERS):
        wqkvT = w32_ref[OFF_WQKVT + l * QKV: OFF_WQKVT + (l + 1) * QKV, :]    # (96, D)
        bqkvT = w32_ref[OFF_BQKVT + l * QKV: OFF_BQKVT + (l + 1) * QKV, 0:1]  # (96, 1)
        wo = w32_ref[OFF_WO + l * H * DV: OFF_WO + (l + 1) * H * DV, :]       # (32, D)
        wf2 = w32_ref[OFF_WF2 + l * HID: OFF_WF2 + (l + 1) * HID, :]          # (64, D)
        wf1 = w64_ref[OFF_WF1 + l * D: OFF_WF1 + (l + 1) * D, :]              # (D, 64)
        bb = BI_LAYER + l * 7
        bo, g1, b1 = brow(bb), brow(bb + 1), brow(bb + 2)
        bf1 = brow(bb + 3, HID)
        bf2, g2, b2 = brow(bb + 4), brow(bb + 5), brow(bb + 6)

        # ---- multi-head attention: transposed, sublane-contiguous head blocks
        attn_rows = []
        for b in range(B):
            xb = x[b * L:(b + 1) * L, :]                                  # (L, D)
            # qkvT[c, i] = sum_d Wqkv[d, c] * x_b[i, d]   -> (QKV, L)
            qkvT = lax.dot_general(wqkvT, xb, (((1,), (1,)), ((), ())),
                                   preferred_element_type=f32) + bqkvT
            mrow = mask_add[b:b + 1, :]                                   # (1, L)
            ctxT_blocks = []
            for h in range(H):
                qT = qkvT[h * DK:(h + 1) * DK, :]                         # (DK, L)
                kT = qkvT[H * DK + h * DK: H * DK + (h + 1) * DK, :]
                vT = qkvT[2 * H * DK + h * DV: 2 * H * DK + (h + 1) * DV, :]
                # S[i, j] = sum_d qT[d, i] * kT[d, j]   (1/sqrt(dk) folded in W_Q)
                s = lax.dot_general(qT, kT, (((0,), (0,)), ((), ())),
                                    preferred_element_type=f32)           # (Lq, Lk)
                s = s + mrow
                s = s - jnp.max(s, axis=-1, keepdims=True)
                e = jnp.exp(s)
                p = e * pl.reciprocal(jnp.sum(e, axis=-1, keepdims=True),
                                      approx=True)
                # ctxT[d, i] = sum_j vT[d, j] * p[i, j]
                ctxT_blocks.append(
                    lax.dot_general(vT, p, (((1,), (1,)), ((), ())),
                                    preferred_element_type=f32))          # (DV, L)
            ctxT = jnp.concatenate(ctxT_blocks, axis=0)                   # (H*DV, L)
            # attn_out_b[i, :] = sum_c ctxT[c, i] * W_O[c, :]
            attn_rows.append(
                lax.dot_general(ctxT, wo, (((0,), (0,)), ((), ())),
                                preferred_element_type=f32))              # (L, D)
        attn_out = jnp.concatenate(attn_rows, axis=0) + bo                # (BL, D)
        y = _layer_norm(attn_out + x, g1, b1)

        # ---- PoswiseFeedForwardNet (relu; dropout == identity at inference)
        h1 = jnp.maximum(
            jnp.dot(y, wf1, preferred_element_type=f32) + bf1, 0.0)
        h2 = jnp.dot(h1, wf2, preferred_element_type=f32) + bf2
        x = _layer_norm(y + h2, g2, b2)

    # ---- row gather (masked positions + [CLS] rows) via one-hot matmul
    gathered = jnp.dot(sel, x, preferred_element_type=f32)                # (NSEL, D)
    h_masked = gathered[0:B * M, :]                                       # (B*M, D)
    cls_vec = gathered[B * M:NSEL, :]                                     # (B, D)

    # ---- pooler + classifier: classifier(tanh(fc(output[:, 0])))
    fc_w = w32_ref[OFF_FC:OFF_FC + D, :]
    cls_w = w32_ref[OFF_CLS:OFF_CLS + D, :]                               # cols 2.. zero
    pooled = jnp.tanh(jnp.dot(cls_vec, fc_w, preferred_element_type=f32)
                      + brow(BI_FC_B))
    clsf = jnp.dot(pooled, cls_w, preferred_element_type=f32) + brow(BI_CLS_B)  # (B, D)

    # ---- masked-LM head: linear -> exact gelu -> LayerNorm -> tied decoder
    lin_w = w32_ref[OFF_LIN:OFF_LIN + D, :]
    dec_wt = w64_ref[OFF_DEC:OFF_DEC + D, :]                              # (D, VOCAB)
    hm = jnp.dot(h_masked, lin_w, preferred_element_type=f32) + brow(BI_LIN_B)
    hm = 0.5 * hm * (1.0 + lax.erf(hm * (1.0 / math.sqrt(2.0))))
    hm = _layer_norm(hm, brow(BI_NG), brow(BI_NB))
    lm = jnp.dot(hm, dec_wt, preferred_element_type=f32) + brow(BI_DEC_B, VOCAB)  # (B*M, VOCAB)

    # ---- lane-dense packed output: one unmasked (8, 128) store
    right = jnp.concatenate([clsf, jnp.zeros((B, BIAS_W - D), f32)], axis=1)       # (2, 64)
    right = jnp.concatenate([right, jnp.zeros((B * M - B, BIAS_W), f32)], axis=0)  # (8, 64)
    out_ref[...] = jnp.concatenate([lm, right], axis=1)                             # (8, 128)


# ------------------------------- wrapper --------------------------------------
def _full_spec(shape):
    nd = len(shape)
    return pl.BlockSpec(shape, lambda *_, nd=nd: (0,) * nd)


def bert_forward(input_ids, segment_ids, masked_pos, params):
    # ---- plain-JAX prep: embedding lookups, additive mask, gather one-hot ----
    pos = jnp.arange(L, dtype=jnp.int32)
    emb = (params["tok_w"][input_ids]
           + params["pos_w"][pos][None, :, :]
           + params["seg_w"][segment_ids])                        # (B, L, D)
    emb_flat = emb.reshape(BL, D)

    mask_add = jnp.where(input_ids == 0, -1e9, 0.0).astype(jnp.float32)   # (B, L)

    row_base = jnp.arange(B, dtype=jnp.int32)[:, None] * L
    gidx = jnp.concatenate(
        [(masked_pos + row_base).reshape(B * M),
         jnp.arange(B, dtype=jnp.int32) * L], axis=0)             # (NSEL,)
    sel = jax.nn.one_hot(gidx, BL, dtype=jnp.float32)             # (NSEL, BL)

    data = jnp.concatenate([
        emb_flat,
        jnp.concatenate([mask_add, jnp.zeros((B, D - L), jnp.float32)], axis=1),
        jnp.concatenate([sel, jnp.zeros((NSEL, D - BL), jnp.float32)], axis=1),
    ], axis=0)                                                    # (DATA_ROWS, D)

    out = pl.pallas_call(
        bert_kernel,
        out_shape=jax.ShapeDtypeStruct((B * M, 128), jnp.float32),
        grid=(1,),
        in_specs=[_full_spec((DATA_ROWS, D)),
                  _full_spec((W32_ROWS, D)),
                  _full_spec((W64_ROWS, HID)),
                  _full_spec((BIAS_ROWS, BIAS_W))],
        out_specs=_full_spec((B * M, 128)),
        compiler_params=pltpu.CompilerParams(
            dimension_semantics=("arbitrary",)),
    )(data, params["w32"], params["w64"], params["bias"])

    logits_lm = out[:, :VOCAB].reshape(B, M, VOCAB)
    logits_clsf = out[0:B, VOCAB:VOCAB + 2]
    return logits_lm, logits_clsf


# ------------------------------ param init ------------------------------------
def init_params(key):
    def nrm(k, shp, s=0.02):
        return (s * jax.random.normal(k, shp)).astype(jnp.float32)

    keys = jax.random.split(key, 64)
    it = iter(range(64))
    nk = lambda: keys[next(it)]

    ones = lambda n: jnp.ones((1, n), jnp.float32)
    zeros = lambda n: jnp.zeros((1, n), jnp.float32)

    def pad_bias(row):                       # pad a (1, w) row to (1, BIAS_W)
        w = row.shape[1]
        if w == BIAS_W:
            return row
        return jnp.concatenate([row, jnp.zeros((1, BIAS_W - w), jnp.float32)], 1)

    tok_w = nrm(nk(), (VOCAB, D))
    pos_w = nrm(nk(), (MAXLEN, D))
    seg_w = nrm(nk(), (SEGS, D))

    scale = 1.0 / math.sqrt(DK)

    wqkvT_l, bqkvT_l, wo_l, wf1_l, wf2_l = [], [], [], [], []
    layer_bias_rows = []
    for _ in range(LAYERS):
        wq, bq = nrm(nk(), (D, H * DK)), nrm(nk(), (1, H * DK))
        wk, bk = nrm(nk(), (D, H * DK)), nrm(nk(), (1, H * DK))
        wv, bv = nrm(nk(), (D, H * DV)), nrm(nk(), (1, H * DV))
        # Fuse Q/K/V; fold 1/sqrt(d_k) into the Q projection; store transposed
        # so each head's block is an aligned 8-row sublane slice in-kernel.
        wqkv = jnp.concatenate([wq * scale, wk, wv], axis=1)      # (D, QKV)
        bqkv = jnp.concatenate([bq * scale, bk, bv], axis=1)      # (1, QKV)
        wqkvT_l.append(wqkv.T)                                    # (QKV, D)
        bqkvT_l.append(jnp.concatenate(                           # column in lane 0
            [bqkv.T, jnp.zeros((QKV, D - 1), jnp.float32)], axis=1))

        wo, bo = nrm(nk(), (H * DV, D)), nrm(nk(), (1, D))
        wf1, bf1 = nrm(nk(), (D, HID)), nrm(nk(), (1, HID))
        wf2, bf2 = nrm(nk(), (HID, D)), nrm(nk(), (1, D))
        wo_l.append(wo); wf1_l.append(wf1); wf2_l.append(wf2)
        layer_bias_rows += [pad_bias(bo), pad_bias(ones(D)), pad_bias(zeros(D)),
                            pad_bias(bf1), pad_bias(bf2),
                            pad_bias(ones(D)), pad_bias(zeros(D))]

    lin_w, lin_b = nrm(nk(), (D, D)), nrm(nk(), (1, D))           # self.linear
    fc_w, fc_b = nrm(nk(), (D, D)), nrm(nk(), (1, D))             # pooler fc
    cls_w, cls_b = nrm(nk(), (D, 2)), nrm(nk(), (1, 2))           # classifier
    dec_wt = tok_w.T                                              # tied decoder (D, VOCAB)
    dec_b = jnp.zeros((1, VOCAB), jnp.float32)

    # ---- packed slabs (offsets must match the kernel constants) ----
    w32 = jnp.concatenate(
        wqkvT_l + wo_l + wf2_l
        + [lin_w, fc_w,
           jnp.concatenate([cls_w, jnp.zeros((D, D - 2), jnp.float32)], axis=1)]
        + bqkvT_l, axis=0)                                        # (W32_ROWS, D)
    w64 = jnp.concatenate(wf1_l + [dec_wt], axis=0)               # (W64_ROWS, HID)
    bias = jnp.concatenate(
        [pad_bias(ones(D)), pad_bias(zeros(D))] + layer_bias_rows
        + [pad_bias(lin_b), pad_bias(ones(D)), pad_bias(zeros(D)),
           pad_bias(dec_b), pad_bias(fc_b), pad_bias(cls_b)], axis=0)  # (BIAS_ROWS, 64)

    assert w32.shape == (W32_ROWS, D)
    assert w64.shape == (W64_ROWS, HID)
    assert bias.shape == (BIAS_ROWS, BIAS_W)

    return {"tok_w": tok_w, "pos_w": pos_w, "seg_w": seg_w,
            "w32": w32, "w64": w64, "bias": bias}


# ---------------------------------- main ---------------------------------------
if __name__ == "__main__":
    key = jax.random.PRNGKey(0)
    pkey, ikey, skey, mkey = jax.random.split(key, 4)

    params = init_params(pkey)

    # token 0 == PAD; make the last two tokens of each sequence pads
    input_ids = jax.random.randint(ikey, (B, L), 1, VOCAB, dtype=jnp.int32)
    input_ids = input_ids.at[:, L - 2:].set(0)
    segment_ids = jnp.concatenate(
        [jnp.zeros((B, L // 2), jnp.int32), jnp.ones((B, L // 2), jnp.int32)], axis=1)
    masked_pos = jax.random.randint(mkey, (B, M), 0, L - 2, dtype=jnp.int32)

    logits_lm, logits_clsf = jax.jit(bert_forward)(
        input_ids, segment_ids, masked_pos, params)
    jax.block_until_ready((logits_lm, logits_clsf))

    assert logits_lm.shape == (B, M, VOCAB)
    assert logits_clsf.shape == (B, 2)
    print("KERNEL_OK")
</pallas_src>

<mosaic_0001>
module attributes {stable_mosaic.version = 11 : i64} {
  func.func @bert_kernel(%arg0: i32, %arg1: memref<28x32xf32, #tpu.memory_space<vmem>>, %arg2: memref<672x32xf32, #tpu.memory_space<vmem>>, %arg3: memref<96x64xf32, #tpu.memory_space<vmem>>, %arg4: memref<22x64xf32, #tpu.memory_space<vmem>>, %arg5: memref<8x128xf32, #tpu.memory_space<vmem>>) attributes {dimension_semantics = [#tpu.dimension_semantics<arbitrary>], iteration_bounds = array<i64: 1>, scalar_prefetch = 0 : i64, scratch_operands = 0 : i64, tpu.core_type = #tpu.core_type<tc>, window_params = [{pipeline_mode = #tpu.pipeline_mode<synchronous>, transform_indices = @transform_0, window_bounds = array<i64: 28, 32>}, {pipeline_mode = #tpu.pipeline_mode<synchronous>, transform_indices = @transform_1, window_bounds = array<i64: 672, 32>}, {pipeline_mode = #tpu.pipeline_mode<synchronous>, transform_indices = @transform_2, window_bounds = array<i64: 96, 64>}, {pipeline_mode = #tpu.pipeline_mode<synchronous>, transform_indices = @transform_3, window_bounds = array<i64: 22, 64>}, {pipeline_mode = #tpu.pipeline_mode<synchronous>, transform_indices = @transform_4, window_bounds = array<i64: 8, 128>}]} {
    %c0 = arith.constant 0 : index
    %c0_0 = arith.constant 0 : index
    %0 = vector.load %arg1[%c0, %c0_0] : memref<28x32xf32, #tpu.memory_space<vmem>>, vector<16x32xf32>
    %c0_1 = arith.constant 0 : index
    %c0_2 = arith.constant 0 : index
    %1 = vector.load %arg4[%c0_1, %c0_2] : memref<22x64xf32, #tpu.memory_space<vmem>>, vector<1x32xf32>
    %c1 = arith.constant 1 : index
    %c0_3 = arith.constant 0 : index
    %2 = vector.load %arg4[%c1, %c0_3] : memref<22x64xf32, #tpu.memory_space<vmem>>, vector<1x32xf32>
    %cst = arith.constant dense<0.000000e+00> : vector<16xf32>
    %3 = vector.multi_reduction <add>, %0, %cst [1] : vector<16x32xf32> to vector<16xf32>
    %4 = vector.shape_cast %3 : vector<16xf32> to vector<16x1xf32>
    %cst_4 = arith.constant 3.200000e+01 : f32
    %5 = vector.broadcast %cst_4 : f32 to vector<16x1xf32>
    %6 = arith.divf %4, %5 : vector<16x1xf32>
    %7 = vector.broadcast %6 : vector<16x1xf32> to vector<16x32xf32>
    %8 = arith.subf %0, %7 : vector<16x32xf32>
    %9 = arith.mulf %8, %8 : vector<16x32xf32>
    %cst_5 = arith.constant dense<0.000000e+00> : vector<16xf32>
    %10 = vector.multi_reduction <add>, %9, %cst_5 [1] : vector<16x32xf32> to vector<16xf32>
    %11 = vector.shape_cast %10 : vector<16xf32> to vector<16x1xf32>
    %cst_6 = arith.constant 3.200000e+01 : f32
    %12 = vector.broadcast %cst_6 : f32 to vector<16x1xf32>
    %13 = arith.divf %11, %12 : vector<16x1xf32>
    %14 = vector.broadcast %6 : vector<16x1xf32> to vector<16x32xf32>
    %15 = arith.subf %0, %14 : vector<16x32xf32>
    %cst_7 = arith.constant 9.99999974E-6 : f32
    %16 = vector.broadcast %cst_7 : f32 to vector<16x1xf32>
    %17 = arith.addf %13, %16 : vector<16x1xf32>
    %18 = math.rsqrt %17 : vector<16x1xf32>
    %19 = vector.broadcast %18 : vector<16x1xf32> to vector<16x32xf32>
    %20 = arith.mulf %15, %19 : vector<16x32xf32>
    %21 = vector.broadcast %1 : vector<1x32xf32> to vector<16x32xf32>
    %22 = arith.mulf %20, %21 : vector<16x32xf32>
    %23 = vector.broadcast %2 : vector<1x32xf32> to vector<16x32xf32>
    %24 = arith.addf %22, %23 : vector<16x32xf32>
    %c16 = arith.constant 16 : index
    %c0_8 = arith.constant 0 : index
    %25 = vector.load %arg1[%c16, %c0_8] : memref<28x32xf32, #tpu.memory_space<vmem>>, vector<2x8xf32>
    %c18 = arith.constant 18 : index
    %c0_9 = arith.constant 0 : index
    %26 = vector.load %arg1[%c18, %c0_9] : memref<28x32xf32, #tpu.memory_space<vmem>>, vector<10x16xf32>
    %c0_10 = arith.constant 0 : index
    %c0_11 = arith.constant 0 : index
    %27 = vector.load %arg2[%c0_10, %c0_11] : memref<672x32xf32, #tpu.memory_space<vmem>>, vector<96x32xf32>
    %c480 = arith.constant 480 : index
    %c0_12 = arith.constant 0 : index
    %28 = vector.load %arg2[%c480, %c0_12] : memref<672x32xf32, #tpu.memory_space<vmem>>, vector<96x1xf32>
    %c192 = arith.constant 192 : index
    %c0_13 = arith.constant 0 : index
    %29 = vector.load %arg2[%c192, %c0_13] : memref<672x32xf32, #tpu.memory_space<vmem>>, vector<32x32xf32>
    %c256 = arith.constant 256 : index
    %c0_14 = arith.constant 0 : index
    %30 = vector.load %arg2[%c256, %c0_14] : memref<672x32xf32, #tpu.memory_space<vmem>>, vector<64x32xf32>
    %c0_15 = arith.constant 0 : index
    %c0_16 = arith.constant 0 : index
    %31 = vector.load %arg3[%c0_15, %c0_16] : memref<96x64xf32, #tpu.memory_space<vmem>>, vector<32x64xf32>
    %c2 = arith.constant 2 : index
    %c0_17 = arith.constant 0 : index
    %32 = vector.load %arg4[%c2, %c0_17] : memref<22x64xf32, #tpu.memory_space<vmem>>, vector<1x32xf32>
    %c3 = arith.constant 3 : index
    %c0_18 = arith.constant 0 : index
    %33 = vector.load %arg4[%c3, %c0_18] : memref<22x64xf32, #tpu.memory_space<vmem>>, vector<1x32xf32>
    %c4 = arith.constant 4 : index
    %c0_19 = arith.constant 0 : index
    %34 = vector.load %arg4[%c4, %c0_19] : memref<22x64xf32, #tpu.memory_space<vmem>>, vector<1x32xf32>
    %c5 = arith.constant 5 : index
    %c0_20 = arith.constant 0 : index
    %35 = vector.load %arg4[%c5, %c0_20] : memref<22x64xf32, #tpu.memory_space<vmem>>, vector<1x64xf32>
    %c6 = arith.constant 6 : index
    %c0_21 = arith.constant 0 : index
    %36 = vector.load %arg4[%c6, %c0_21] : memref<22x64xf32, #tpu.memory_space<vmem>>, vector<1x32xf32>
    %c7 = arith.constant 7 : index
    %c0_22 = arith.constant 0 : index
    %37 = vector.load %arg4[%c7, %c0_22] : memref<22x64xf32, #tpu.memory_space<vmem>>, vector<1x32xf32>
    %c8 = arith.constant 8 : index
    %c0_23 = arith.constant 0 : index
    %38 = vector.load %arg4[%c8, %c0_23] : memref<22x64xf32, #tpu.memory_space<vmem>>, vector<1x32xf32>
    %39 = vector.extract_strided_slice %24 {offsets = [0, 0], sizes = [8, 32], strides = [1, 1]} : vector<16x32xf32> to vector<8x32xf32>
    %cst_24 = arith.constant dense<0.000000e+00> : vector<96x8xf32>
    %40 = tpu.matmul %27, %39, %cst_24 {dimension_numbers = #tpu.dot_dimension_numbers<[1], [1], [0], [0], [0, 0, 1, 0], [], []>} : vector<96x32xf32>, vector<8x32xf32>, vector<96x8xf32> -> vector<96x8xf32>
    %41 = vector.broadcast %28 : vector<96x1xf32> to vector<96x8xf32>
    %42 = arith.addf %40, %41 : vector<96x8xf32>
    %43 = vector.extract_strided_slice %25 {offsets = [0, 0], sizes = [1, 8], strides = [1, 1]} : vector<2x8xf32> to vector<1x8xf32>
    %44 = vector.extract_strided_slice %42 {offsets = [0, 0], sizes = [8, 8], strides = [1, 1]} : vector<96x8xf32> to vector<8x8xf32>
    %45 = vector.extract_strided_slice %42 {offsets = [32, 0], sizes = [8, 8], strides = [1, 1]} : vector<96x8xf32> to vector<8x8xf32>
    %46 = vector.extract_strided_slice %42 {offsets = [64, 0], sizes = [8, 8], strides = [1, 1]} : vector<96x8xf32> to vector<8x8xf32>
    %cst_25 = arith.constant dense<0.000000e+00> : vector<8x8xf32>
    %47 = tpu.matmul %44, %45, %cst_25 {dimension_numbers = #tpu.dot_dimension_numbers<[0], [0], [1], [1], [0, 1, 1, 1], [], []>} : vector<8x8xf32>, vector<8x8xf32>, vector<8x8xf32> -> vector<8x8xf32>
    %48 = vector.broadcast %43 : vector<1x8xf32> to vector<8x8xf32>
    %49 = arith.addf %47, %48 : vector<8x8xf32>
    %cst_26 = arith.constant dense<0xFF800000> : vector<8xf32>
    %50 = vector.multi_reduction <maximumf>, %49, %cst_26 [1] : vector<8x8xf32> to vector<8xf32>
    %51 = vector.shape_cast %50 : vector<8xf32> to vector<8x1xf32>
    %52 = vector.broadcast %51 : vector<8x1xf32> to vector<8x8xf32>
    %53 = arith.subf %49, %52 : vector<8x8xf32>
    %54 = math.exp %53 : vector<8x8xf32>
    %cst_27 = arith.constant dense<0.000000e+00> : vector<8xf32>
    %55 = vector.multi_reduction <add>, %54, %cst_27 [1] : vector<8x8xf32> to vector<8xf32>
    %56 = vector.shape_cast %55 : vector<8xf32> to vector<8x1xf32>
    %57 = tpu.reciprocal %56 {approx = true} : vector<8x1xf32> -> vector<8x1xf32>
    %58 = vector.broadcast %57 : vector<8x1xf32> to vector<8x8xf32>
    %59 = arith.mulf %54, %58 : vector<8x8xf32>
    %cst_28 = arith.constant dense<0.000000e+00> : vector<8x8xf32>
    %60 = tpu.matmul %46, %59, %cst_28 {dimension_numbers = #tpu.dot_dimension_numbers<[1], [1], [0], [0], [0, 0, 1, 0], [], []>} : vector<8x8xf32>, vector<8x8xf32>, vector<8x8xf32> -> vector<8x8xf32>
    %61 = vector.extract_strided_slice %42 {offsets = [8, 0], sizes = [8, 8], strides = [1, 1]} : vector<96x8xf32> to vector<8x8xf32>
    %62 = vector.extract_strided_slice %42 {offsets = [40, 0], sizes = [8, 8], strides = [1, 1]} : vector<96x8xf32> to vector<8x8xf32>
    %63 = vector.extract_strided_slice %42 {offsets = [72, 0], sizes = [8, 8], strides = [1, 1]} : vector<96x8xf32> to vector<8x8xf32>
    %cst_29 = arith.constant dense<0.000000e+00> : vector<8x8xf32>
    %64 = tpu.matmul %61, %62, %cst_29 {dimension_numbers = #tpu.dot_dimension_numbers<[0], [0], [1], [1], [0, 1, 1, 1], [], []>} : vector<8x8xf32>, vector<8x8xf32>, vector<8x8xf32> -> vector<8x8xf32>
    %65 = vector.broadcast %43 : vector<1x8xf32> to vector<8x8xf32>
    %66 = arith.addf %64, %65 : vector<8x8xf32>
    %cst_30 = arith.constant dense<0xFF800000> : vector<8xf32>
    %67 = vector.multi_reduction <maximumf>, %66, %cst_30 [1] : vector<8x8xf32> to vector<8xf32>
    %68 = vector.shape_cast %67 : vector<8xf32> to vector<8x1xf32>
    %69 = vector.broadcast %68 : vector<8x1xf32> to vector<8x8xf32>
    %70 = arith.subf %66, %69 : vector<8x8xf32>
    %71 = math.exp %70 : vector<8x8xf32>
    %cst_31 = arith.constant dense<0.000000e+00> : vector<8xf32>
    %72 = vector.multi_reduction <add>, %71, %cst_31 [1] : vector<8x8xf32> to vector<8xf32>
    %73 = vector.shape_cast %72 : vector<8xf32> to vector<8x1xf32>
    %74 = tpu.reciprocal %73 {approx = true} : vector<8x1xf32> -> vector<8x1xf32>
    %75 = vector.broadcast %74 : vector<8x1xf32> to vector<8x8xf32>
    %76 = arith.mulf %71, %75 : vector<8x8xf32>
    %cst_32 = arith.constant dense<0.000000e+00> : vector<8x8xf32>
    %77 = tpu.matmul %63, %76, %cst_32 {dimension_numbers = #tpu.dot_dimension_numbers<[1], [1], [0], [0], [0, 0, 1, 0], [], []>} : vector<8x8xf32>, vector<8x8xf32>, vector<8x8xf32> -> vector<8x8xf32>
    %78 = vector.extract_strided_slice %42 {offsets = [16, 0], sizes = [8, 8], strides = [1, 1]} : vector<96x8xf32> to vector<8x8xf32>
    %79 = vector.extract_strided_slice %42 {offsets = [48, 0], sizes = [8, 8], strides = [1, 1]} : vector<96x8xf32> to vector<8x8xf32>
    %80 = vector.extract_strided_slice %42 {offsets = [80, 0], sizes = [8, 8], strides = [1, 1]} : vector<96x8xf32> to vector<8x8xf32>
    %cst_33 = arith.constant dense<0.000000e+00> : vector<8x8xf32>
    %81 = tpu.matmul %78, %79, %cst_33 {dimension_numbers = #tpu.dot_dimension_numbers<[0], [0], [1], [1], [0, 1, 1, 1], [], []>} : vector<8x8xf32>, vector<8x8xf32>, vector<8x8xf32> -> vector<8x8xf32>
    %82 = vector.broadcast %43 : vector<1x8xf32> to vector<8x8xf32>
    %83 = arith.addf %81, %82 : vector<8x8xf32>
    %cst_34 = arith.constant dense<0xFF800000> : vector<8xf32>
    %84 = vector.multi_reduction <maximumf>, %83, %cst_34 [1] : vector<8x8xf32> to vector<8xf32>
    %85 = vector.shape_cast %84 : vector<8xf32> to vector<8x1xf32>
    %86 = vector.broadcast %85 : vector<8x1xf32> to vector<8x8xf32>
    %87 = arith.subf %83, %86 : vector<8x8xf32>
    %88 = math.exp %87 : vector<8x8xf32>
    %cst_35 = arith.constant dense<0.000000e+00> : vector<8xf32>
    %89 = vector.multi_reduction <add>, %88, %cst_35 [1] : vector<8x8xf32> to vector<8xf32>
    %90 = vector.shape_cast %89 : vector<8xf32> to vector<8x1xf32>
    %91 = tpu.reciprocal %90 {approx = true} : vector<8x1xf32> -> vector<8x1xf32>
    %92 = vector.broadcast %91 : vector<8x1xf32> to vector<8x8xf32>
    %93 = arith.mulf %88, %92 : vector<8x8xf32>
    %cst_36 = arith.constant dense<0.000000e+00> : vector<8x8xf32>
    %94 = tpu.matmul %80, %93, %cst_36 {dimension_numbers = #tpu.dot_dimension_numbers<[1], [1], [0], [0], [0, 0, 1, 0], [], []>} : vector<8x8xf32>, vector<8x8xf32>, vector<8x8xf32> -> vector<8x8xf32>
    %95 = vector.extract_strided_slice %42 {offsets = [24, 0], sizes = [8, 8], strides = [1, 1]} : vector<96x8xf32> to vector<8x8xf32>
    %96 = vector.extract_strided_slice %42 {offsets = [56, 0], sizes = [8, 8], strides = [1, 1]} : vector<96x8xf32> to vector<8x8xf32>
    %97 = vector.extract_strided_slice %42 {offsets = [88, 0], sizes = [8, 8], strides = [1, 1]} : vector<96x8xf32> to vector<8x8xf32>
    %cst_37 = arith.constant dense<0.000000e+00> : vector<8x8xf32>
    %98 = tpu.matmul %95, %96, %cst_37 {dimension_numbers = #tpu.dot_dimension_numbers<[0], [0], [1], [1], [0, 1, 1, 1], [], []>} : vector<8x8xf32>, vector<8x8xf32>, vector<8x8xf32> -> vector<8x8xf32>
    %99 = vector.broadcast %43 : vector<1x8xf32> to vector<8x8xf32>
    %100 = arith.addf %98, %99 : vector<8x8xf32>
    %cst_38 = arith.constant dense<0xFF800000> : vector<8xf32>
    %101 = vector.multi_reduction <maximumf>, %100, %cst_38 [1] : vector<8x8xf32> to vector<8xf32>
    %102 = vector.shape_cast %101 : vector<8xf32> to vector<8x1xf32>
    %103 = vector.broadcast %102 : vector<8x1xf32> to vector<8x8xf32>
    %104 = arith.subf %100, %103 : vector<8x8xf32>
    %105 = math.exp %104 : vector<8x8xf32>
    %cst_39 = arith.constant dense<0.000000e+00> : vector<8xf32>
    %106 = vector.multi_reduction <add>, %105, %cst_39 [1] : vector<8x8xf32> to vector<8xf32>
    %107 = vector.shape_cast %106 : vector<8xf32> to vector<8x1xf32>
    %108 = tpu.reciprocal %107 {approx = true} : vector<8x1xf32> -> vector<8x1xf32>
    %109 = vector.broadcast %108 : vector<8x1xf32> to vector<8x8xf32>
    %110 = arith.mulf %105, %109 : vector<8x8xf32>
    %cst_40 = arith.constant dense<0.000000e+00> : vector<8x8xf32>
    %111 = tpu.matmul %97, %110, %cst_40 {dimension_numbers = #tpu.dot_dimension_numbers<[1], [1], [0], [0], [0, 0, 1, 0], [], []>} : vector<8x8xf32>, vector<8x8xf32>, vector<8x8xf32> -> vector<8x8xf32>
    %112 = tpu.concatenate %60, %77, %94, %111 in 0 : vector<8x8xf32>, vector<8x8xf32>, vector<8x8xf32>, vector<8x8xf32> -> vector<32x8xf32>
    %cst_41 = arith.constant dense<0.000000e+00> : vector<8x32xf32>
    %113 = tpu.matmul %112, %29, %cst_41 {dimension_numbers = #tpu.dot_dimension_numbers<[0], [0], [1], [1], [0, 1, 1, 1], [], []>} : vector<32x8xf32>, vector<32x32xf32>, vector<8x32xf32> -> vector<8x32xf32>
    %114 = vector.extract_strided_slice %24 {offsets = [8, 0], sizes = [8, 32], strides = [1, 1]} : vector<16x32xf32> to vector<8x32xf32>
    %cst_42 = arith.constant dense<0.000000e+00> : vector<96x8xf32>
    %115 = tpu.matmul %27, %114, %cst_42 {dimension_numbers = #tpu.dot_dimension_numbers<[1], [1], [0], [0], [0, 0, 1, 0], [], []>} : vector<96x32xf32>, vector<8x32xf32>, vector<96x8xf32> -> vector<96x8xf32>
    %116 = vector.broadcast %28 : vector<96x1xf32> to vector<96x8xf32>
    %117 = arith.addf %115, %116 : vector<96x8xf32>
    %118 = vector.extract_strided_slice %25 {offsets = [1, 0], sizes = [1, 8], strides = [1, 1]} : vector<2x8xf32> to vector<1x8xf32>
    %119 = vector.extract_strided_slice %117 {offsets = [0, 0], sizes = [8, 8], strides = [1, 1]} : vector<96x8xf32> to vector<8x8xf32>
    %120 = vector.extract_strided_slice %117 {offsets = [32, 0], sizes = [8, 8], strides = [1, 1]} : vector<96x8xf32> to vector<8x8xf32>
    %121 = vector.extract_strided_slice %117 {offsets = [64, 0], sizes = [8, 8], strides = [1, 1]} : vector<96x8xf32> to vector<8x8xf32>
    %cst_43 = arith.constant dense<0.000000e+00> : vector<8x8xf32>
    %122 = tpu.matmul %119, %120, %cst_43 {dimension_numbers = #tpu.dot_dimension_numbers<[0], [0], [1], [1], [0, 1, 1, 1], [], []>} : vector<8x8xf32>, vector<8x8xf32>, vector<8x8xf32> -> vector<8x8xf32>
    %123 = vector.broadcast %118 : vector<1x8xf32> to vector<8x8xf32>
    %124 = arith.addf %122, %123 : vector<8x8xf32>
    %cst_44 = arith.constant dense<0xFF800000> : vector<8xf32>
    %125 = vector.multi_reduction <maximumf>, %124, %cst_44 [1] : vector<8x8xf32> to vector<8xf32>
    %126 = vector.shape_cast %125 : vector<8xf32> to vector<8x1xf32>
    %127 = vector.broadcast %126 : vector<8x1xf32> to vector<8x8xf32>
    %128 = arith.subf %124, %127 : vector<8x8xf32>
    %129 = math.exp %128 : vector<8x8xf32>
    %cst_45 = arith.constant dense<0.000000e+00> : vector<8xf32>
    %130 = vector.multi_reduction <add>, %129, %cst_45 [1] : vector<8x8xf32> to vector<8xf32>
    %131 = vector.shape_cast %130 : vector<8xf32> to vector<8x1xf32>
    %132 = tpu.reciprocal %131 {approx = true} : vector<8x1xf32> -> vector<8x1xf32>
    %133 = vector.broadcast %132 : vector<8x1xf32> to vector<8x8xf32>
    %134 = arith.mulf %129, %133 : vector<8x8xf32>
    %cst_46 = arith.constant dense<0.000000e+00> : vector<8x8xf32>
    %135 = tpu.matmul %121, %134, %cst_46 {dimension_numbers = #tpu.dot_dimension_numbers<[1], [1], [0], [0], [0, 0, 1, 0], [], []>} : vector<8x8xf32>, vector<8x8xf32>, vector<8x8xf32> -> vector<8x8xf32>
    %136 = vector.extract_strided_slice %117 {offsets = [8, 0], sizes = [8, 8], strides = [1, 1]} : vector<96x8xf32> to vector<8x8xf32>
    %137 = vector.extract_strided_slice %117 {offsets = [40, 0], sizes = [8, 8], strides = [1, 1]} : vector<96x8xf32> to vector<8x8xf32>
    %138 = vector.extract_strided_slice %117 {offsets = [72, 0], sizes = [8, 8], strides = [1, 1]} : vector<96x8xf32> to vector<8x8xf32>
    %cst_47 = arith.constant dense<0.000000e+00> : vector<8x8xf32>
    %139 = tpu.matmul %136, %137, %cst_47 {dimension_numbers = #tpu.dot_dimension_numbers<[0], [0], [1], [1], [0, 1, 1, 1], [], []>} : vector<8x8xf32>, vector<8x8xf32>, vector<8x8xf32> -> vector<8x8xf32>
    %140 = vector.broadcast %118 : vector<1x8xf32> to vector<8x8xf32>
    %141 = arith.addf %139, %140 : vector<8x8xf32>
    %cst_48 = arith.constant dense<0xFF800000> : vector<8xf32>
    %142 = vector.multi_reduction <maximumf>, %141, %cst_48 [1] : vector<8x8xf32> to vector<8xf32>
    %143 = vector.shape_cast %142 : vector<8xf32> to vector<8x1xf32>
    %144 = vector.broadcast %143 : vector<8x1xf32> to vector<8x8xf32>
    %145 = arith.subf %141, %144 : vector<8x8xf32>
    %146 = math.exp %145 : vector<8x8xf32>
    %cst_49 = arith.constant dense<0.000000e+00> : vector<8xf32>
    %147 = vector.multi_reduction <add>, %146, %cst_49 [1] : vector<8x8xf32> to vector<8xf32>
    %148 = vector.shape_cast %147 : vector<8xf32> to vector<8x1xf32>
    %149 = tpu.reciprocal %148 {approx = true} : vector<8x1xf32> -> vector<8x1xf32>
    %150 = vector.broadcast %149 : vector<8x1xf32> to vector<8x8xf32>
    %151 = arith.mulf %146, %150 : vector<8x8xf32>
    %cst_50 = arith.constant dense<0.000000e+00> : vector<8x8xf32>
    %152 = tpu.matmul %138, %151, %cst_50 {dimension_numbers = #tpu.dot_dimension_numbers<[1], [1], [0], [0], [0, 0, 1, 0], [], []>} : vector<8x8xf32>, vector<8x8xf32>, vector<8x8xf32> -> vector<8x8xf32>
    %153 = vector.extract_strided_slice %117 {offsets = [16, 0], sizes = [8, 8], strides = [1, 1]} : vector<96x8xf32> to vector<8x8xf32>
    %154 = vector.extract_strided_slice %117 {offsets = [48, 0], sizes = [8, 8], strides = [1, 1]} : vector<96x8xf32> to vector<8x8xf32>
    %155 = vector.extract_strided_slice %117 {offsets = [80, 0], sizes = [8, 8], strides = [1, 1]} : vector<96x8xf32> to vector<8x8xf32>
    %cst_51 = arith.constant dense<0.000000e+00> : vector<8x8xf32>
    %156 = tpu.matmul %153, %154, %cst_51 {dimension_numbers = #tpu.dot_dimension_numbers<[0], [0], [1], [1], [0, 1, 1, 1], [], []>} : vector<8x8xf32>, vector<8x8xf32>, vector<8x8xf32> -> vector<8x8xf32>
    %157 = vector.broadcast %118 : vector<1x8xf32> to vector<8x8xf32>
    %158 = arith.addf %156, %157 : vector<8x8xf32>
    %cst_52 = arith.constant dense<0xFF800000> : vector<8xf32>
    %159 = vector.multi_reduction <maximumf>, %158, %cst_52 [1] : vector<8x8xf32> to vector<8xf32>
    %160 = vector.shape_cast %159 : vector<8xf32> to vector<8x1xf32>
    %161 = vector.broadcast %160 : vector<8x1xf32> to vector<8x8xf32>
    %162 = arith.subf %158, %161 : vector<8x8xf32>
    %163 = math.exp %162 : vector<8x8xf32>
    %cst_53 = arith.constant dense<0.000000e+00> : vector<8xf32>
    %164 = vector.multi_reduction <add>, %163, %cst_53 [1] : vector<8x8xf32> to vector<8xf32>
    %165 = vector.shape_cast %164 : vector<8xf32> to vector<8x1xf32>
    %166 = tpu.reciprocal %165 {approx = true} : vector<8x1xf32> -> vector<8x1xf32>
    %167 = vector.broadcast %166 : vector<8x1xf32> to vector<8x8xf32>
    %168 = arith.mulf %163, %167 : vector<8x8xf32>
    %cst_54 = arith.constant dense<0.000000e+00> : vector<8x8xf32>
    %169 = tpu.matmul %155, %168, %cst_54 {dimension_numbers = #tpu.dot_dimension_numbers<[1], [1], [0], [0], [0, 0, 1, 0], [], []>} : vector<8x8xf32>, vector<8x8xf32>, vector<8x8xf32> -> vector<8x8xf32>
    %170 = vector.extract_strided_slice %117 {offsets = [24, 0], sizes = [8, 8], strides = [1, 1]} : vector<96x8xf32> to vector<8x8xf32>
    %171 = vector.extract_strided_slice %117 {offsets = [56, 0], sizes = [8, 8], strides = [1, 1]} : vector<96x8xf32> to vector<8x8xf32>
    %172 = vector.extract_strided_slice %117 {offsets = [88, 0], sizes = [8, 8], strides = [1, 1]} : vector<96x8xf32> to vector<8x8xf32>
    %cst_55 = arith.constant dense<0.000000e+00> : vector<8x8xf32>
    %173 = tpu.matmul %170, %171, %cst_55 {dimension_numbers = #tpu.dot_dimension_numbers<[0], [0], [1], [1], [0, 1, 1, 1], [], []>} : vector<8x8xf32>, vector<8x8xf32>, vector<8x8xf32> -> vector<8x8xf32>
    %174 = vector.broadcast %118 : vector<1x8xf32> to vector<8x8xf32>
    %175 = arith.addf %173, %174 : vector<8x8xf32>
    %cst_56 = arith.constant dense<0xFF800000> : vector<8xf32>
    %176 = vector.multi_reduction <maximumf>, %175, %cst_56 [1] : vector<8x8xf32> to vector<8xf32>
    %177 = vector.shape_cast %176 : vector<8xf32> to vector<8x1xf32>
    %178 = vector.broadcast %177 : vector<8x1xf32> to vector<8x8xf32>
    %179 = arith.subf %175, %178 : vector<8x8xf32>
    %180 = math.exp %179 : vector<8x8xf32>
    %cst_57 = arith.constant dense<0.000000e+00> : vector<8xf32>
    %181 = vector.multi_reduction <add>, %180, %cst_57 [1] : vector<8x8xf32> to vector<8xf32>
    %182 = vector.shape_cast %181 : vector<8xf32> to vector<8x1xf32>
    %183 = tpu.reciprocal %182 {approx = true} : vector<8x1xf32> -> vector<8x1xf32>
    %184 = vector.broadcast %183 : vector<8x1xf32> to vector<8x8xf32>
    %185 = arith.mulf %180, %184 : vector<8x8xf32>
    %cst_58 = arith.constant dense<0.000000e+00> : vector<8x8xf32>
    %186 = tpu.matmul %172, %185, %cst_58 {dimension_numbers = #tpu.dot_dimension_numbers<[1], [1], [0], [0], [0, 0, 1, 0], [], []>} : vector<8x8xf32>, vector<8x8xf32>, vector<8x8xf32> -> vector<8x8xf32>
    %187 = tpu.concatenate %135, %152, %169, %186 in 0 : vector<8x8xf32>, vector<8x8xf32>, vector<8x8xf32>, vector<8x8xf32> -> vector<32x8xf32>
    %cst_59 = arith.constant dense<0.000000e+00> : vector<8x32xf32>
    %188 = tpu.matmul %187, %29, %cst_59 {dimension_numbers = #tpu.dot_dimension_numbers<[0], [0], [1], [1], [0, 1, 1, 1], [], []>} : vector<32x8xf32>, vector<32x32xf32>, vector<8x32xf32> -> vector<8x32xf32>
    %189 = tpu.concatenate %113, %188 in 0 : vector<8x32xf32>, vector<8x32xf32> -> vector<16x32xf32>
    %190 = vector.broadcast %32 : vector<1x32xf32> to vector<16x32xf32>
    %191 = arith.addf %189, %190 : vector<16x32xf32>
    %192 = arith.addf %191, %24 : vector<16x32xf32>
    %cst_60 = arith.constant dense<0.000000e+00> : vector<16xf32>
    %193 = vector.multi_reduction <add>, %192, %cst_60 [1] : vector<16x32xf32> to vector<16xf32>
    %194 = vector.shape_cast %193 : vector<16xf32> to vector<16x1xf32>
    %cst_61 = arith.constant 3.200000e+01 : f32
    %195 = vector.broadcast %cst_61 : f32 to vector<16x1xf32>
    %196 = arith.divf %194, %195 : vector<16x1xf32>
    %197 = vector.broadcast %196 : vector<16x1xf32> to vector<16x32xf32>
    %198 = arith.subf %192, %197 : vector<16x32xf32>
    %199 = arith.mulf %198, %198 : vector<16x32xf32>
    %cst_62 = arith.constant dense<0.000000e+00> : vector<16xf32>
    %200 = vector.multi_reduction <add>, %199, %cst_62 [1] : vector<16x32xf32> to vector<16xf32>
    %201 = vector.shape_cast %200 : vector<16xf32> to vector<16x1xf32>
    %cst_63 = arith.constant 3.200000e+01 : f32
    %202 = vector.broadcast %cst_63 : f32 to vector<16x1xf32>
    %203 = arith.divf %201, %202 : vector<16x1xf32>
    %204 = vector.broadcast %196 : vector<16x1xf32> to vector<16x32xf32>
    %205 = arith.subf %192, %204 : vector<16x32xf32>
    %cst_64 = arith.constant 9.99999974E-6 : f32
    %206 = vector.broadcast %cst_64 : f32 to vector<16x1xf32>
    %207 = arith.addf %203, %206 : vector<16x1xf32>
    %208 = math.rsqrt %207 : vector<16x1xf32>
    %209 = vector.broadcast %208 : vector<16x1xf32> to vector<16x32xf32>
    %210 = arith.mulf %205, %209 : vector<16x32xf32>
    %211 = vector.broadcast %33 : vector<1x32xf32> to vector<16x32xf32>
    %212 = arith.mulf %210, %211 : vector<16x32xf32>
    %213 = vector.broadcast %34 : vector<1x32xf32> to vector<16x32xf32>
    %214 = arith.addf %212, %213 : vector<16x32xf32>
    %cst_65 = arith.constant dense<0.000000e+00> : vector<16x64xf32>
    %215 = tpu.matmul %214, %31, %cst_65 {dimension_numbers = #tpu.dot_dimension_numbers<[1], [0], [0], [1], [0, 0, 1, 1], [], []>} : vector<16x32xf32>, vector<32x64xf32>, vector<16x64xf32> -> vector<16x64xf32>
    %216 = vector.broadcast %35 : vector<1x64xf32> to vector<16x64xf32>
    %217 = arith.addf %215, %216 : vector<16x64xf32>
    %cst_66 = arith.constant 0.000000e+00 : f32
    %218 = vector.broadcast %cst_66 : f32 to vector<16x64xf32>
    %219 = arith.maximumf %217, %218 : vector<16x64xf32>
    %cst_67 = arith.constant dense<0.000000e+00> : vector<16x32xf32>
    %220 = tpu.matmul %219, %30, %cst_67 {dimension_numbers = #tpu.dot_dimension_numbers<[1], [0], [0], [1], [0, 0, 1, 1], [], []>} : vector<16x64xf32>, vector<64x32xf32>, vector<16x32xf32> -> vector<16x32xf32>
    %221 = vector.broadcast %36 : vector<1x32xf32> to vector<16x32xf32>
    %222 = arith.addf %220, %221 : vector<16x32xf32>
    %223 = arith.addf %214, %222 : vector<16x32xf32>
    %cst_68 = arith.constant dense<0.000000e+00> : vector<16xf32>
    %224 = vector.multi_reduction <add>, %223, %cst_68 [1] : vector<16x32xf32> to vector<16xf32>
    %225 = vector.shape_cast %224 : vector<16xf32> to vector<16x1xf32>
    %cst_69 = arith.constant 3.200000e+01 : f32
    %226 = vector.broadcast %cst_69 : f32 to vector<16x1xf32>
    %227 = arith.divf %225, %226 : vector<16x1xf32>
    %228 = vector.broadcast %227 : vector<16x1xf32> to vector<16x32xf32>
    %229 = arith.subf %223, %228 : vector<16x32xf32>
    %230 = arith.mulf %229, %229 : vector<16x32xf32>
    %cst_70 = arith.constant dense<0.000000e+00> : vector<16xf32>
    %231 = vector.multi_reduction <add>, %230, %cst_70 [1] : vector<16x32xf32> to vector<16xf32>
    %232 = vector.shape_cast %231 : vector<16xf32> to vector<16x1xf32>
    %cst_71 = arith.constant 3.200000e+01 : f32
    %233 = vector.broadcast %cst_71 : f32 to vector<16x1xf32>
    %234 = arith.divf %232, %233 : vector<16x1xf32>
    %235 = vector.broadcast %227 : vector<16x1xf32> to vector<16x32xf32>
    %236 = arith.subf %223, %235 : vector<16x32xf32>
    %cst_72 = arith.constant 9.99999974E-6 : f32
    %237 = vector.broadcast %cst_72 : f32 to vector<16x1xf32>
    %238 = arith.addf %234, %237 : vector<16x1xf32>
    %239 = math.rsqrt %238 : vector<16x1xf32>
    %240 = vector.broadcast %239 : vector<16x1xf32> to vector<16x32xf32>
    %241 = arith.mulf %236, %240 : vector<16x32xf32>
    %242 = vector.broadcast %37 : vector<1x32xf32> to vector<16x32xf32>
    %243 = arith.mulf %241, %242 : vector<16x32xf32>
    %244 = vector.broadcast %38 : vector<1x32xf32> to vector<16x32xf32>
    %245 = arith.addf %243, %244 : vector<16x32xf32>
    %c96 = arith.constant 96 : index
    %c0_73 = arith.constant 0 : index
    %246 = vector.load %arg2[%c96, %c0_73] : memref<672x32xf32, #tpu.memory_space<vmem>>, vector<96x32xf32>
    %c576 = arith.constant 576 : index
    %c0_74 = arith.constant 0 : index
    %247 = vector.load %arg2[%c576, %c0_74] : memref<672x32xf32, #tpu.memory_space<vmem>>, vector<96x1xf32>
    %c224 = arith.constant 224 : index
    %c0_75 = arith.constant 0 : index
    %248 = vector.load %arg2[%c224, %c0_75] : memref<672x32xf32, #tpu.memory_space<vmem>>, vector<32x32xf32>
    %c320 = arith.constant 320 : index
    %c0_76 = arith.constant 0 : index
    %249 = vector.load %arg2[%c320, %c0_76] : memref<672x32xf32, #tpu.memory_space<vmem>>, vector<64x32xf32>
    %c32 = arith.constant 32 : index
    %c0_77 = arith.constant 0 : index
    %250 = vector.load %arg3[%c32, %c0_77] : memref<96x64xf32, #tpu.memory_space<vmem>>, vector<32x64xf32>
    %c9 = arith.constant 9 : index
    %c0_78 = arith.constant 0 : index
    %251 = vector.load %arg4[%c9, %c0_78] : memref<22x64xf32, #tpu.memory_space<vmem>>, vector<1x32xf32>
    %c10 = arith.constant 10 : index
    %c0_79 = arith.constant 0 : index
    %252 = vector.load %arg4[%c10, %c0_79] : memref<22x64xf32, #tpu.memory_space<vmem>>, vector<1x32xf32>
    %c11 = arith.constant 11 : index
    %c0_80 = arith.constant 0 : index
    %253 = vector.load %arg4[%c11, %c0_80] : memref<22x64xf32, #tpu.memory_space<vmem>>, vector<1x32xf32>
    %c12 = arith.constant 12 : index
    %c0_81 = arith.constant 0 : index
    %254 = vector.load %arg4[%c12, %c0_81] : memref<22x64xf32, #tpu.memory_space<vmem>>, vector<1x64xf32>
    %c13 = arith.constant 13 : index
    %c0_82 = arith.constant 0 : index
    %255 = vector.load %arg4[%c13, %c0_82] : memref<22x64xf32, #tpu.memory_space<vmem>>, vector<1x32xf32>
    %c14 = arith.constant 14 : index
    %c0_83 = arith.constant 0 : index
    %256 = vector.load %arg4[%c14, %c0_83] : memref<22x64xf32, #tpu.memory_space<vmem>>, vector<1x32xf32>
    %c15 = arith.constant 15 : index
    %c0_84 = arith.constant 0 : index
    %257 = vector.load %arg4[%c15, %c0_84] : memref<22x64xf32, #tpu.memory_space<vmem>>, vector<1x32xf32>
    %258 = vector.extract_strided_slice %245 {offsets = [0, 0], sizes = [8, 32], strides = [1, 1]} : vector<16x32xf32> to vector<8x32xf32>
    %cst_85 = arith.constant dense<0.000000e+00> : vector<96x8xf32>
    %259 = tpu.matmul %246, %258, %cst_85 {dimension_numbers = #tpu.dot_dimension_numbers<[1], [1], [0], [0], [0, 0, 1, 0], [], []>} : vector<96x32xf32>, vector<8x32xf32>, vector<96x8xf32> -> vector<96x8xf32>
    %260 = vector.broadcast %247 : vector<96x1xf32> to vector<96x8xf32>
    %261 = arith.addf %259, %260 : vector<96x8xf32>
    %262 = vector.extract_strided_slice %25 {offsets = [0, 0], sizes = [1, 8], strides = [1, 1]} : vector<2x8xf32> to vector<1x8xf32>
    %263 = vector.extract_strided_slice %261 {offsets = [0, 0], sizes = [8, 8], strides = [1, 1]} : vector<96x8xf32> to vector<8x8xf32>
    %264 = vector.extract_strided_slice %261 {offsets = [32, 0], sizes = [8, 8], strides = [1, 1]} : vector<96x8xf32> to vector<8x8xf32>
    %265 = vector.extract_strided_slice %261 {offsets = [64, 0], sizes = [8, 8], strides = [1, 1]} : vector<96x8xf32> to vector<8x8xf32>
    %cst_86 = arith.constant dense<0.000000e+00> : vector<8x8xf32>
    %266 = tpu.matmul %263, %264, %cst_86 {dimension_numbers = #tpu.dot_dimension_numbers<[0], [0], [1], [1], [0, 1, 1, 1], [], []>} : vector<8x8xf32>, vector<8x8xf32>, vector<8x8xf32> -> vector<8x8xf32>
    %267 = vector.broadcast %262 : vector<1x8xf32> to vector<8x8xf32>
    %268 = arith.addf %266, %267 : vector<8x8xf32>
    %cst_87 = arith.constant dense<0xFF800000> : vector<8xf32>
    %269 = vector.multi_reduction <maximumf>, %268, %cst_87 [1] : vector<8x8xf32> to vector<8xf32>
    %270 = vector.shape_cast %269 : vector<8xf32> to vector<8x1xf32>
    %271 = vector.broadcast %270 : vector<8x1xf32> to vector<8x8xf32>
    %272 = arith.subf %268, %271 : vector<8x8xf32>
    %273 = math.exp %272 : vector<8x8xf32>
    %cst_88 = arith.constant dense<0.000000e+00> : vector<8xf32>
    %274 = vector.multi_reduction <add>, %273, %cst_88 [1] : vector<8x8xf32> to vector<8xf32>
    %275 = vector.shape_cast %274 : vector<8xf32> to vector<8x1xf32>
    %276 = tpu.reciprocal %275 {approx = true} : vector<8x1xf32> -> vector<8x1xf32>
    %277 = vector.broadcast %276 : vector<8x1xf32> to vector<8x8xf32>
    %278 = arith.mulf %273, %277 : vector<8x8xf32>
    %cst_89 = arith.constant dense<0.000000e+00> : vector<8x8xf32>
    %279 = tpu.matmul %265, %278, %cst_89 {dimension_numbers = #tpu.dot_dimension_numbers<[1], [1], [0], [0], [0, 0, 1, 0], [], []>} : vector<8x8xf32>, vector<8x8xf32>, vector<8x8xf32> -> vector<8x8xf32>
    %280 = vector.extract_strided_slice %261 {offsets = [8, 0], sizes = [8, 8], strides = [1, 1]} : vector<96x8xf32> to vector<8x8xf32>
    %281 = vector.extract_strided_slice %261 {offsets = [40, 0], sizes = [8, 8], strides = [1, 1]} : vector<96x8xf32> to vector<8x8xf32>
    %282 = vector.extract_strided_slice %261 {offsets = [72, 0], sizes = [8, 8], strides = [1, 1]} : vector<96x8xf32> to vector<8x8xf32>
    %cst_90 = arith.constant dense<0.000000e+00> : vector<8x8xf32>
    %283 = tpu.matmul %280, %281, %cst_90 {dimension_numbers = #tpu.dot_dimension_numbers<[0], [0], [1], [1], [0, 1, 1, 1], [], []>} : vector<8x8xf32>, vector<8x8xf32>, vector<8x8xf32> -> vector<8x8xf32>
    %284 = vector.broadcast %262 : vector<1x8xf32> to vector<8x8xf32>
    %285 = arith.addf %283, %284 : vector<8x8xf32>
    %cst_91 = arith.constant dense<0xFF800000> : vector<8xf32>
    %286 = vector.multi_reduction <maximumf>, %285, %cst_91 [1] : vector<8x8xf32> to vector<8xf32>
    %287 = vector.shape_cast %286 : vector<8xf32> to vector<8x1xf32>
    %288 = vector.broadcast %287 : vector<8x1xf32> to vector<8x8xf32>
    %289 = arith.subf %285, %288 : vector<8x8xf32>
    %290 = math.exp %289 : vector<8x8xf32>
    %cst_92 = arith.constant dense<0.000000e+00> : vector<8xf32>
    %291 = vector.multi_reduction <add>, %290, %cst_92 [1] : vector<8x8xf32> to vector<8xf32>
    %292 = vector.shape_cast %291 : vector<8xf32> to vector<8x1xf32>
    %293 = tpu.reciprocal %292 {approx = true} : vector<8x1xf32> -> vector<8x1xf32>
    %294 = vector.broadcast %293 : vector<8x1xf32> to vector<8x8xf32>
    %295 = arith.mulf %290, %294 : vector<8x8xf32>
    %cst_93 = arith.constant dense<0.000000e+00> : vector<8x8xf32>
    %296 = tpu.matmul %282, %295, %cst_93 {dimension_numbers = #tpu.dot_dimension_numbers<[1], [1], [0], [0], [0, 0, 1, 0], [], []>} : vector<8x8xf32>, vector<8x8xf32>, vector<8x8xf32> -> vector<8x8xf32>
    %297 = vector.extract_strided_slice %261 {offsets = [16, 0], sizes = [8, 8], strides = [1, 1]} : vector<96x8xf32> to vector<8x8xf32>
    %298 = vector.extract_strided_slice %261 {offsets = [48, 0], sizes = [8, 8], strides = [1, 1]} : vector<96x8xf32> to vector<8x8xf32>
    %299 = vector.extract_strided_slice %261 {offsets = [80, 0], sizes = [8, 8], strides = [1, 1]} : vector<96x8xf32> to vector<8x8xf32>
    %cst_94 = arith.constant dense<0.000000e+00> : vector<8x8xf32>
    %300 = tpu.matmul %297, %298, %cst_94 {dimension_numbers = #tpu.dot_dimension_numbers<[0], [0], [1], [1], [0, 1, 1, 1], [], []>} : vector<8x8xf32>, vector<8x8xf32>, vector<8x8xf32> -> vector<8x8xf32>
    %301 = vector.broadcast %262 : vector<1x8xf32> to vector<8x8xf32>
    %302 = arith.addf %300, %301 : vector<8x8xf32>
    %cst_95 = arith.constant dense<0xFF800000> : vector<8xf32>
    %303 = vector.multi_reduction <maximumf>, %302, %cst_95 [1] : vector<8x8xf32> to vector<8xf32>
    %304 = vector.shape_cast %303 : vector<8xf32> to vector<8x1xf32>
    %305 = vector.broadcast %304 : vector<8x1xf32> to vector<8x8xf32>
    %306 = arith.subf %302, %305 : vector<8x8xf32>
    %307 = math.exp %306 : vector<8x8xf32>
    %cst_96 = arith.constant dense<0.000000e+00> : vector<8xf32>
    %308 = vector.multi_reduction <add>, %307, %cst_96 [1] : vector<8x8xf32> to vector<8xf32>
    %309 = vector.shape_cast %308 : vector<8xf32> to vector<8x1xf32>
    %310 = tpu.reciprocal %309 {approx = true} : vector<8x1xf32> -> vector<8x1xf32>
    %311 = vector.broadcast %310 : vector<8x1xf32> to vector<8x8xf32>
    %312 = arith.mulf %307, %311 : vector<8x8xf32>
    %cst_97 = arith.constant dense<0.000000e+00> : vector<8x8xf32>
    %313 = tpu.matmul %299, %312, %cst_97 {dimension_numbers = #tpu.dot_dimension_numbers<[1], [1], [0], [0], [0, 0, 1, 0], [], []>} : vector<8x8xf32>, vector<8x8xf32>, vector<8x8xf32> -> vector<8x8xf32>
    %314 = vector.extract_strided_slice %261 {offsets = [24, 0], sizes = [8, 8], strides = [1, 1]} : vector<96x8xf32> to vector<8x8xf32>
    %315 = vector.extract_strided_slice %261 {offsets = [56, 0], sizes = [8, 8], strides = [1, 1]} : vector<96x8xf32> to vector<8x8xf32>
    %316 = vector.extract_strided_slice %261 {offsets = [88, 0], sizes = [8, 8], strides = [1, 1]} : vector<96x8xf32> to vector<8x8xf32>
    %cst_98 = arith.constant dense<0.000000e+00> : vector<8x8xf32>
    %317 = tpu.matmul %314, %315, %cst_98 {dimension_numbers = #tpu.dot_dimension_numbers<[0], [0], [1], [1], [0, 1, 1, 1], [], []>} : vector<8x8xf32>, vector<8x8xf32>, vector<8x8xf32> -> vector<8x8xf32>
    %318 = vector.broadcast %262 : vector<1x8xf32> to vector<8x8xf32>
    %319 = arith.addf %317, %318 : vector<8x8xf32>
    %cst_99 = arith.constant dense<0xFF800000> : vector<8xf32>
    %320 = vector.multi_reduction <maximumf>, %319, %cst_99 [1] : vector<8x8xf32> to vector<8xf32>
    %321 = vector.shape_cast %320 : vector<8xf32> to vector<8x1xf32>
    %322 = vector.broadcast %321 : vector<8x1xf32> to vector<8x8xf32>
    %323 = arith.subf %319, %322 : vector<8x8xf32>
    %324 = math.exp %323 : vector<8x8xf32>
    %cst_100 = arith.constant dense<0.000000e+00> : vector<8xf32>
    %325 = vector.multi_reduction <add>, %324, %cst_100 [1] : vector<8x8xf32> to vector<8xf32>
    %326 = vector.shape_cast %325 : vector<8xf32> to vector<8x1xf32>
    %327 = tpu.reciprocal %326 {approx = true} : vector<8x1xf32> -> vector<8x1xf32>
    %328 = vector.broadcast %327 : vector<8x1xf32> to vector<8x8xf32>
    %329 = arith.mulf %324, %328 : vector<8x8xf32>
    %cst_101 = arith.constant dense<0.000000e+00> : vector<8x8xf32>
    %330 = tpu.matmul %316, %329, %cst_101 {dimension_numbers = #tpu.dot_dimension_numbers<[1], [1], [0], [0], [0, 0, 1, 0], [], []>} : vector<8x8xf32>, vector<8x8xf32>, vector<8x8xf32> -> vector<8x8xf32>
    %331 = tpu.concatenate %279, %296, %313, %330 in 0 : vector<8x8xf32>, vector<8x8xf32>, vector<8x8xf32>, vector<8x8xf32> -> vector<32x8xf32>
    %cst_102 = arith.constant dense<0.000000e+00> : vector<8x32xf32>
    %332 = tpu.matmul %331, %248, %cst_102 {dimension_numbers = #tpu.dot_dimension_numbers<[0], [0], [1], [1], [0, 1, 1, 1], [], []>} : vector<32x8xf32>, vector<32x32xf32>, vector<8x32xf32> -> vector<8x32xf32>
    %333 = vector.extract_strided_slice %245 {offsets = [8, 0], sizes = [8, 32], strides = [1, 1]} : vector<16x32xf32> to vector<8x32xf32>
    %cst_103 = arith.constant dense<0.000000e+00> : vector<96x8xf32>
    %334 = tpu.matmul %246, %333, %cst_103 {dimension_numbers = #tpu.dot_dimension_numbers<[1], [1], [0], [0], [0, 0, 1, 0], [], []>} : vector<96x32xf32>, vector<8x32xf32>, vector<96x8xf32> -> vector<96x8xf32>
    %335 = vector.broadcast %247 : vector<96x1xf32> to vector<96x8xf32>
    %336 = arith.addf %334, %335 : vector<96x8xf32>
    %337 = vector.extract_strided_slice %25 {offsets = [1, 0], sizes = [1, 8], strides = [1, 1]} : vector<2x8xf32> to vector<1x8xf32>
    %338 = vector.extract_strided_slice %336 {offsets = [0, 0], sizes = [8, 8], strides = [1, 1]} : vector<96x8xf32> to vector<8x8xf32>
    %339 = vector.extract_strided_slice %336 {offsets = [32, 0], sizes = [8, 8], strides = [1, 1]} : vector<96x8xf32> to vector<8x8xf32>
    %340 = vector.extract_strided_slice %336 {offsets = [64, 0], sizes = [8, 8], strides = [1, 1]} : vector<96x8xf32> to vector<8x8xf32>
    %cst_104 = arith.constant dense<0.000000e+00> : vector<8x8xf32>
    %341 = tpu.matmul %338, %339, %cst_104 {dimension_numbers = #tpu.dot_dimension_numbers<[0], [0], [1], [1], [0, 1, 1, 1], [], []>} : vector<8x8xf32>, vector<8x8xf32>, vector<8x8xf32> -> vector<8x8xf32>
    %342 = vector.broadcast %337 : vector<1x8xf32> to vector<8x8xf32>
    %343 = arith.addf %341, %342 : vector<8x8xf32>
    %cst_105 = arith.constant dense<0xFF800000> : vector<8xf32>
    %344 = vector.multi_reduction <maximumf>, %343, %cst_105 [1] : vector<8x8xf32> to vector<8xf32>
    %345 = vector.shape_cast %344 : vector<8xf32> to vector<8x1xf32>
    %346 = vector.broadcast %345 : vector<8x1xf32> to vector<8x8xf32>
    %347 = arith.subf %343, %346 : vector<8x8xf32>
    %348 = math.exp %347 : vector<8x8xf32>
    %cst_106 = arith.constant dense<0.000000e+00> : vector<8xf32>
    %349 = vector.multi_reduction <add>, %348, %cst_106 [1] : vector<8x8xf32> to vector<8xf32>
    %350 = vector.shape_cast %349 : vector<8xf32> to vector<8x1xf32>
    %351 = tpu.reciprocal %350 {approx = true} : vector<8x1xf32> -> vector<8x1xf32>
    %352 = vector.broadcast %351 : vector<8x1xf32> to vector<8x8xf32>
    %353 = arith.mulf %348, %352 : vector<8x8xf32>
    %cst_107 = arith.constant dense<0.000000e+00> : vector<8x8xf32>
    %354 = tpu.matmul %340, %353, %cst_107 {dimension_numbers = #tpu.dot_dimension_numbers<[1], [1], [0], [0], [0, 0, 1, 0], [], []>} : vector<8x8xf32>, vector<8x8xf32>, vector<8x8xf32> -> vector<8x8xf32>
    %355 = vector.extract_strided_slice %336 {offsets = [8, 0], sizes = [8, 8], strides = [1, 1]} : vector<96x8xf32> to vector<8x8xf32>
    %356 = vector.extract_strided_slice %336 {offsets = [40, 0], sizes = [8, 8], strides = [1, 1]} : vector<96x8xf32> to vector<8x8xf32>
    %357 = vector.extract_strided_slice %336 {offsets = [72, 0], sizes = [8, 8], strides = [1, 1]} : vector<96x8xf32> to vector<8x8xf32>
    %cst_108 = arith.constant dense<0.000000e+00> : vector<8x8xf32>
    %358 = tpu.matmul %355, %356, %cst_108 {dimension_numbers = #tpu.dot_dimension_numbers<[0], [0], [1], [1], [0, 1, 1, 1], [], []>} : vector<8x8xf32>, vector<8x8xf32>, vector<8x8xf32> -> vector<8x8xf32>
    %359 = vector.broadcast %337 : vector<1x8xf32> to vector<8x8xf32>
    %360 = arith.addf %358, %359 : vector<8x8xf32>
    %cst_109 = arith.constant dense<0xFF800000> : vector<8xf32>
    %361 = vector.multi_reduction <maximumf>, %360, %cst_109 [1] : vector<8x8xf32> to vector<8xf32>
    %362 = vector.shape_cast %361 : vector<8xf32> to vector<8x1xf32>
    %363 = vector.broadcast %362 : vector<8x1xf32> to vector<8x8xf32>
    %364 = arith.subf %360, %363 : vector<8x8xf32>
    %365 = math.exp %364 : vector<8x8xf32>
    %cst_110 = arith.constant dense<0.000000e+00> : vector<8xf32>
    %366 = vector.multi_reduction <add>, %365, %cst_110 [1] : vector<8x8xf32> to vector<8xf32>
    %367 = vector.shape_cast %366 : vector<8xf32> to vector<8x1xf32>
    %368 = tpu.reciprocal %367 {approx = true} : vector<8x1xf32> -> vector<8x1xf32>
    %369 = vector.broadcast %368 : vector<8x1xf32> to vector<8x8xf32>
    %370 = arith.mulf %365, %369 : vector<8x8xf32>
    %cst_111 = arith.constant dense<0.000000e+00> : vector<8x8xf32>
    %371 = tpu.matmul %357, %370, %cst_111 {dimension_numbers = #tpu.dot_dimension_numbers<[1], [1], [0], [0], [0, 0, 1, 0], [], []>} : vector<8x8xf32>, vector<8x8xf32>, vector<8x8xf32> -> vector<8x8xf32>
    %372 = vector.extract_strided_slice %336 {offsets = [16, 0], sizes = [8, 8], strides = [1, 1]} : vector<96x8xf32> to vector<8x8xf32>
    %373 = vector.extract_strided_slice %336 {offsets = [48, 0], sizes = [8, 8], strides = [1, 1]} : vector<96x8xf32> to vector<8x8xf32>
    %374 = vector.extract_strided_slice %336 {offsets = [80, 0], sizes = [8, 8], strides = [1, 1]} : vector<96x8xf32> to vector<8x8xf32>
    %cst_112 = arith.constant dense<0.000000e+00> : vector<8x8xf32>
    %375 = tpu.matmul %372, %373, %cst_112 {dimension_numbers = #tpu.dot_dimension_numbers<[0], [0], [1], [1], [0, 1, 1, 1], [], []>} : vector<8x8xf32>, vector<8x8xf32>, vector<8x8xf32> -> vector<8x8xf32>
    %376 = vector.broadcast %337 : vector<1x8xf32> to vector<8x8xf32>
    %377 = arith.addf %375, %376 : vector<8x8xf32>
    %cst_113 = arith.constant dense<0xFF800000> : vector<8xf32>
    %378 = vector.multi_reduction <maximumf>, %377, %cst_113 [1] : vector<8x8xf32> to vector<8xf32>
    %379 = vector.shape_cast %378 : vector<8xf32> to vector<8x1xf32>
    %380 = vector.broadcast %379 : vector<8x1xf32> to vector<8x8xf32>
    %381 = arith.subf %377, %380 : vector<8x8xf32>
    %382 = math.exp %381 : vector<8x8xf32>
    %cst_114 = arith.constant dense<0.000000e+00> : vector<8xf32>
    %383 = vector.multi_reduction <add>, %382, %cst_114 [1] : vector<8x8xf32> to vector<8xf32>
    %384 = vector.shape_cast %383 : vector<8xf32> to vector<8x1xf32>
    %385 = tpu.reciprocal %384 {approx = true} : vector<8x1xf32> -> vector<8x1xf32>
    %386 = vector.broadcast %385 : vector<8x1xf32> to vector<8x8xf32>
    %387 = arith.mulf %382, %386 : vector<8x8xf32>
    %cst_115 = arith.constant dense<0.000000e+00> : vector<8x8xf32>
    %388 = tpu.matmul %374, %387, %cst_115 {dimension_numbers = #tpu.dot_dimension_numbers<[1], [1], [0], [0], [0, 0, 1, 0], [], []>} : vector<8x8xf32>, vector<8x8xf32>, vector<8x8xf32> -> vector<8x8xf32>
    %389 = vector.extract_strided_slice %336 {offsets = [24, 0], sizes = [8, 8], strides = [1, 1]} : vector<96x8xf32> to vector<8x8xf32>
    %390 = vector.extract_strided_slice %336 {offsets = [56, 0], sizes = [8, 8], strides = [1, 1]} : vector<96x8xf32> to vector<8x8xf32>
    %391 = vector.extract_strided_slice %336 {offsets = [88, 0], sizes = [8, 8], strides = [1, 1]} : vector<96x8xf32> to vector<8x8xf32>
    %cst_116 = arith.constant dense<0.000000e+00> : vector<8x8xf32>
    %392 = tpu.matmul %389, %390, %cst_116 {dimension_numbers = #tpu.dot_dimension_numbers<[0], [0], [1], [1], [0, 1, 1, 1], [], []>} : vector<8x8xf32>, vector<8x8xf32>, vector<8x8xf32> -> vector<8x8xf32>
    %393 = vector.broadcast %337 : vector<1x8xf32> to vector<8x8xf32>
    %394 = arith.addf %392, %393 : vector<8x8xf32>
    %cst_117 = arith.constant dense<0xFF800000> : vector<8xf32>
    %395 = vector.multi_reduction <maximumf>, %394, %cst_117 [1] : vector<8x8xf32> to vector<8xf32>
    %396 = vector.shape_cast %395 : vector<8xf32> to vector<8x1xf32>
    %397 = vector.broadcast %396 : vector<8x1xf32> to vector<8x8xf32>
    %398 = arith.subf %394, %397 : vector<8x8xf32>
    %399 = math.exp %398 : vector<8x8xf32>
    %cst_118 = arith.constant dense<0.000000e+00> : vector<8xf32>
    %400 = vector.multi_reduction <add>, %399, %cst_118 [1] : vector<8x8xf32> to vector<8xf32>
    %401 = vector.shape_cast %400 : vector<8xf32> to vector<8x1xf32>
    %402 = tpu.reciprocal %401 {approx = true} : vector<8x1xf32> -> vector<8x1xf32>
    %403 = vector.broadcast %402 : vector<8x1xf32> to vector<8x8xf32>
    %404 = arith.mulf %399, %403 : vector<8x8xf32>
    %cst_119 = arith.constant dense<0.000000e+00> : vector<8x8xf32>
    %405 = tpu.matmul %391, %404, %cst_119 {dimension_numbers = #tpu.dot_dimension_numbers<[1], [1], [0], [0], [0, 0, 1, 0], [], []>} : vector<8x8xf32>, vector<8x8xf32>, vector<8x8xf32> -> vector<8x8xf32>
    %406 = tpu.concatenate %354, %371, %388, %405 in 0 : vector<8x8xf32>, vector<8x8xf32>, vector<8x8xf32>, vector<8x8xf32> -> vector<32x8xf32>
    %cst_120 = arith.constant dense<0.000000e+00> : vector<8x32xf32>
    %407 = tpu.matmul %406, %248, %cst_120 {dimension_numbers = #tpu.dot_dimension_numbers<[0], [0], [1], [1], [0, 1, 1, 1], [], []>} : vector<32x8xf32>, vector<32x32xf32>, vector<8x32xf32> -> vector<8x32xf32>
    %408 = tpu.concatenate %332, %407 in 0 : vector<8x32xf32>, vector<8x32xf32> -> vector<16x32xf32>
    %409 = vector.broadcast %251 : vector<1x32xf32> to vector<16x32xf32>
    %410 = arith.addf %408, %409 : vector<16x32xf32>
    %411 = arith.addf %410, %245 : vector<16x32xf32>
    %cst_121 = arith.constant dense<0.000000e+00> : vector<16xf32>
    %412 = vector.multi_reduction <add>, %411, %cst_121 [1] : vector<16x32xf32> to vector<16xf32>
    %413 = vector.shape_cast %412 : vector<16xf32> to vector<16x1xf32>
    %cst_122 = arith.constant 3.200000e+01 : f32
    %414 = vector.broadcast %cst_122 : f32 to vector<16x1xf32>
    %415 = arith.divf %413, %414 : vector<16x1xf32>
    %416 = vector.broadcast %415 : vector<16x1xf32> to vector<16x32xf32>
    %417 = arith.subf %411, %416 : vector<16x32xf32>
    %418 = arith.mulf %417, %417 : vector<16x32xf32>
    %cst_123 = arith.constant dense<0.000000e+00> : vector<16xf32>
    %419 = vector.multi_reduction <add>, %418, %cst_123 [1] : vector<16x32xf32> to vector<16xf32>
    %420 = vector.shape_cast %419 : vector<16xf32> to vector<16x1xf32>
    %cst_124 = arith.constant 3.200000e+01 : f32
    %421 = vector.broadcast %cst_124 : f32 to vector<16x1xf32>
    %422 = arith.divf %420, %421 : vector<16x1xf32>
    %423 = vector.broadcast %415 : vector<16x1xf32> to vector<16x32xf32>
    %424 = arith.subf %411, %423 : vector<16x32xf32>
    %cst_125 = arith.constant 9.99999974E-6 : f32
    %425 = vector.broadcast %cst_125 : f32 to vector<16x1xf32>
    %426 = arith.addf %422, %425 : vector<16x1xf32>
    %427 = math.rsqrt %426 : vector<16x1xf32>
    %428 = vector.broadcast %427 : vector<16x1xf32> to vector<16x32xf32>
    %429 = arith.mulf %424, %428 : vector<16x32xf32>
    %430 = vector.broadcast %252 : vector<1x32xf32> to vector<16x32xf32>
    %431 = arith.mulf %429, %430 : vector<16x32xf32>
    %432 = vector.broadcast %253 : vector<1x32xf32> to vector<16x32xf32>
    %433 = arith.addf %431, %432 : vector<16x32xf32>
    %cst_126 = arith.constant dense<0.000000e+00> : vector<16x64xf32>
    %434 = tpu.matmul %433, %250, %cst_126 {dimension_numbers = #tpu.dot_dimension_numbers<[1], [0], [0], [1], [0, 0, 1, 1], [], []>} : vector<16x32xf32>, vector<32x64xf32>, vector<16x64xf32> -> vector<16x64xf32>
    %435 = vector.broadcast %254 : vector<1x64xf32> to vector<16x64xf32>
    %436 = arith.addf %434, %435 : vector<16x64xf32>
    %cst_127 = arith.constant 0.000000e+00 : f32
    %437 = vector.broadcast %cst_127 : f32 to vector<16x64xf32>
    %438 = arith.maximumf %436, %437 : vector<16x64xf32>
    %cst_128 = arith.constant dense<0.000000e+00> : vector<16x32xf32>
    %439 = tpu.matmul %438, %249, %cst_128 {dimension_numbers = #tpu.dot_dimension_numbers<[1], [0], [0], [1], [0, 0, 1, 1], [], []>} : vector<16x64xf32>, vector<64x32xf32>, vector<16x32xf32> -> vector<16x32xf32>
    %440 = vector.broadcast %255 : vector<1x32xf32> to vector<16x32xf32>
    %441 = arith.addf %439, %440 : vector<16x32xf32>
    %442 = arith.addf %433, %441 : vector<16x32xf32>
    %cst_129 = arith.constant dense<0.000000e+00> : vector<16xf32>
    %443 = vector.multi_reduction <add>, %442, %cst_129 [1] : vector<16x32xf32> to vector<16xf32>
    %444 = vector.shape_cast %443 : vector<16xf32> to vector<16x1xf32>
    %cst_130 = arith.constant 3.200000e+01 : f32
    %445 = vector.broadcast %cst_130 : f32 to vector<16x1xf32>
    %446 = arith.divf %444, %445 : vector<16x1xf32>
    %447 = vector.broadcast %446 : vector<16x1xf32> to vector<16x32xf32>
    %448 = arith.subf %442, %447 : vector<16x32xf32>
    %449 = arith.mulf %448, %448 : vector<16x32xf32>
    %cst_131 = arith.constant dense<0.000000e+00> : vector<16xf32>
    %450 = vector.multi_reduction <add>, %449, %cst_131 [1] : vector<16x32xf32> to vector<16xf32>
    %451 = vector.shape_cast %450 : vector<16xf32> to vector<16x1xf32>
    %cst_132 = arith.constant 3.200000e+01 : f32
    %452 = vector.broadcast %cst_132 : f32 to vector<16x1xf32>
    %453 = arith.divf %451, %452 : vector<16x1xf32>
    %454 = vector.broadcast %446 : vector<16x1xf32> to vector<16x32xf32>
    %455 = arith.subf %442, %454 : vector<16x32xf32>
    %cst_133 = arith.constant 9.99999974E-6 : f32
    %456 = vector.broadcast %cst_133 : f32 to vector<16x1xf32>
    %457 = arith.addf %453, %456 : vector<16x1xf32>
    %458 = math.rsqrt %457 : vector<16x1xf32>
    %459 = vector.broadcast %458 : vector<16x1xf32> to vector<16x32xf32>
    %460 = arith.mulf %455, %459 : vector<16x32xf32>
    %461 = vector.broadcast %256 : vector<1x32xf32> to vector<16x32xf32>
    %462 = arith.mulf %460, %461 : vector<16x32xf32>
    %463 = vector.broadcast %257 : vector<1x32xf32> to vector<16x32xf32>
    %464 = arith.addf %462, %463 : vector<16x32xf32>
    %cst_134 = arith.constant dense<0.000000e+00> : vector<10x32xf32>
    %465 = tpu.matmul %26, %464, %cst_134 {dimension_numbers = #tpu.dot_dimension_numbers<[1], [0], [0], [1], [0, 0, 1, 1], [], []>} : vector<10x16xf32>, vector<16x32xf32>, vector<10x32xf32> -> vector<10x32xf32>
    %466 = vector.extract_strided_slice %465 {offsets = [0, 0], sizes = [8, 32], strides = [1, 1]} : vector<10x32xf32> to vector<8x32xf32>
    %467 = vector.extract_strided_slice %465 {offsets = [8, 0], sizes = [2, 32], strides = [1, 1]} : vector<10x32xf32> to vector<2x32xf32>
    %c416 = arith.constant 416 : index
    %c0_135 = arith.constant 0 : index
    %468 = vector.load %arg2[%c416, %c0_135] : memref<672x32xf32, #tpu.memory_space<vmem>>, vector<32x32xf32>
    %c448 = arith.constant 448 : index
    %c0_136 = arith.constant 0 : index
    %469 = vector.load %arg2[%c448, %c0_136] : memref<672x32xf32, #tpu.memory_space<vmem>>, vector<32x32xf32>
    %cst_137 = arith.constant dense<0.000000e+00> : vector<2x32xf32>
    %470 = tpu.matmul %467, %468, %cst_137 {dimension_numbers = #tpu.dot_dimension_numbers<[1], [0], [0], [1], [0, 0, 1, 1], [], []>} : vector<2x32xf32>, vector<32x32xf32>, vector<2x32xf32> -> vector<2x32xf32>
    %c20 = arith.constant 20 : index
    %c0_138 = arith.constant 0 : index
    %471 = vector.load %arg4[%c20, %c0_138] : memref<22x64xf32, #tpu.memory_space<vmem>>, vector<1x32xf32>
    %472 = vector.broadcast %471 : vector<1x32xf32> to vector<2x32xf32>
    %473 = arith.addf %470, %472 : vector<2x32xf32>
    %474 = math.tanh %473 : vector<2x32xf32>
    %cst_139 = arith.constant dense<0.000000e+00> : vector<2x32xf32>
    %475 = tpu.matmul %474, %469, %cst_139 {dimension_numbers = #tpu.dot_dimension_numbers<[1], [0], [0], [1], [0, 0, 1, 1], [], []>} : vector<2x32xf32>, vector<32x32xf32>, vector<2x32xf32> -> vector<2x32xf32>
    %c21 = arith.constant 21 : index
    %c0_140 = arith.constant 0 : index
    %476 = vector.load %arg4[%c21, %c0_140] : memref<22x64xf32, #tpu.memory_space<vmem>>, vector<1x32xf32>
    %477 = vector.broadcast %476 : vector<1x32xf32> to vector<2x32xf32>
    %478 = arith.addf %475, %477 : vector<2x32xf32>
    %c384 = arith.constant 384 : index
    %c0_141 = arith.constant 0 : index
    %479 = vector.load %arg2[%c384, %c0_141] : memref<672x32xf32, #tpu.memory_space<vmem>>, vector<32x32xf32>
    %c64 = arith.constant 64 : index
    %c0_142 = arith.constant 0 : index
    %480 = vector.load %arg3[%c64, %c0_142] : memref<96x64xf32, #tpu.memory_space<vmem>>, vector<32x64xf32>
    %cst_143 = arith.constant dense<0.000000e+00> : vector<8x32xf32>
    %481 = tpu.matmul %466, %479, %cst_143 {dimension_numbers = #tpu.dot_dimension_numbers<[1], [0], [0], [1], [0, 0, 1, 1], [], []>} : vector<8x32xf32>, vector<32x32xf32>, vector<8x32xf32> -> vector<8x32xf32>
    %c16_144 = arith.constant 16 : index
    %c0_145 = arith.constant 0 : index
    %482 = vector.load %arg4[%c16_144, %c0_145] : memref<22x64xf32, #tpu.memory_space<vmem>>, vector<1x32xf32>
    %483 = vector.broadcast %482 : vector<1x32xf32> to vector<8x32xf32>
    %484 = arith.addf %481, %483 : vector<8x32xf32>
    %cst_146 = arith.constant 5.000000e-01 : f32
    %485 = vector.broadcast %cst_146 : f32 to vector<8x32xf32>
    %486 = arith.mulf %485, %484 : vector<8x32xf32>
    %cst_147 = arith.constant 0.707106769 : f32
    %487 = vector.broadcast %cst_147 : f32 to vector<8x32xf32>
    %488 = arith.mulf %484, %487 : vector<8x32xf32>
    %489 = math.erf %488 : vector<8x32xf32>
    %cst_148 = arith.constant 1.000000e+00 : f32
    %490 = vector.broadcast %cst_148 : f32 to vector<8x32xf32>
    %491 = arith.addf %490, %489 : vector<8x32xf32>
    %492 = arith.mulf %486, %491 : vector<8x32xf32>
    %c17 = arith.constant 17 : index
    %c0_149 = arith.constant 0 : index
    %493 = vector.load %arg4[%c17, %c0_149] : memref<22x64xf32, #tpu.memory_space<vmem>>, vector<1x32xf32>
    %c18_150 = arith.constant 18 : index
    %c0_151 = arith.constant 0 : index
    %494 = vector.load %arg4[%c18_150, %c0_151] : memref<22x64xf32, #tpu.memory_space<vmem>>, vector<1x32xf32>
    %cst_152 = arith.constant dense<0.000000e+00> : vector<8xf32>
    %495 = vector.multi_reduction <add>, %492, %cst_152 [1] : vector<8x32xf32> to vector<8xf32>
    %496 = vector.shape_cast %495 : vector<8xf32> to vector<8x1xf32>
    %cst_153 = arith.constant 3.200000e+01 : f32
    %497 = vector.broadcast %cst_153 : f32 to vector<8x1xf32>
    %498 = arith.divf %496, %497 : vector<8x1xf32>
    %499 = vector.broadcast %498 : vector<8x1xf32> to vector<8x32xf32>
    %500 = arith.subf %492, %499 : vector<8x32xf32>
    %501 = arith.mulf %500, %500 : vector<8x32xf32>
    %cst_154 = arith.constant dense<0.000000e+00> : vector<8xf32>
    %502 = vector.multi_reduction <add>, %501, %cst_154 [1] : vector<8x32xf32> to vector<8xf32>
    %503 = vector.shape_cast %502 : vector<8xf32> to vector<8x1xf32>
    %cst_155 = arith.constant 3.200000e+01 : f32
    %504 = vector.broadcast %cst_155 : f32 to vector<8x1xf32>
    %505 = arith.divf %503, %504 : vector<8x1xf32>
    %506 = vector.broadcast %498 : vector<8x1xf32> to vector<8x32xf32>
    %507 = arith.subf %492, %506 : vector<8x32xf32>
    %cst_156 = arith.constant 9.99999974E-6 : f32
    %508 = vector.broadcast %cst_156 : f32 to vector<8x1xf32>
    %509 = arith.addf %505, %508 : vector<8x1xf32>
    %510 = math.rsqrt %509 : vector<8x1xf32>
    %511 = vector.broadcast %510 : vector<8x1xf32> to vector<8x32xf32>
    %512 = arith.mulf %507, %511 : vector<8x32xf32>
    %513 = vector.broadcast %493 : vector<1x32xf32> to vector<8x32xf32>
    %514 = arith.mulf %512, %513 : vector<8x32xf32>
    %515 = vector.broadcast %494 : vector<1x32xf32> to vector<8x32xf32>
    %516 = arith.addf %514, %515 : vector<8x32xf32>
    %cst_157 = arith.constant dense<0.000000e+00> : vector<8x64xf32>
    %517 = tpu.matmul %516, %480, %cst_157 {dimension_numbers = #tpu.dot_dimension_numbers<[1], [0], [0], [1], [0, 0, 1, 1], [], []>} : vector<8x32xf32>, vector<32x64xf32>, vector<8x64xf32> -> vector<8x64xf32>
    %c19 = arith.constant 19 : index
    %c0_158 = arith.constant 0 : index
    %518 = vector.load %arg4[%c19, %c0_158] : memref<22x64xf32, #tpu.memory_space<vmem>>, vector<1x64xf32>
    %519 = vector.broadcast %518 : vector<1x64xf32> to vector<8x64xf32>
    %520 = arith.addf %517, %519 : vector<8x64xf32>
    %cst_159 = arith.constant 0.000000e+00 : f32
    %521 = vector.broadcast %cst_159 : f32 to vector<2x32xf32>
    %522 = tpu.concatenate %478, %521 in 1 : vector<2x32xf32>, vector<2x32xf32> -> vector<2x64xf32>
    %cst_160 = arith.constant 0.000000e+00 : f32
    %523 = vector.broadcast %cst_160 : f32 to vector<6x64xf32>
    %524 = tpu.concatenate %522, %523 in 0 : vector<2x64xf32>, vector<6x64xf32> -> vector<8x64xf32>
    %525 = tpu.concatenate %520, %524 in 1 : vector<8x64xf32>, vector<8x64xf32> -> vector<8x128xf32>
    %c0_161 = arith.constant 0 : index
    %c0_162 = arith.constant 0 : index
    %526 = vector.load %arg5[%c0_161, %c0_162] : memref<8x128xf32, #tpu.memory_space<vmem>>, vector<8x128xf32>
    tpu.vector_store %arg5[%c0_161, %c0_162], %525 {strides = array<i32>} : memref<8x128xf32, #tpu.memory_space<vmem>>, vector<8x128xf32>,
    return
  }
  func.func @transform_0(%arg0: i32) -> (i32, i32) {
    %c0_i32 = arith.constant 0 : i32
    %c0_i32_0 = arith.constant 0 : i32
    %c0_i32_1 = arith.constant 0 : i32
    return %c0_i32, %c0_i32_0 : i32, i32
  }
  func.func @transform_1(%arg0: i32) -> (i32, i32) {
    %c0_i32 = arith.constant 0 : i32
    %c0_i32_0 = arith.constant 0 : i32
    %c0_i32_1 = arith.constant 0 : i32
    return %c0_i32, %c0_i32_0 : i32, i32
  }
  func.func @transform_2(%arg0: i32) -> (i32, i32) {
    %c0_i32 = arith.constant 0 : i32
    %c0_i32_0 = arith.constant 0 : i32
    %c0_i32_1 = arith.constant 0 : i32
    return %c0_i32, %c0_i32_0 : i32, i32
  }
  func.func @transform_3(%arg0: i32) -> (i32, i32) {
    %c0_i32 = arith.constant 0 : i32
    %c0_i32_0 = arith.constant 0 : i32
    %c0_i32_1 = arith.constant 0 : i32
    return %c0_i32, %c0_i32_0 : i32, i32
  }
  func.func @transform_4(%arg0: i32) -> (i32, i32) {
    %c0_i32 = arith.constant 0 : i32
    %c0_i32_0 = arith.constant 0 : i32
    %c0_i32_1 = arith.constant 0 : i32
    return %c0_i32, %c0_i32_0 : i32, i32
  }
}

</mosaic_0001>

<bundles_post_ra>
// kernel: bert_forward.1
= control target key start
LH: loop header
LB: loop body
LE: loop exit
PB: predicated region body
PF: predicated region fallthrough
CT: control target
= control target key end

     0   :  { %vm21_vm0 = vcmask 261120   ;;  %v335_v0 = vlaneseq  ;;  %v6258_v14 = vmov 0   ;;  %v6259_v30 = vmov 0.0   ;;  %s6262_s19 = smov 64   ;;  %s7326_s0 = inlined_call_operand.vmem [shape: f32[28,32], index: 0, kind: input, shape index: {}]   ;;  %s7327_s1 = inlined_call_operand.vmem [shape: f32[672,32], index: 1, kind: input, shape index: {}]   ;;  %s7328_s3 = inlined_call_operand.vmem [shape: f32[22,64], index: 3, kind: input, shape index: {}]   ;;  %s7329_s2 = inlined_call_operand.vmem [shape: f32[96,64], index: 2, kind: input, shape index: {}]   ;;  %s7330_s4 = inlined_call_operand.vmem [shape: f32[8,128], index: 4, kind: output, shape index: {}]  }
   0x1   :  { %v17_v1 = vld [vmem:[%s7326_s0] sm:$0xff]  ;;  %v6298_v5 = vld [vmem:[%s7326_s0 + $0x10] sm:$0x3]  ;;  %6166 = vset.pattern.permute.xlu1 %v6258_v14  ;;  %v6338_v25 = vld [vmem:[%s7327_s1 + $0x8] sm:$0xff]  ;;  %5686 = vmatprep.subr.mxu1 %v6259_v30  ;;  %vm6260_vm1 = vmmov 0   ;;  %vm371_vm2 = vcmask 64512  }
   0x2   :  { %v22_v2 = vsel %vm21_vm0, %v17_v1, 0.0  ;;  %v6292_v3 = vshrl.u32 %v335_v0, 7  ;;  %v6307_v12 = vld [vmem:[%s7327_s1] sm:$0xff]  ;;  %v6343_v26 = vld [vmem:[%s7327_s1 + $0x10] sm:$0xff]  ;;  %v6352_v27 = vld [vmem:[%s7327_s1 + $0x18] sm:$0xff]  ;;  %5688 = vmatprep.mubr.msk.f32.mxu1 %vm6260_vm1, %v6259_v30  ;;  %vm2355_vm3 = vcmask 523264  }
   0x3   :  { %23 = vadd.xlane.f32.xlu0 %v22_v2  ;;  %5668 = vmatprep.mubr.msk.f32.mxu0 %vm21_vm0, %v6307_v12  ;;  %v76_v13 = vld [vmem:[%s7327_s1 + $0x1e0] sm:$0xff]  ;;  %v6366_v29 = vld [vmem:[%s7327_s1 + $0x28] sm:$0xff]  ;;  %v6383_v37 = vld [vmem:[%s7327_s1 + $0x30] sm:$0xff]  ;;  %vm4880_vm4 = vcmask 130048   ;;  %vm5322_vm5 = vcmask 1041408  }
   0x4   :  { %v1343_v4 = vsub.s32 1, %v6292_v3  ;;  %113 = vperm.xlu1 %6166, %v76_v13   ;;  %v80_v15 = vld [vmem:[%s7327_s1 + $0x200] sm:$0xff]  ;;  %v6388_v38 = vld [vmem:[%s7327_s1 + $0x38] sm:$0xff]  ;;  %v6404_v41 = vld [vmem:[%s7327_s1 + $0x48] sm:$0xff]  ;;  %v337_v46 = vsub.s32 0, %v6292_v3 }
   0x5   :  { %v6320_v20 = vld [vmem:[%s7328_s3] ss:$0 sm:$0xff]  ;;  %v6325_v22 = vld [vmem:[%s7328_s3 + $0x1] ss:$0 sm:$0xff]  ;;  %v77_v52 = vld [vmem:[%s7327_s1 + $0x1e8] sm:$0xff] }
   0x6   :  { %v6301_v6 = vrot.slane %v6298_v5, %v1343_v4  ;;  %v6357_v28 = vld [vmem:[%s7327_s1 + $0x20] sm:$0xff]  ;;  %v6417_v47 = vrot.slane %v6298_v5, %v337_v46  ;;  %v81_v58 = vld [vmem:[%s7327_s1 + $0x208] sm:$0xff]  ;;  %v83_v46 = vld [vmem:[%s7327_s1 + $0x218] sm:$0xff] }
   0x7   :  { %v6393_v39 = vld [vmem:[%s7327_s1 + $0x40] sm:$0xff] }
   0x8   :  { %133 = vperm.xlu1 %6166, %v80_v15   ;;  %v84_v53 = vld [vmem:[%s7327_s1 + $0x220] sm:$0xff] }
  0x83   :  { %v6373_v32 = vpop.permute.xlu1 %113 }
  0x87   :  { %v6406_v42 = vpop.permute.xlu1 %133 }
  0x90   :  { %v24_v7 = vpop.xlane.xlu0 %23 }
  0x91   :  { %v29_v8 = vmul.f32 0.03125, %v24_v7 }
  0x93   :  { %v31_v9 = vsub.f32 %v17_v1, %v29_v8 }
  0x95   :  { %v33_v10 = vmul.f32 %v31_v9, %v31_v9 }
  0x97   :  { %v35_v11 = vsel %vm21_vm0, %v33_v10, 0.0 }
  0x98   :  { %36 = vadd.xlane.f32.xlu0 %v35_v11 }
 0x125   :  { %v37_v16 = vpop.xlane.xlu0 %36 }
 0x126   :  { %v41_v17 = vmul.f32 0.03125, %v37_v16 }
 0x128   :  { %v43_v18 = vadd.f32 1e-05, %v41_v17 }
 0x12a   :  { %6168 = vrsqrt.f32 %v43_v18  ;;  %v78_v18 = vld [vmem:[%s7327_s1 + $0x1f0] sm:$0xff] }
 0x134   :  { %v6169_v19 = vpop.eup %6168 }
 0x135   :  { %v47_v21 = vmul.f32 %v6169_v19, %v31_v9  ;;  %v85_v19 = vld [vmem:[%s7327_s1 + $0x228] sm:$0xff] }
 0x137   :  { %v53_v23 = vmul.f32 %v6320_v20, %v47_v21 }
 0x139   :  { %v6329_v24 = vadd.f32 %v6325_v22, %v53_v23 }
 0x13b   :  { %5666 = vmatprep.subr.msk.mxu0 %vm21_vm0, %v6329_v24 }
 0x13c   :  { %5667 = vmatpush3.xpose.msk.msra.mxu0 %vm21_vm0, %v6329_v24 }
 0x13f   :  { %5669 = vmatmul.mubr.msk.f32.vlgmr.msra.gmra.mrb[0].mxu0 %vm21_vm0, %v6338_v25 }
 0x140   :  { %5671 = vmatprep.mubr.msk.f32.mxu0 %vm21_vm0, %v6343_v26 }
 0x143   :  { %5672 = vmatmul.mubr.msk.f32.gmra.mrb[2].mxu0 %vm21_vm0, %v6352_v27 }
 0x144   :  { %5674 = vmatprep.mubr.msk.f32.mxu0 %vm21_vm0, %v6357_v28 }
 0x147   :  { %5675 = vmatmul.mubr.msk.f32.gmra.mrb[4].mxu0 %vm21_vm0, %v6366_v29 }
 0x148   :  { %5677 = vmatprep.mubr.msk.f32.mxu0 %vm21_vm0, %v6383_v37 }
 0x14b   :  { %5678 = vmatmul.mubr.msk.f32.gmra.mrb[6].mxu0 %vm21_vm0, %v6388_v38 }
 0x14c   :  { %5680 = vmatprep.mubr.msk.f32.mxu0 %vm21_vm0, %v6393_v39 }
 0x14f   :  { %5681 = vmatmul.mubr.msk.f32.gmra.mrb[8].mxu0 %vm21_vm0, %v6404_v41 }
 0x212   :  { %v5670_v31 = vpop.f32.mrb[0].mxu0 }
 0x213   :  { %v276_v33 = vpop.f32.mrb[1].mxu0 }
 0x214   :  { %v277_v34 = vadd.f32 %v276_v33, %v6373_v32 }
 0x216   :  { %339 = vxpose.xlu0.b32.start.end [1/1] (short) (narrow) %v277_v34, 8  ;;  %v6376_v35 = vpop.f32.mrb[2].mxu0 }
 0x217   :  { %v6378_v36 = vpop.f32.mrb[3].mxu0 }
 0x21a   :  { %v5676_v40 = vpop.f32.mrb[4].mxu0 }
 0x21b   :  { %v296_v43 = vpop.f32.mrb[5].mxu0 }
 0x21c   :  { %v297_v44 = vadd.f32 %v296_v43, %v6406_v42 }
 0x21e   :  { %5687 = vmatpush3.msra.mxu1 %v297_v44  ;;  %v6427_v54 = vpop.f32.mrb[6].mxu0  ;;  %v82_v44 = vld [vmem:[%s7327_s1 + $0x210] sm:$0xff] }
 0x21f   :  { %5691 = vmatprep.subr.mxu1 %v6259_v30  ;;  %v6429_v55 = vpop.f32.mrb[7].mxu0 }
 0x222   :  { %v6431_v56 = vpop.f32.mrb[8].mxu0 }
 0x223   :  { %v316_v57 = vpop.f32.mrb[9].mxu0 }
 0x23f   :  { %6167 = vset.pattern.permute.xlu0 %v6258_v14 }
 0x296   :  { %v355_v45 = vpop.trf.xlu0 }
 0x297   :  { %5689 = vmatmul.mubr.msk.f32.vlgmr.msra.gmra.mrb[0].mxu1 %vm371_vm2, %v355_v45  ;;  %v79_v45 = vld [vmem:[%s7327_s1 + $0x1f8] sm:$0xff] }
 0x298   :  { %5693 = vmatprep.mubr.msk.f32.mxu1 %vm6260_vm1, %v6259_v30 }
 0x36a   :  { %v441_v48 = vpop.f32.mrb[0].mxu1 }
 0x36b   :  { %v442_v49 = vadd.f32 %v441_v48, %v6417_v47  ;;  %v5690_v50 = vpop.f32.mrb[1].mxu1 }
 0x36d   :  { %v445_v51 = vsel %vm371_vm2, %v442_v49, -inf }
 0x36e   :  { %446 = vmax.xlane.f32.xlu1 %v445_v51 }
 0x37f   :  { %118 = vperm.xlu1 %6166, %v77_v52  }
 0x383   :  { %153 = vperm.xlu1 %6166, %v84_v53  }
 0x387   :  { %138 = vperm.xlu1 %6166, %v81_v58  }
 0x3fb   :  { %v447_v59 = vpop.xlane.xlu1 %446 }
 0x3fc   :  { %v448_v60 = vsub.f32 %v442_v49, %v447_v59 }
 0x3fe   :  { %v449_v61 = vmul.f32 1.442695, %v448_v60 }
 0x3ff   :  { %v6436_v62 = vpop.permute.xlu1 %118 }
 0x400   :  { %6170 = vpow2.f32 %v449_v61  ;;  %v282_v63 = vadd.f32 %v5670_v31, %v6436_v62 }
 0x402   :  { %532 = vxpose.xlu1.b32.start.end [1/1] (short) (narrow) %v282_v63, 8 }
 0x403   :  { %v6440_v3 = vpop.permute.xlu1 %153 }
 0x404   :  { %v317_v8 = vadd.f32 %v316_v57, %v6440_v3 }
 0x407   :  { %v6442_v7 = vpop.permute.xlu1 %138 }
 0x408   :  { %v302_v9 = vadd.f32 %v5676_v40, %v6442_v7 }
 0x40a   :  { %v6171_v0 = vpop.eup %6170 }
 0x40b   :  { %v451_v1 = vsel %vm371_vm2, %v6171_v0, 0.0 }
 0x40c   :  { %452 = vadd.xlane.f32.xlu0 %v451_v1 }
 0x482   :  { %v548_v10 = vpop.trf.xlu1 }
 0x499   :  { %v453_v2 = vpop.xlane.xlu0 %452 }
 0x49a   :  { %6172 = vrcp.f32 %v453_v2 }
 0x4a4   :  { %v6173_v4 = vpop.eup %6172 }
 0x4a5   :  { %v455_v5 = vmul.f32 %v6173_v4, %v6171_v0 }
 0x4a7   :  { %5692 = vmatpush3.xpose.msk.msra.mxu1 %vm371_vm2, %v455_v5 }
 0x4a8   :  { %5696 = vmatprep.subr.mxu1 %v6259_v30 }
 0x4aa   :  { %5694 = vmatmul.mubr.msk.f32.vlgmr.msra.gmra.mrb[2].mxu1 %vm371_vm2, %v317_v8 }
 0x4ab   :  { %5697 = vmatpush3.msra.mxu1 %v302_v9  ;;  %5698 = vmatprep.mubr.msk.f32.mxu1 %vm6260_vm1, %v6259_v30 }
 0x4ac   :  { %5701 = vmatprep.subr.mxu1 %v6259_v30 }
 0x4ae   :  { %5699 = vmatmul.mubr.msk.f32.vlgmr.msra.gmra.mrb[4].mxu1 %vm371_vm2, %v548_v10 }
 0x4af   :  { %5703 = vmatprep.mubr.msk.f32.mxu1 %vm6260_vm1, %v6259_v30 }
 0x57d   :  { %v6455_v11 = vpop.f32.mrb[2].mxu1 }
 0x57e   :  { %v5695_v13 = vpop.f32.mrb[3].mxu1 }
 0x581   :  { %v633_v14 = vpop.f32.mrb[4].mxu1 }
 0x582   :  { %v634_v15 = vadd.f32 %v633_v14, %v6417_v47  ;;  %v5700_v16 = vpop.f32.mrb[5].mxu1 }
 0x584   :  { %v637_v17 = vsel %vm371_vm2, %v634_v15, -inf }
 0x585   :  { %638 = vmax.xlane.f32.xlu0 %v637_v17 }
 0x59b   :  { %123 = vperm.xlu0 %6167, %v78_v18  }
 0x59f   :  { %158 = vperm.xlu0 %6167, %v85_v19  }
 0x612   :  { %v639_v21 = vpop.xlane.xlu0 %638 }
 0x613   :  { %v640_v23 = vsub.f32 %v634_v15, %v639_v21  ;;  %v87_v15 = vld [vmem:[%s7327_s1 + $0x238] sm:$0xff] }
 0x615   :  { %v641_v31 = vmul.f32 1.442695, %v640_v23 }
 0x617   :  { %6174 = vpow2.f32 %v641_v31 }
 0x61a   :  { %v6465_v33 = vpop.permute.xlu0 %123 }
 0x61b   :  { %v287_v34 = vadd.f32 %v6378_v36, %v6465_v33 }
 0x61d   :  { %724 = vxpose.xlu0.b32.start.end [1/1] (short) (narrow) %v287_v34, 8 }
 0x61e   :  { %v6479_v49 = vpop.permute.xlu0 %158 }
 0x61f   :  { %v322_v52 = vadd.f32 %v6431_v56, %v6479_v49  ;;  %v6499_v56 = vld [vmem:[%s7327_s1 + $0x50] sm:$0xff] }
 0x620   :  { %5683 = vmatprep.mubr.msk.f32.mxu0 %vm21_vm0, %v6499_v56 }
 0x621   :  { %v6175_v40 = vpop.eup %6174 }
 0x622   :  { %v643_v43 = vsel %vm371_vm2, %v6175_v40, 0.0 }
 0x623   :  { %644 = vadd.xlane.f32.xlu1 %v643_v43 }
 0x634   :  { %143 = vperm.xlu1 %6166, %v82_v44  }
 0x646   :  { %128 = vperm.xlu0 %6167, %v79_v45   ;;  %v18_v45 = vld [vmem:[%s7326_s0 + $0x8] sm:$0xff] }
 0x64a   :  { %148 = vperm.xlu0 %6167, %v83_v46  }
 0x69d   :  { %v740_v57 = vpop.trf.xlu0 }
 0x6b0   :  { %v645_v36 = vpop.xlane.xlu1 %644 }
 0x6b1   :  { %6176 = vrcp.f32 %v645_v36  ;;  %v25_v36 = vsel %vm21_vm0, %v18_v45, 0.0 }
 0x6b4   :  { %v6481_v51 = vpop.permute.xlu1 %143 }
 0x6b5   :  { %v307_v53 = vadd.f32 %v6429_v55, %v6481_v51  ;;  %v6504_v55 = vld [vmem:[%s7327_s1 + $0x58] sm:$0xff] }
 0x6b6   :  { %5684 = vmatmul.mubr.msk.f32.gmra.mrb[10].mxu0 %vm21_vm0, %v6504_v55 }
 0x6b7   :  { %5739 = vmatprep.mubr.msk.f32.mxu0 %vm21_vm0, %v6307_v12  ;;  %v86_v12 = vld [vmem:[%s7327_s1 + $0x230] sm:$0xff] }
 0x6bb   :  { %v6177_v48 = vpop.eup %6176 }
 0x6bc   :  { %v647_v50 = vmul.f32 %v6177_v48, %v6175_v40 }
 0x6be   :  { %5702 = vmatpush3.xpose.msk.msra.mxu1 %vm371_vm2, %v647_v50 }
 0x6bf   :  { %5706 = vmatprep.subr.mxu1 %v6259_v30 }
 0x6c1   :  { %5704 = vmatmul.mubr.msk.f32.vlgmr.msra.gmra.mrb[6].mxu1 %vm371_vm2, %v322_v52 }
 0x6c2   :  { %5707 = vmatpush3.msra.mxu1 %v307_v53  ;;  %5708 = vmatprep.mubr.msk.f32.mxu1 %vm6260_vm1, %v6259_v30 }
 0x6c3   :  { %5711 = vmatprep.subr.mxu1 %v6259_v30 }
 0x6c5   :  { %5709 = vmatmul.mubr.msk.f32.vlgmr.msra.gmra.mrb[8].mxu1 %vm371_vm2, %v740_v57  ;;  %v6522_v13 = vpop.permute.xlu0 %128 }
 0x6c6   :  { %5713 = vmatprep.mubr.msk.f32.mxu1 %vm6260_vm1, %v6259_v30  ;;  %v292_v14 = vadd.f32 %v6376_v35, %v6522_v13 }
 0x6c9   :  { %v6531_v21 = vpop.permute.xlu0 %148 }
 0x6ca   :  { %v312_v35 = vadd.f32 %v6427_v54, %v6531_v21 }
 0x789   :  { %v6520_v9 = vpop.f32.mrb[10].mxu0 }
 0x78a   :  { %v326_v10 = vpop.f32.mrb[11].mxu0 }
 0x794   :  { %v6512_v58 = vpop.f32.mrb[6].mxu1 }
 0x795   :  { %v5705_v59 = vpop.f32.mrb[7].mxu1 }
 0x798   :  { %v825_v60 = vpop.f32.mrb[8].mxu1 }
 0x799   :  { %v826_v61 = vadd.f32 %v825_v60, %v6417_v47  ;;  %v5710_v63 = vpop.f32.mrb[9].mxu1 }
 0x79b   :  { %v829_v0 = vsel %vm371_vm2, %v826_v61, -inf }
 0x79c   :  { %830 = vmax.xlane.f32.xlu1 %v829_v0 }
 0x829   :  { %v831_v1 = vpop.xlane.xlu1 %830 }
 0x82a   :  { %v832_v2 = vsub.f32 %v826_v61, %v831_v1 }
 0x82c   :  { %v833_v4 = vmul.f32 1.442695, %v832_v2 }
 0x82e   :  { %6178 = vpow2.f32 %v833_v4 }
 0x838   :  { %v6179_v5 = vpop.eup %6178 }
 0x839   :  { %v835_v8 = vsel %vm371_vm2, %v6179_v5, 0.0 }
 0x83a   :  { %836 = vadd.xlane.f32.xlu1 %v835_v8 }
 0x84b   :  { %163 = vperm.xlu1 %6166, %v86_v12  }
 0x874   :  { %916 = vxpose.xlu1.b32.start.end [1/1] (short) (narrow) %v292_v14, 8 }
 0x892   :  { %168 = vperm.xlu1 %6166, %v87_v15  }
 0x8c7   :  { %v837_v16 = vpop.xlane.xlu1 %836 }
 0x8c8   :  { %6180 = vrcp.f32 %v837_v16 }
 0x8cb   :  { %v6529_v19 = vpop.permute.xlu1 %163 }
 0x8cc   :  { %v327_v23 = vadd.f32 %v326_v10, %v6529_v19 }
 0x8d2   :  { %v6181_v17 = vpop.eup %6180 }
 0x8d3   :  { %v839_v18 = vmul.f32 %v6181_v17, %v6179_v5 }
 0x8d5   :  { %5712 = vmatpush3.xpose.msk.msra.mxu1 %vm371_vm2, %v839_v18 }
 0x8d6   :  { %5716 = vmatprep.subr.mxu1 %v6259_v30 }
 0x8d8   :  { %5714 = vmatmul.mubr.msk.f32.vlgmr.msra.gmra.mrb[10].mxu1 %vm371_vm2, %v327_v23 }
 0x8d9   :  { %5717 = vmatpush3.msra.mxu1 %v312_v35  ;;  %5718 = vmatprep.mubr.msk.f32.mxu1 %vm6260_vm1, %v6259_v30 }
 0x8da   :  { %5721 = vmatprep.subr.mxu1 %v6259_v30 }
 0x8f4   :  { %v932_v31 = vpop.trf.xlu1 }
 0x8f5   :  { %5719 = vmatmul.mubr.msk.f32.vlgmr.msra.gmra.mrb[12].mxu1 %vm371_vm2, %v932_v31 }
 0x8f6   :  { %5723 = vmatprep.mubr.msk.f32.mxu1 %vm6260_vm1, %v6259_v30 }
 0x911   :  { %v6555_v14 = vpop.permute.xlu1 %168 }
 0x9ab   :  { %v912_v34 = vpop.f32.mrb[10].mxu1 }
 0x9ac   :  { %v5715_v40 = vpop.f32.mrb[11].mxu1 }
 0x9c8   :  { %v1017_v43 = vpop.f32.mrb[12].mxu1 }
 0x9c9   :  { %v1018_v44 = vadd.f32 %v1017_v43, %v6417_v47  ;;  %v5720_v54 = vpop.f32.mrb[13].mxu1 }
 0x9cb   :  { %v1021_v46 = vsel %vm371_vm2, %v1018_v44, -inf }
 0x9cc   :  { %1022 = vmax.xlane.f32.xlu0 %v1021_v46 }
 0x9d0   :  { %26 = vadd.xlane.f32.xlu0 %v25_v36 }
 0xa59   :  { %v1023_v48 = vpop.xlane.xlu0 %1022 }
 0xa5a   :  { %v1024_v50 = vsub.f32 %v1018_v44, %v1023_v48 }
 0xa5c   :  { %v1025_v52 = vmul.f32 1.442695, %v1024_v50 }
 0xa5d   :  { %v27_v53 = vpop.xlane.xlu0 %26 }
 0xa5e   :  { %6182 = vpow2.f32 %v1025_v52  ;;  %v30_v57 = vmul.f32 0.03125, %v27_v53 }
 0xa60   :  { %v32_v59 = vsub.f32 %v18_v45, %v30_v57 }
 0xa62   :  { %v34_v60 = vmul.f32 %v32_v59, %v32_v59 }
 0xa64   :  { %v38_v61 = vsel %vm21_vm0, %v34_v60, 0.0 }
 0xa65   :  { %39 = vadd.xlane.f32.xlu0 %v38_v61 }
 0xa68   :  { %v6183_v63 = vpop.eup %6182 }
 0xa69   :  { %v1027_v0 = vsel %vm371_vm2, %v6183_v63, 0.0 }
 0xa6a   :  { %1028 = vadd.xlane.f32.xlu0 %v1027_v0 }
 0xa97   :  { %1108 = vxpose.xlu0.b32.start [1/4] (short) (narrow) %v6455_v11, 8  ;;  %v332_v11 = vadd.f32 %v6520_v9, %v6555_v14 }
 0xa9b   :  { %1109 = vxpose.xlu0.b32.cont [2/4] (short) (narrow) %v6512_v58, 8 }
 0xa9f   :  { %1110 = vxpose.xlu0.b32.cont [3/4] (short) (narrow) %v912_v34, 8 }
 0xaf2   :  { %v40_v1 = vpop.xlane.xlu0 %39 }
 0xaf3   :  { %v42_v2 = vmul.f32 0.03125, %v40_v1 }
 0xaf5   :  { %v44_v4 = vadd.f32 1e-05, %v42_v2 }
 0xaf7   :  { %6184 = vrsqrt.f32 %v44_v4  ;;  %v1029_v5 = vpop.xlane.xlu0 %1028 }
 0xaf8   :  { %6186 = vrcp.f32 %v1029_v5 }
 0xb01   :  { %v6185_v8 = vpop.eup %6184 }
 0xb02   :  { %v6187_v12 = vpop.eup %6186  ;;  %v48_v10 = vmul.f32 %v6185_v8, %v32_v59 }
 0xb03   :  { %v1031_v15 = vmul.f32 %v6187_v12, %v6183_v63 }
 0xb04   :  { %v54_v16 = vmul.f32 %v6320_v20, %v48_v10  ;;  %v88_v20 = vld [vmem:[%s7327_s1 + $0xc0] sm:$0xff] }
 0xb05   :  { %5722 = vmatpush3.xpose.msk.msra.mxu1 %vm371_vm2, %v1031_v15 }
 0xb06   :  { %v6562_v58 = vadd.f32 %v6325_v22, %v54_v16  ;;  %v89_v22 = vld [vmem:[%s7327_s1 + $0xc8] sm:$0xff] }
 0xb08   :  { %5724 = vmatmul.mubr.msk.f32.vlgmr.msra.gmra.mrb[14].mxu1 %vm371_vm2, %v332_v11  ;;  %5737 = vmatprep.subr.msk.mxu0 %vm21_vm0, %v6562_v58 }
 0xb09   :  { %5738 = vmatpush3.xpose.msk.msra.mxu0 %vm21_vm0, %v6562_v58  ;;  %5734 = vmatprep.mubr.msk.f32.mxu1 %vm6260_vm1, %v6259_v30 }
 0xb0a   :  { %5782 = vmatprep.subr.mxu0 %v6259_v30 }
 0xb0c   :  { %5740 = vmatmul.mubr.msk.f32.vlgmr.msra.gmra.mrb[12].mxu0 %vm21_vm0, %v6338_v25  ;;  %v90_v25 = vld [vmem:[%s7327_s1 + $0xd0] sm:$0xff] }
 0xb0d   :  { %5742 = vmatprep.mubr.msk.f32.mxu0 %vm21_vm0, %v6343_v26  ;;  %v6261_v26 = vmov 0.0|0.0  }
 0xb0e   :  { %6061 = vmatprep.subr.bf16.mxu1 %v6261_v26 }
 0xb10   :  { %5743 = vmatmul.mubr.msk.f32.gmra.mrb[14].mxu0 %vm21_vm0, %v6352_v27  ;;  %v6606_v27 = vpack.c.bf16 %v89_v22, %v88_v20 }
 0xb11   :  { %5745 = vmatprep.mubr.msk.f32.mxu0 %vm21_vm0, %v6357_v28  ;;  %v91_v28 = vld [vmem:[%s7327_s1 + $0xd8] sm:$0xff] }
 0xb12   :  { %6063 = vmatpush3.bf16.msra.mxu1 %v6606_v27 }
 0xb13   :  { %6064 = vmatprep.subr.bf16.mxu1 %v6261_v26 }
 0xb14   :  { %5746 = vmatmul.mubr.msk.f32.gmra.mrb[16].mxu0 %vm21_vm0, %v6366_v29  ;;  %v6612_v29 = vpack.c.bf16 %v91_v28, %v90_v25 }
 0xb15   :  { %5748 = vmatprep.mubr.msk.f32.mxu0 %vm21_vm0, %v6383_v37 }
 0xb16   :  { %6066 = vmatpush3.bf16.msra.mxu1 %v6612_v29 }
 0xb17   :  { %5757 = vmatprep.subr.mxu1 %v6259_v30 }
 0xb18   :  { %5749 = vmatmul.mubr.msk.f32.gmra.mrb[18].mxu0 %vm21_vm0, %v6388_v38 }
 0xb19   :  { %5751 = vmatprep.mubr.msk.f32.mxu0 %vm21_vm0, %v6393_v39 }
 0xb1c   :  { %5752 = vmatmul.mubr.msk.f32.gmra.mrb[20].mxu0 %vm21_vm0, %v6404_v41 }
 0xb1d   :  { %5754 = vmatprep.mubr.msk.f32.mxu0 %vm21_vm0, %v6499_v56 }
 0xb20   :  { %5755 = vmatmul.mubr.msk.f32.gmra.mrb[22].mxu0 %vm21_vm0, %v6504_v55 }
 0xb21   :  { %5784 = vmatprep.mubr.msk.f32.mxu0 %vm6260_vm1, %v6259_v30 }
 0xbdb   :  { %v1104_v37 = vpop.f32.mrb[14].mxu1 }
 0xbdc   :  { %1111 = vxpose.xlu0.b32.end [4/4] (short) (narrow) %v1104_v37, 8  ;;  %v5725_v38 = vpop.f32.mrb[15].mxu1 }
 0xbdf   :  { %v5741_v39 = vpop.f32.mrb[12].mxu0 }
 0xbe0   :  { %v1282_v41 = vpop.f32.mrb[13].mxu0  ;;  %v1288_v52 = vadd.f32 %v5741_v39, %v6436_v62 }
 0xbe1   :  { %v1283_v56 = vadd.f32 %v1282_v41, %v6373_v32 }
 0xbe3   :  { %v5744_v55 = vpop.f32.mrb[14].mxu0  ;;  %1345 = vxpose.xlu1.b32.start.end [1/1] (short) (narrow) %v1283_v56, 8 }
 0xbe4   :  { %v6618_v9 = vpop.f32.mrb[15].mxu0  ;;  %v1298_v53 = vadd.f32 %v5744_v55, %v6522_v13  ;;  %v5388_v55 = vld [vmem:[%s7328_s3 + $0x2] ss:$0 sm:$0xff] }
 0xbe5   :  { %v1293_v25 = vadd.f32 %v6618_v9, %v6465_v33 }
 0xbe7   :  { %v5747_v17 = vpop.f32.mrb[16].mxu0 }
 0xbe8   :  { %v1302_v18 = vpop.f32.mrb[17].mxu0  ;;  %v1308_v13 = vadd.f32 %v5747_v17, %v6442_v7 }
 0xbe9   :  { %v1303_v44 = vadd.f32 %v1302_v18, %v6406_v42 }
 0xbeb   :  { %v6620_v23 = vpop.f32.mrb[18].mxu0 }
 0xbec   :  { %v6622_v35 = vpop.f32.mrb[19].mxu0  ;;  %v1318_v33 = vadd.f32 %v6620_v23, %v6531_v21 }
 0xbed   :  { %v1313_v41 = vadd.f32 %v6622_v35, %v6481_v51 }
 0xbef   :  { %v6624_v31 = vpop.f32.mrb[20].mxu0 }
 0xbf0   :  { %v1322_v34 = vpop.f32.mrb[21].mxu0  ;;  %v1328_v39 = vadd.f32 %v6624_v31, %v6479_v49 }
 0xbf1   :  { %v1323_v62 = vadd.f32 %v1322_v34, %v6440_v3 }
 0xbf3   :  { %v6626_v40 = vpop.f32.mrb[22].mxu0 }
 0xbf4   :  { %v6628_v43 = vpop.f32.mrb[23].mxu0 }
 0xc50   :  { %v1124_v32 = vpop.trf.xlu0 }
 0xc51   :  { %5735 = vmatmul.mubr.msk.f32.vlgmr.msra.gmra.mrb[16].mxu1 %vm21_vm0, %v1124_v32 }
 0xc52   :  { %5758 = vmatpush3.msra.mxu1 %v1303_v44  ;;  %5759 = vmatprep.mubr.msk.f32.mxu1 %vm6260_vm1, %v6259_v30 }
 0xc53   :  { %5762 = vmatprep.subr.mxu1 %v6259_v30 }
 0xc63   :  { %v1361_v54 = vpop.trf.xlu1 }
 0xc64   :  { %5760 = vmatmul.mubr.msk.f32.vlgmr.msra.gmra.mrb[18].mxu1 %vm371_vm2, %v1361_v54 }
 0xc65   :  { %5764 = vmatprep.mubr.msk.f32.mxu1 %vm6260_vm1, %v6259_v30 }
 0xd24   :  { %v6638_v45 = vpop.f32.mrb[16].mxu1 }
 0xd25   :  { %v5736_v46 = vpop.f32.mrb[17].mxu1  ;;  %v2222_v23 = vadd.f32 %v5388_v55, %v6638_v45 }
 0xd27   :  { %v2224_v44 = vadd.f32 %v2222_v23, %v6329_v24 }
 0xd29   :  { %v2226_v32 = vsel %vm21_vm0, %v2224_v44, 0.0 }
 0xd37   :  { %v1446_v36 = vpop.f32.mrb[18].mxu1 }
 0xd38   :  { %v1447_v42 = vadd.f32 %v1446_v36, %v6301_v6  ;;  %v5761_v48 = vpop.f32.mrb[19].mxu1 }
 0xd3a   :  { %v1450_v50 = vsel %vm371_vm2, %v1447_v42, -inf }
 0xd3b   :  { %1451 = vmax.xlane.f32.xlu0 %v1450_v50 }
 0xd68   :  { %1537 = vxpose.xlu0.b32.start.end [1/1] (short) (narrow) %v1288_v52, 8 }
 0xd6c   :  { %1921 = vxpose.xlu0.b32.start.end [1/1] (short) (narrow) %v1298_v53, 8 }
 0xdc8   :  { %v1452_v57 = vpop.xlane.xlu0 %1451 }
 0xdc9   :  { %v1453_v59 = vsub.f32 %v1447_v42, %v1452_v57 }
 0xdcb   :  { %v1454_v60 = vmul.f32 1.442695, %v1453_v59 }
 0xdcd   :  { %6188 = vpow2.f32 %v1454_v60 }
 0xdd7   :  { %v6189_v61 = vpop.eup %6188 }
 0xdd8   :  { %v1456_v63 = vsel %vm371_vm2, %v6189_v61, 0.0 }
 0xdd9   :  { %1457 = vadd.xlane.f32.xlu1 %v1456_v63 }
 0xde8   :  { %v1553_v4 = vpop.trf.xlu0 }
 0xdec   :  { %v1937_v49 = vpop.trf.xlu0 }
 0xe66   :  { %v1458_v0 = vpop.xlane.xlu1 %1457 }
 0xe67   :  { %6190 = vrcp.f32 %v1458_v0  ;;  %v1333_v0 = vadd.f32 %v6628_v43, %v6529_v19 }
 0xe71   :  { %v6191_v1 = vpop.eup %6190 }
 0xe72   :  { %v1460_v2 = vmul.f32 %v6191_v1, %v6189_v61 }
 0xe74   :  { %5763 = vmatpush3.xpose.msk.msra.mxu1 %vm371_vm2, %v1460_v2  ;;  %v1338_v2 = vadd.f32 %v6626_v40, %v6555_v14 }
 0xe75   :  { %5767 = vmatprep.subr.mxu1 %v6259_v30 }
 0xe77   :  { %5765 = vmatmul.mubr.msk.f32.vlgmr.msra.gmra.mrb[20].mxu1 %vm371_vm2, %v1323_v62 }
 0xe78   :  { %5768 = vmatpush3.msra.mxu1 %v1308_v13  ;;  %5769 = vmatprep.mubr.msk.f32.mxu1 %vm6260_vm1, %v6259_v30 }
 0xe79   :  { %5772 = vmatprep.subr.mxu1 %v6259_v30 }
 0xe7b   :  { %5770 = vmatmul.mubr.msk.f32.vlgmr.msra.gmra.mrb[22].mxu1 %vm371_vm2, %v1553_v4 }
 0xe7c   :  { %5774 = vmatprep.mubr.msk.f32.mxu1 %vm6260_vm1, %v6259_v30 }
 0xf4a   :  { %v6656_v5 = vpop.f32.mrb[20].mxu1 }
 0xf4b   :  { %v5766_v3 = vpop.f32.mrb[21].mxu1 }
 0xf4e   :  { %v1638_v8 = vpop.f32.mrb[22].mxu1 }
 0xf4f   :  { %v1639_v7 = vadd.f32 %v1638_v8, %v6301_v6  ;;  %v5771_v12 = vpop.f32.mrb[23].mxu1 }
 0xf51   :  { %v1642_v10 = vsel %vm371_vm2, %v1639_v7, -inf }
 0xf52   :  { %1643 = vmax.xlane.f32.xlu1 %v1642_v10 }
 0xfdf   :  { %v1644_v15 = vpop.xlane.xlu1 %1643 }
 0xfe0   :  { %v1645_v16 = vsub.f32 %v1639_v7, %v1644_v15 }
 0xfe2   :  { %v1646_v11 = vmul.f32 1.442695, %v1645_v16 }
 0xfe4   :  { %6192 = vpow2.f32 %v1646_v11 }
 0xfee   :  { %v6193_v20 = vpop.eup %6192 }
 0xfef   :  { %v1648_v22 = vsel %vm371_vm2, %v6193_v20, 0.0 }
 0xff0   :  { %1649 = vadd.xlane.f32.xlu1 %v1648_v22 }
0x1023   :  { %1729 = vxpose.xlu1.b32.start.end [1/1] (short) (narrow) %v1293_v25, 8 }
0x107d   :  { %v1650_v28 = vpop.xlane.xlu1 %1649 }
0x107e   :  { %6194 = vrcp.f32 %v1650_v28 }
0x1088   :  { %v6195_v37 = vpop.eup %6194 }
0x1089   :  { %v1652_v38 = vmul.f32 %v6195_v37, %v6193_v20 }
0x108b   :  { %5773 = vmatpush3.xpose.msk.msra.mxu1 %vm371_vm2, %v1652_v38 }
0x108c   :  { %5777 = vmatprep.subr.mxu1 %v6259_v30 }
0x108e   :  { %5775 = vmatmul.mubr.msk.f32.vlgmr.msra.gmra.mrb[24].mxu1 %vm371_vm2, %v1328_v39 }
0x108f   :  { %5778 = vmatpush3.msra.mxu1 %v1313_v41  ;;  %5779 = vmatprep.mubr.msk.f32.mxu1 %vm6260_vm1, %v6259_v30 }
0x1090   :  { %5787 = vmatprep.subr.mxu1 %v6259_v30 }
0x10a3   :  { %v1745_v56 = vpop.trf.xlu1 }
0x10a4   :  { %5780 = vmatmul.mubr.msk.f32.vlgmr.msra.gmra.mrb[26].mxu1 %vm371_vm2, %v1745_v56  ;;  %v5390_v56 = vld [vmem:[%s7328_s3 + $0x4] ss:$0 sm:$0xff] }
0x10a5   :  { %5788 = vmatpush3.msra.mxu1 %v1318_v33  ;;  %5789 = vmatprep.mubr.msk.f32.mxu1 %vm6260_vm1, %v6259_v30 }
0x10a6   :  { %6067 = vmatprep.subr.bf16.mxu1 %v6261_v26 }
0x10a8   :  { %5790 = vmatmul.mubr.msk.f32.vlgmr.msra.gmra.mrb[28].mxu1 %vm371_vm2, %v1937_v49 }
0x10a9   :  { %6069 = vmatpush3.bf16.msra.mxu1 %v6606_v27  ;;  %5805 = vmatprep.mubr.msk.f32.mxu1 %vm6260_vm1, %v6259_v30 }
0x10aa   :  { %6070 = vmatprep.subr.bf16.mxu1 %v6261_v26 }
0x10ad   :  { %6072 = vmatpush3.bf16.msra.mxu1 %v6612_v29 }
0x1161   :  { %v1725_v51 = vpop.f32.mrb[24].mxu1 }
0x1162   :  { %v5776_v21 = vpop.f32.mrb[25].mxu1 }
0x1163   :  { %v100_v21 = vld [vmem:[%s7329_s2] sm:$0xff] }
0x1177   :  { %v1830_v9 = vpop.f32.mrb[26].mxu1 }
0x1178   :  { %v1831_v17 = vadd.f32 %v1830_v9, %v6301_v6  ;;  %v5781_v18 = vpop.f32.mrb[27].mxu1 }
0x1179   :  { %v103_v18 = vld [vmem:[%s7329_s2 + $0x18] sm:$0xff] }
0x117a   :  { %v1834_v27 = vsel %vm371_vm2, %v1831_v17, -inf }
0x117b   :  { %1835 = vmax.xlane.f32.xlu0 %v1834_v27  ;;  %v2022_v35 = vpop.f32.mrb[28].mxu1  ;;  %v92_v27 = vld [vmem:[%s7327_s1 + $0x100] sm:$0xff] }
0x117c   :  { %v2023_v31 = vadd.f32 %v2022_v35, %v6301_v6  ;;  %v5791_v34 = vpop.f32.mrb[29].mxu1  ;;  %v93_v35 = vld [vmem:[%s7327_s1 + $0x108] sm:$0xff] }
0x117d   :  { %v6081_v34 = vpack.c.bf16 %v93_v35, %v92_v27 }
0x117e   :  { %v2026_v29 = vsel %vm371_vm2, %v2023_v31, -inf }
0x117f   :  { %2027 = vmax.xlane.f32.xlu1 %v2026_v29  ;;  %v95_v29 = vld [vmem:[%s7327_s1 + $0x118] sm:$0xff]  ;;  %6082 = vmatprep.subr.bf16.mxu1 %v6081_v34 }
0x1183   :  { %2227 = vadd.xlane.f32.xlu1 %v2226_v32  ;;  %v96_v32 = vld [vmem:[%s7327_s1 + $0x120] sm:$0xff] }
0x1208   :  { %v1836_v54 = vpop.xlane.xlu0 %1835 }
0x1209   :  { %v1837_v46 = vsub.f32 %v1831_v17, %v1836_v54  ;;  %v102_v17 = vld [vmem:[%s7329_s2 + $0x10] sm:$0xff]  ;;  %v97_v54 = vld [vmem:[%s7327_s1 + $0x128] sm:$0xff] }
0x120a   :  { %v6077_v23 = vpack.c.bf16 %v103_v18, %v102_v17 }
0x120b   :  { %v1838_v36 = vmul.f32 1.442695, %v1837_v46  ;;  %v6089_v46 = vpack.c.bf16 %v97_v54, %v96_v32  ;;  %v2492_v32 = vld [vmem:[%s7327_s1 + $0x258] sm:$0xff]  ;;  %v6861_v54 = vld [vmem:[%s7327_s1 + $0x90] sm:$0xff] }
0x120c   :  { %v2028_v42 = vpop.xlane.xlu1 %2027 }
0x120d   :  { %6196 = vpow2.f32 %v1838_v36  ;;  %v2029_v45 = vsub.f32 %v2023_v31, %v2028_v42  ;;  %v94_v31 = vld [vmem:[%s7327_s1 + $0x110] sm:$0xff] }
0x120f   :  { %v2030_v48 = vmul.f32 1.442695, %v2029_v45 }
0x1211   :  { %6198 = vpow2.f32 %v2030_v48 }
0x1217   :  { %v6197_v50 = vpop.eup %6196 }
0x1218   :  { %v1840_v52 = vsel %vm371_vm2, %v6197_v50, 0.0 }
0x1219   :  { %1841 = vadd.xlane.f32.xlu0 %v1840_v52 }
0x121b   :  { %v6199_v53 = vpop.eup %6198 }
0x121c   :  { %v2032_v57 = vsel %vm371_vm2, %v6199_v53, 0.0 }
0x121d   :  { %2033 = vadd.xlane.f32.xlu0 %v2032_v57  ;;  %v98_v57 = vld [vmem:[%s7327_s1 + $0x130] sm:$0xff] }
0x124a   :  { %2113 = vxpose.xlu0.b32.start [1/4] (short) (narrow) %v6656_v5, 8  ;;  %v2228_v5 = vpop.xlane.xlu1 %2227 }
0x124b   :  { %v2232_v3 = vmul.f32 0.03125, %v2228_v5 }
0x124d   :  { %v2234_v7 = vsub.f32 %v2224_v44, %v2232_v3  ;;  %v6085_v44 = vpack.c.bf16 %v95_v29, %v94_v31 }
0x124e   :  { %2114 = vxpose.xlu0.b32.cont [2/4] (short) (narrow) %v1725_v51, 8 }
0x124f   :  { %v2236_v40 = vmul.f32 %v2234_v7, %v2234_v7 }
0x1251   :  { %v2238_v16 = vsel %vm21_vm0, %v2236_v40, 0.0  ;;  %v2489_v40 = vld [vmem:[%s7327_s1 + $0x240] sm:$0xff] }
0x12a6   :  { %v1842_v24 = vpop.xlane.xlu0 %1841 }
0x12a7   :  { %6200 = vrcp.f32 %v1842_v24  ;;  %v99_v24 = vld [vmem:[%s7327_s1 + $0x138] sm:$0xff] }
0x12aa   :  { %v2034_v59 = vpop.xlane.xlu0 %2033 }
0x12ab   :  { %6202 = vrcp.f32 %v2034_v59  ;;  %v6093_v59 = vpack.c.bf16 %v99_v24, %v98_v57  ;;  %v2491_v24 = vld [vmem:[%s7327_s1 + $0x250] sm:$0xff] }
0x12b1   :  { %v6201_v60 = vpop.eup %6200 }
0x12b2   :  { %v1844_v61 = vmul.f32 %v6201_v60, %v6197_v50  ;;  %v5391_v60 = vld [vmem:[%s7328_s3 + $0x5] ss:$0 sm:$0xff] }
0x12b4   :  { %5783 = vmatpush3.xpose.msk.msra.mxu0 %vm371_vm2, %v1844_v61 }
0x12b5   :  { %v6203_v63 = vpop.eup %6202  ;;  %5792 = vmatprep.subr.mxu0 %v6259_v30 }
0x12b6   :  { %v2036_v1 = vmul.f32 %v6203_v63, %v6199_v53 }
0x12b7   :  { %5785 = vmatmul.mubr.msk.f32.vlgmr.msra.gmra.mrb[24].mxu0 %vm371_vm2, %v1333_v0 }
0x12b8   :  { %5793 = vmatpush3.xpose.msk.msra.mxu0 %vm371_vm2, %v2036_v1  ;;  %5794 = vmatprep.mubr.msk.f32.mxu0 %vm6260_vm1, %v6259_v30 }
0x12bb   :  { %5795 = vmatmul.mubr.msk.f32.vlgmr.msra.gmra.mrb[26].mxu0 %vm371_vm2, %v1338_v2 }
0x138a   :  { %v1917_v62 = vpop.f32.mrb[24].mxu0 }
0x138b   :  { %v5786_v13 = vpop.f32.mrb[25].mxu0  ;;  %2115 = vxpose.xlu0.b32.cont [3/4] (short) (narrow) %v1917_v62, 8 }
0x138c   :  { %v5394_v13 = vld [vmem:[%s7328_s3 + $0x6] ss:$0 sm:$0xff] }
0x138e   :  { %v2109_v4 = vpop.f32.mrb[26].mxu0 }
0x138f   :  { %2116 = vxpose.xlu0.b32.end [4/4] (short) (narrow) %v2109_v4, 8  ;;  %v5796_v19 = vpop.f32.mrb[27].mxu0 }
0x1403   :  { %v2129_v43 = vpop.trf.xlu0 }
0x1404   :  { %5806 = vmatmul.mubr.msk.f32.vlgmr.msra.gmra.mrb[30].mxu1 %vm21_vm0, %v2129_v43 }
0x1405   :  { %6084 = vmatpush3.bf16.msra.mxu1 %v6081_v34 }
0x1406   :  { %6086 = vmatprep.subr.bf16.mxu1 %v6085_v44 }
0x1409   :  { %6088 = vmatpush3.bf16.msra.mxu1 %v6085_v44  ;;  %v2490_v44 = vld [vmem:[%s7327_s1 + $0x248] sm:$0xff] }
0x140a   :  { %6090 = vmatprep.subr.bf16.mxu1 %v6089_v46 }
0x140d   :  { %6092 = vmatpush3.bf16.msra.mxu1 %v6089_v46  ;;  %v6866_v46 = vld [vmem:[%s7327_s1 + $0x98] sm:$0xff] }
0x140e   :  { %6094 = vmatprep.subr.bf16.mxu1 %v6093_v59 }
0x1411   :  { %6096 = vmatpush3.bf16.msra.mxu1 %v6093_v59 }
0x1412   :  { %5858 = vmatprep.subr.mxu1 %v6259_v30 }
0x14d7   :  { %v2214_v8 = vpop.f32.mrb[30].mxu1 }
0x14d8   :  { %v2223_v12 = vadd.f32 %v5388_v55, %v2214_v8  ;;  %v5807_v10 = vpop.f32.mrb[31].mxu1  ;;  %v101_v55 = vld [vmem:[%s7329_s2 + $0x8] sm:$0xff] }
0x14d9   :  { %v6073_v9 = vpack.c.bf16 %v101_v55, %v100_v21  ;;  %v6839_v21 = vld [vmem:[%s7327_s1 + $0x88] sm:$0xff] }
0x14da   :  { %v2225_v15 = vadd.f32 %v2223_v12, %v6562_v58  ;;  %v5389_v58 = vld [vmem:[%s7328_s3 + $0x3] ss:$0 sm:$0xff] }
0x14db   :  { %6074 = vmatprep.subr.bf16.mxu0 %v6073_v9 }
0x14dc   :  { %v2229_v14 = vsel %vm21_vm0, %v2225_v15, 0.0  ;;  %6076 = vmatpush3.bf16.msra.mxu0 %v6073_v9 }
0x14dd   :  { %2230 = vadd.xlane.f32.xlu1 %v2229_v14  ;;  %6078 = vmatprep.subr.bf16.mxu0 %v6077_v23 }
0x14e0   :  { %6080 = vmatpush3.bf16.msra.mxu0 %v6077_v23 }
0x14e1   :  { %2239 = vadd.xlane.f32.xlu1 %v2238_v16  ;;  %v2493_v16 = vld [vmem:[%s7327_s1 + $0x260] sm:$0xff] }
0x156a   :  { %v2231_v11 = vpop.xlane.xlu1 %2230 }
0x156b   :  { %v2233_v20 = vmul.f32 0.03125, %v2231_v11  ;;  %v6785_v11 = vld [vmem:[%s7327_s1 + $0x60] sm:$0xff] }
0x156d   :  { %v2235_v22 = vsub.f32 %v2225_v15, %v2233_v20 }
0x156e   :  { %v2240_v25 = vpop.xlane.xlu1 %2239 }
0x156f   :  { %v2244_v28 = vmul.f32 0.03125, %v2240_v25  ;;  %v2237_v37 = vmul.f32 %v2235_v22, %v2235_v22 }
0x1571   :  { %v2246_v38 = vadd.f32 1e-05, %v2244_v28  ;;  %v2241_v39 = vsel %vm21_vm0, %v2237_v37, 0.0  ;;  %v6792_v37 = vld [vmem:[%s7328_s3 + $0x7] ss:$0 sm:$0xff] }
0x1572   :  { %2242 = vadd.xlane.f32.xlu1 %v2241_v39  ;;  %v6797_v39 = vld [vmem:[%s7328_s3 + $0x8] ss:$0 sm:$0xff] }
0x1573   :  { %6204 = vrsqrt.f32 %v2246_v38 }
0x157d   :  { %v6205_v41 = vpop.eup %6204 }
0x157e   :  { %v2250_v33 = vmul.f32 %v6205_v41, %v2234_v7 }
0x1580   :  { %v2256_v49 = vmul.f32 %v5389_v58, %v2250_v33  ;;  %v6810_v33 = vld [vmem:[%s7327_s1 + $0x68] sm:$0xff] }
0x1582   :  { %v2262_v51 = vadd.f32 %v5390_v56, %v2256_v49  ;;  %v6825_v49 = vld [vmem:[%s7327_s1 + $0x78] sm:$0xff] }
0x1584   :  { %5816 = vmatprep.mubr.msk.f32.mxu0 %vm21_vm0, %v2262_v51 }
0x15ff   :  { %v2243_v36 = vpop.xlane.xlu1 %2242 }
0x1600   :  { %v2245_v42 = vmul.f32 0.03125, %v2243_v36  ;;  %v6871_v36 = vld [vmem:[%s7327_s1 + $0xa0] sm:$0xff] }
0x1602   :  { %v2247_v45 = vadd.f32 1e-05, %v2245_v42  ;;  %v6882_v42 = vld [vmem:[%s7327_s1 + $0xa8] sm:$0xff] }
0x1604   :  { %6206 = vrsqrt.f32 %v2247_v45 }
0x160e   :  { %v6207_v48 = vpop.eup %6206 }
0x160f   :  { %v2251_v50 = vmul.f32 %v6207_v48, %v2235_v22 }
0x1611   :  { %v2257_v52 = vmul.f32 %v5389_v58, %v2251_v50 }
0x1613   :  { %v6751_v53 = vadd.f32 %v5390_v56, %v2257_v52  ;;  %v6815_v56 = vld [vmem:[%s7327_s1 + $0x70] sm:$0xff] }
0x1615   :  { %5817 = vmatmul.mubr.msk.f32.vlgmr.msra.gmra.mrb[28].mxu0 %vm21_vm0, %v6751_v53 }
0x1616   :  { %5840 = vmatprep.mubr.msk.f32.mxu0 %vm21_vm0, %v6785_v11 }
0x16e8   :  { %v5818_v61 = vpop.f32.mrb[28].mxu0 }
0x16e9   :  { %v2346_v63 = vadd.f32 %v5818_v61, %v5391_v60  ;;  %v2340_v0 = vpop.f32.mrb[29].mxu0 }
0x16ea   :  { %v2341_v1 = vadd.f32 %v5391_v60, %v2340_v0  ;;  %v2497_v60 = vld [vmem:[%s7327_s1 + $0x280] sm:$0xff] }
0x16eb   :  { %v2350_v62 = vmax.f32 %v2346_v63, 0.0 }
0x16ec   :  { %v2349_v2 = vmax.f32 %v2341_v1, 0.0  ;;  %v2494_v1 = vld [vmem:[%s7327_s1 + $0x268] sm:$0xff] }
0x16ee   :  { %5835 = vmatprep.mubr.msk.f32.mxu1 %vm2355_vm3, %v2349_v2  ;;  %v2495_v2 = vld [vmem:[%s7327_s1 + $0x270] sm:$0xff] }
0x16ef   :  { %5836 = vmatmul.mubr.msk.f32.vlgmr.msra.gmra.mrb[32].mxu1 %vm2355_vm3, %v2350_v62  ;;  %v2496_v62 = vld [vmem:[%s7327_s1 + $0x278] sm:$0xff] }
0x16f0   :  { %5860 = vmatprep.mubr.msk.f32.mxu1 %vm6260_vm1, %v6259_v30 }
0x17c2   :  { %v5837_v4 = vpop.f32.mrb[32].mxu1 }
0x17c3   :  { %v6772_v19 = vadd.f32 %v5837_v4, %v5394_v13  ;;  %v2428_v43 = vpop.f32.mrb[33].mxu1 }
0x17c4   :  { %v2429_v5 = vadd.f32 %v5394_v13, %v2428_v43 }
0x17c6   :  { %v2437_v3 = vadd.f32 %v2429_v5, %v2262_v51  ;;  %v6830_v51 = vld [vmem:[%s7327_s1 + $0x80] sm:$0xff] }
0x17c8   :  { %v2439_v8 = vsel %vm21_vm0, %v2437_v3, 0.0 }
0x17c9   :  { %2440 = vadd.xlane.f32.xlu1 %v2439_v8 }
0x1856   :  { %v2441_v7 = vpop.xlane.xlu1 %2440 }
0x1857   :  { %v2445_v12 = vmul.f32 0.03125, %v2441_v7 }
0x1859   :  { %v2447_v10 = vsub.f32 %v2437_v3, %v2445_v12 }
0x185b   :  { %v2449_v15 = vmul.f32 %v2447_v10, %v2447_v10 }
0x185d   :  { %v2451_v14 = vsel %vm21_vm0, %v2449_v15, 0.0 }
0x185e   :  { %2452 = vadd.xlane.f32.xlu1 %v2451_v14 }
0x186f   :  { %2526 = vperm.xlu1 %6166, %v2489_v40   ;;  %v6921_v40 = vld [vmem:[%s7327_s1 + $0xb0] sm:$0xff] }
0x1873   :  { %2546 = vperm.xlu1 %6166, %v2493_v16   ;;  %v6926_v16 = vld [vmem:[%s7327_s1 + $0xb8] sm:$0xff] }
0x18eb   :  { %v2453_v20 = vpop.xlane.xlu1 %2452 }
0x18ec   :  { %v2457_v22 = vmul.f32 0.03125, %v2453_v20 }
0x18ee   :  { %v2459_v25 = vadd.f32 1e-05, %v2457_v22 }
0x18ef   :  { %v6843_v9 = vpop.permute.xlu1 %2526 }
0x18f0   :  { %6208 = vrsqrt.f32 %v2459_v25 }
0x18f3   :  { %v6848_v31 = vpop.permute.xlu1 %2546 }
0x18fa   :  { %v6209_v28 = vpop.eup %6208 }
0x18fb   :  { %v2463_v38 = vmul.f32 %v6209_v28, %v2447_v10 }
0x18fd   :  { %v2469_v41 = vmul.f32 %v6792_v37, %v2463_v38 }
0x18ff   :  { %v6801_v58 = vadd.f32 %v6797_v39, %v2469_v41 }
0x1901   :  { %5838 = vmatprep.subr.msk.mxu0 %vm21_vm0, %v6801_v58 }
0x1902   :  { %5839 = vmatpush3.xpose.msk.msra.mxu0 %vm21_vm0, %v6801_v58 }
0x1903   :  { %5873 = vmatprep.subr.mxu0 %v6259_v30 }
0x1905   :  { %5841 = vmatmul.mubr.msk.f32.vlgmr.msra.gmra.mrb[30].mxu0 %vm21_vm0, %v6810_v33 }
0x1906   :  { %5843 = vmatprep.mubr.msk.f32.mxu0 %vm21_vm0, %v6815_v56 }
0x1909   :  { %5844 = vmatmul.mubr.msk.f32.gmra.mrb[32].mxu0 %vm21_vm0, %v6825_v49 }
0x190a   :  { %5846 = vmatprep.mubr.msk.f32.mxu0 %vm21_vm0, %v6830_v51 }
0x190d   :  { %5847 = vmatmul.mubr.msk.f32.gmra.mrb[34].mxu0 %vm21_vm0, %v6839_v21 }
0x190e   :  { %5849 = vmatprep.mubr.msk.f32.mxu0 %vm21_vm0, %v6861_v54 }
0x1911   :  { %5850 = vmatmul.mubr.msk.f32.gmra.mrb[36].mxu0 %vm21_vm0, %v6866_v46 }
0x1912   :  { %5852 = vmatprep.mubr.msk.f32.mxu0 %vm21_vm0, %v6871_v36 }
0x1915   :  { %5853 = vmatmul.mubr.msk.f32.gmra.mrb[38].mxu0 %vm21_vm0, %v6882_v42 }
0x1916   :  { %5855 = vmatprep.mubr.msk.f32.mxu0 %vm21_vm0, %v6921_v40 }
0x1919   :  { %5856 = vmatmul.mubr.msk.f32.gmra.mrb[40].mxu0 %vm21_vm0, %v6926_v16 }
0x191a   :  { %5875 = vmatprep.mubr.msk.f32.mxu0 %vm6260_vm1, %v6259_v30 }
0x19d8   :  { %v5842_v55 = vpop.f32.mrb[30].mxu0 }
0x19d9   :  { %v2689_v17 = vpop.f32.mrb[31].mxu0 }
0x19da   :  { %v2690_v18 = vadd.f32 %v2689_v17, %v6843_v9 }
0x19dc   :  { %2748 = vxpose.xlu1.b32.start.end [1/1] (short) (narrow) %v2690_v18, 8  ;;  %v5845_v23 = vpop.f32.mrb[32].mxu0 }
0x19dd   :  { %v2699_v27 = vpop.f32.mrb[33].mxu0 }
0x19e0   :  { %v6846_v35 = vpop.f32.mrb[34].mxu0 }
0x19e1   :  { %v2709_v34 = vpop.f32.mrb[35].mxu0 }
0x19e2   :  { %v2710_v29 = vadd.f32 %v2709_v34, %v6848_v31 }
0x19e4   :  { %5859 = vmatpush3.msra.mxu1 %v2710_v29  ;;  %v5851_v59 = vpop.f32.mrb[36].mxu0 }
0x19e5   :  { %5863 = vmatprep.subr.mxu1 %v6259_v30  ;;  %v2719_v61 = vpop.f32.mrb[37].mxu0 }
0x19e8   :  { %v6897_v63 = vpop.f32.mrb[38].mxu0 }
0x19e9   :  { %v2729_v0 = vpop.f32.mrb[39].mxu0 }
0x19fa   :  { %2531 = vperm.xlu1 %6166, %v2490_v44  }
0x19fe   :  { %2541 = vperm.xlu1 %6166, %v2492_v32  }
0x1a5c   :  { %v2764_v45 = vpop.trf.xlu1 }
0x1a5d   :  { %5861 = vmatmul.mubr.msk.f32.vlgmr.msra.gmra.mrb[34].mxu1 %vm371_vm2, %v2764_v45 }
0x1a5e   :  { %5865 = vmatprep.mubr.msk.f32.mxu1 %vm6260_vm1, %v6259_v30 }
0x1a79   :  { %v6908_v13 = vpop.permute.xlu1 %2531 }
0x1a7a   :  { %v2695_v4 = vadd.f32 %v5842_v55, %v6908_v13 }
0x1a7d   :  { %v6911_v43 = vpop.permute.xlu1 %2541 }
0x1a7e   :  { %v2705_v5 = vadd.f32 %v5845_v23, %v6911_v43 }
0x1b30   :  { %v2849_v48 = vpop.f32.mrb[34].mxu1 }
0x1b31   :  { %v2850_v50 = vadd.f32 %v2849_v48, %v6417_v47  ;;  %v5862_v52 = vpop.f32.mrb[35].mxu1 }
0x1b33   :  { %v2853_v57 = vsel %vm371_vm2, %v2850_v50, -inf }
0x1b34   :  { %2854 = vmax.xlane.f32.xlu0 %v2853_v57 }
0x1b4a   :  { %2536 = vperm.xlu0 %6167, %v2491_v24  }
0x1b4e   :  { %2566 = vperm.xlu0 %6167, %v2497_v60  }
0x1b52   :  { %2551 = vperm.xlu0 %6167, %v2494_v1  }
0x1b56   :  { %2556 = vperm.xlu0 %6167, %v2495_v2  }
0x1b5a   :  { %2561 = vperm.xlu0 %6167, %v2496_v62   ;;  %v2438_v62 = vadd.f32 %v6772_v19, %v6751_v53 }
0x1b78   :  { %2940 = vxpose.xlu0.b32.start.end [1/1] (short) (narrow) %v2695_v4, 8  ;;  %v2442_v4 = vsel %vm21_vm0, %v2438_v62, 0.0 }
0x1b7c   :  { %3324 = vxpose.xlu0.b32.start.end [1/1] (short) (narrow) %v2705_v5, 8  ;;  %v2499_v5 = vld [vmem:[%s7327_s1 + $0x290] sm:$0xff] }
0x1bc1   :  { %v2855_v3 = vpop.xlane.xlu0 %2854 }
0x1bc2   :  { %v2856_v8 = vsub.f32 %v2850_v50, %v2855_v3  ;;  %v6976_v3 = vpop.f32.mrb[40].mxu0 }
0x1bc4   :  { %v2857_v7 = vmul.f32 1.442695, %v2856_v8  ;;  %v2739_v8 = vpop.f32.mrb[41].mxu0 }
0x1bc6   :  { %6210 = vpow2.f32 %v2857_v7 }
0x1bc9   :  { %v6915_v15 = vpop.permute.xlu0 %2536 }
0x1bca   :  { %v2700_v14 = vadd.f32 %v2699_v27, %v6915_v15 }
0x1bcd   :  { %v6934_v20 = vpop.permute.xlu0 %2566 }
0x1bce   :  { %v2730_v17 = vadd.f32 %v2729_v0, %v6934_v20 }
0x1bd0   :  { %v6211_v12 = vpop.eup %6210 }
0x1bd1   :  { %v2859_v10 = vsel %vm371_vm2, %v6211_v12, 0.0  ;;  %v6936_v25 = vpop.permute.xlu0 %2551 }
0x1bd2   :  { %2860 = vadd.xlane.f32.xlu1 %v2859_v10  ;;  %v2715_v18 = vadd.f32 %v6846_v35, %v6936_v25 }
0x1bd5   :  { %v6938_v28 = vpop.permute.xlu0 %2556 }
0x1bd6   :  { %v2720_v27 = vadd.f32 %v2719_v61, %v6938_v28 }
0x1bd9   :  { %v6940_v55 = vpop.permute.xlu0 %2561 }
0x1bda   :  { %v2725_v35 = vadd.f32 %v5851_v59, %v6940_v55 }
0x1bf8   :  { %v2956_v23 = vpop.trf.xlu0 }
0x1bfc   :  { %v3340_v29 = vpop.trf.xlu0 }
0x1c05   :  { %3132 = vxpose.xlu1.b32.start.end [1/1] (short) (narrow) %v2700_v14, 8 }
0x1c5f   :  { %v2861_v22 = vpop.xlane.xlu1 %2860 }
0x1c60   :  { %6212 = vrcp.f32 %v2861_v22 }
0x1c6a   :  { %v6213_v38 = vpop.eup %6212 }
0x1c6b   :  { %v2863_v41 = vmul.f32 %v6213_v38, %v6211_v12 }
0x1c6d   :  { %5864 = vmatpush3.xpose.msk.msra.mxu1 %vm371_vm2, %v2863_v41 }
0x1c6e   :  { %5868 = vmatprep.subr.mxu1 %v6259_v30 }
0x1c70   :  { %5866 = vmatmul.mubr.msk.f32.vlgmr.msra.gmra.mrb[36].mxu1 %vm371_vm2, %v2730_v17 }
0x1c71   :  { %5869 = vmatpush3.msra.mxu1 %v2715_v18  ;;  %5870 = vmatprep.mubr.msk.f32.mxu1 %vm6260_vm1, %v6259_v30 }
0x1c72   :  { %5878 = vmatprep.subr.mxu1 %v6259_v30 }
0x1c74   :  { %5871 = vmatmul.mubr.msk.f32.vlgmr.msra.gmra.mrb[38].mxu1 %vm371_vm2, %v2956_v23 }
0x1c75   :  { %5879 = vmatpush3.msra.mxu1 %v2720_v27  ;;  %5880 = vmatprep.mubr.msk.f32.mxu1 %vm6260_vm1, %v6259_v30 }
0x1c76   :  { %5888 = vmatprep.subr.mxu1 %v6259_v30 }
0x1c85   :  { %v3148_v34 = vpop.trf.xlu1 }
0x1c86   :  { %5881 = vmatmul.mubr.msk.f32.vlgmr.msra.gmra.mrb[40].mxu1 %vm371_vm2, %v3148_v34 }
0x1c87   :  { %5889 = vmatpush3.msra.mxu1 %v2725_v35  ;;  %5890 = vmatprep.mubr.msk.f32.mxu1 %vm6260_vm1, %v6259_v30 }
0x1c88   :  { %6097 = vmatprep.subr.bf16.mxu1 %v6261_v26 }
0x1c8a   :  { %5891 = vmatmul.mubr.msk.f32.vlgmr.msra.gmra.mrb[42].mxu1 %vm371_vm2, %v3340_v29 }
0x1c8b   :  { %5906 = vmatprep.mubr.msk.f32.mxu1 %vm6260_vm1, %v6259_v30 }
0x1d43   :  { %v2936_v44 = vpop.f32.mrb[36].mxu1 }
0x1d44   :  { %v5867_v32 = vpop.f32.mrb[37].mxu1 }
0x1d47   :  { %v3041_v45 = vpop.f32.mrb[38].mxu1 }
0x1d48   :  { %v3042_v48 = vadd.f32 %v3041_v45, %v6417_v47  ;;  %v5872_v50 = vpop.f32.mrb[39].mxu1 }
0x1d4a   :  { %v3045_v52 = vsel %vm371_vm2, %v3042_v48, -inf }
0x1d4b   :  { %3046 = vmax.xlane.f32.xlu0 %v3045_v52  ;;  %v2498_v52 = vld [vmem:[%s7327_s1 + $0x288] sm:$0xff] }
0x1d59   :  { %v3233_v57 = vpop.f32.mrb[40].mxu1 }
0x1d5a   :  { %v3234_v24 = vadd.f32 %v3233_v57, %v6417_v47  ;;  %v5882_v59 = vpop.f32.mrb[41].mxu1 }
0x1d5c   :  { %v3237_v60 = vsel %vm371_vm2, %v3234_v24, -inf }
0x1d5d   :  { %3238 = vmax.xlane.f32.xlu1 %v3237_v60  ;;  %v3425_v61 = vpop.f32.mrb[42].mxu1 }
0x1d5e   :  { %v3426_v0 = vadd.f32 %v3425_v61, %v6417_v47  ;;  %v5892_v1 = vpop.f32.mrb[43].mxu1  ;;  %v2500_v47 = vld [vmem:[%s7327_s1 + $0x298] sm:$0xff] }
0x1d60   :  { %v3429_v2 = vsel %vm371_vm2, %v3426_v0, -inf }
0x1d61   :  { %3430 = vmax.xlane.f32.xlu0 %v3429_v2 }
0x1d65   :  { %2443 = vadd.xlane.f32.xlu0 %v2442_v4 }
0x1d6e   :  { %2576 = vperm.xlu1 %6166, %v2499_v5  }
0x1d72   :  { %2581 = vperm.xlu1 %6166, %v2500_v47  }
0x1dd8   :  { %v3047_v7 = vpop.xlane.xlu0 %3046 }
0x1dd9   :  { %v3048_v12 = vsub.f32 %v3042_v48, %v3047_v7 }
0x1ddb   :  { %v3049_v19 = vmul.f32 1.442695, %v3048_v12 }
0x1ddd   :  { %6214 = vpow2.f32 %v3049_v19 }
0x1de7   :  { %v6215_v34 = vpop.eup %6214 }
0x1de8   :  { %v3051_v29 = vsel %vm371_vm2, %v6215_v34, 0.0 }
0x1dea   :  { %v3239_v53 = vpop.xlane.xlu1 %3238 }
0x1deb   :  { %v3240_v10 = vsub.f32 %v3234_v24, %v3239_v53 }
0x1ded   :  { %v3241_v22 = vmul.f32 1.442695, %v3240_v10 }
0x1dee   :  { %v3431_v14 = vpop.xlane.xlu0 %3430  ;;  %v6989_v47 = vpop.permute.xlu1 %2576 }
0x1def   :  { %v3432_v38 = vsub.f32 %v3426_v0, %v3431_v14  ;;  %6216 = vpow2.f32 %v3241_v22  ;;  %v2740_v14 = vadd.f32 %v2739_v8, %v6989_v47 }
0x1df1   :  { %v3433_v18 = vmul.f32 1.442695, %v3432_v38 }
0x1df2   :  { %v2444_v41 = vpop.xlane.xlu0 %2443  ;;  %v7003_v22 = vpop.permute.xlu1 %2581 }
0x1df3   :  { %v2446_v17 = vmul.f32 0.03125, %v2444_v41  ;;  %6218 = vpow2.f32 %v3433_v18 }
0x1df5   :  { %v2448_v23 = vsub.f32 %v2438_v62, %v2446_v17 }
0x1df7   :  { %v2450_v27 = vmul.f32 %v2448_v23, %v2448_v23 }
0x1df9   :  { %v2454_v35 = vsel %vm21_vm0, %v2450_v27, 0.0  ;;  %v6217_v32 = vpop.eup %6216 }
0x1dfa   :  { %2455 = vadd.xlane.f32.xlu0 %v2454_v35  ;;  %v3243_v45 = vsel %vm371_vm2, %v6217_v32, 0.0 }
0x1dfd   :  { %v6219_v48 = vpop.eup %6218 }
0x1dfe   :  { %3052 = vadd.xlane.f32.xlu0 %v3051_v29  ;;  %v3435_v50 = vsel %vm371_vm2, %v6219_v48, 0.0 }
0x1e02   :  { %3244 = vadd.xlane.f32.xlu0 %v3243_v45 }
0x1e06   :  { %3436 = vadd.xlane.f32.xlu0 %v3435_v50 }
0x1e1c   :  { %2571 = vperm.xlu0 %6167, %v2498_v52  }
0x1e3a   :  { %3516 = vxpose.xlu0.b32.start [1/4] (short) (narrow) %v2936_v44, 8 }
0x1e87   :  { %v2456_v57 = vpop.xlane.xlu0 %2455 }
0x1e88   :  { %v2458_v24 = vmul.f32 0.03125, %v2456_v57 }
0x1e8a   :  { %v2460_v59 = vadd.f32 1e-05, %v2458_v24 }
0x1e8b   :  { %v3053_v60 = vpop.xlane.xlu0 %3052 }
0x1e8c   :  { %6220 = vrsqrt.f32 %v2460_v59 }
0x1e8d   :  { %6222 = vrcp.f32 %v3053_v60 }
0x1e8f   :  { %v3245_v61 = vpop.xlane.xlu0 %3244 }
0x1e90   :  { %6224 = vrcp.f32 %v3245_v61 }
0x1e93   :  { %v3437_v0 = vpop.xlane.xlu0 %3436 }
0x1e94   :  { %6226 = vrcp.f32 %v3437_v0 }
0x1e96   :  { %v6221_v1 = vpop.eup %6220 }
0x1e97   :  { %v6223_v2 = vpop.eup %6222  ;;  %v2464_v5 = vmul.f32 %v6221_v1, %v2448_v23 }
0x1e98   :  { %v3055_v62 = vmul.f32 %v6223_v2, %v6215_v34 }
0x1e99   :  { %v2470_v19 = vmul.f32 %v6792_v37, %v2464_v5  ;;  %v2745_v37 = vadd.f32 %v6976_v3, %v7003_v22 }
0x1e9a   :  { %v6225_v4 = vpop.eup %6224  ;;  %5874 = vmatpush3.xpose.msk.msra.mxu0 %vm371_vm2, %v3055_v62 }
0x1e9b   :  { %v3247_v44 = vmul.f32 %v6225_v4, %v6217_v32  ;;  %v6991_v7 = vpop.permute.xlu0 %2571  ;;  %5883 = vmatprep.subr.mxu0 %v6259_v30 }
0x1e9c   :  { %v2735_v12 = vadd.f32 %v6897_v63, %v6991_v7  ;;  %v7007_v63 = vadd.f32 %v6797_v39, %v2470_v19  ;;  %v2502_v39 = vld [vmem:[%s7327_s1 + $0xe8] sm:$0xff] }
0x1e9e   :  { %v6227_v53 = vpop.eup %6226  ;;  %5876 = vmatmul.mubr.msk.f32.vlgmr.msra.gmra.mrb[42].mxu0 %vm371_vm2, %v2735_v12 }
0x1e9f   :  { %v3439_v10 = vmul.f32 %v6227_v53, %v6219_v48  ;;  %5884 = vmatpush3.xpose.msk.msra.mxu0 %vm371_vm2, %v3247_v44  ;;  %5885 = vmatprep.mubr.msk.f32.mxu0 %vm6260_vm1, %v6259_v30 }
0x1ea0   :  { %5893 = vmatprep.subr.mxu0 %v6259_v30 }
0x1ea2   :  { %5886 = vmatmul.mubr.msk.f32.vlgmr.msra.gmra.mrb[44].mxu0 %vm371_vm2, %v2740_v14 }
0x1ea3   :  { %5894 = vmatpush3.xpose.msk.msra.mxu0 %vm371_vm2, %v3439_v10  ;;  %5895 = vmatprep.mubr.msk.f32.mxu0 %vm6260_vm1, %v6259_v30 }
0x1ea4   :  { %5909 = vmatprep.subr.msk.mxu0 %vm21_vm0, %v7007_v63 }
0x1ea6   :  { %5896 = vmatmul.mubr.msk.f32.vlgmr.msra.gmra.mrb[46].mxu0 %vm371_vm2, %v2745_v37 }
0x1ea7   :  { %5910 = vmatpush3.xpose.msk.msra.mxu0 %vm21_vm0, %v7007_v63  ;;  %5911 = vmatprep.mubr.msk.f32.mxu0 %vm21_vm0, %v6785_v11  ;;  %v2501_v11 = vld [vmem:[%s7327_s1 + $0xe0] sm:$0xff] }
0x1ea8   :  { %5954 = vmatprep.subr.mxu0 %v6259_v30 }
0x1eaa   :  { %5912 = vmatmul.mubr.msk.f32.vlgmr.msra.gmra.mrb[48].mxu0 %vm21_vm0, %v6810_v33  ;;  %v2503_v33 = vld [vmem:[%s7327_s1 + $0xf0] sm:$0xff] }
0x1eab   :  { %5914 = vmatprep.mubr.msk.f32.mxu0 %vm21_vm0, %v6815_v56  ;;  %v7055_v56 = vpack.c.bf16 %v2502_v39, %v2501_v11 }
0x1ead   :  { %6099 = vmatpush3.bf16.msra.mxu1 %v7055_v56 }
0x1eae   :  { %5915 = vmatmul.mubr.msk.f32.gmra.mrb[50].mxu0 %vm21_vm0, %v6825_v49  ;;  %v2504_v49 = vld [vmem:[%s7327_s1 + $0xf8] sm:$0xff]  ;;  %6100 = vmatprep.subr.bf16.mxu1 %v6261_v26 }
0x1eaf   :  { %5917 = vmatprep.mubr.msk.f32.mxu0 %vm21_vm0, %v6830_v51  ;;  %v7061_v51 = vpack.c.bf16 %v2504_v49, %v2503_v33 }
0x1eb1   :  { %6102 = vmatpush3.bf16.msra.mxu1 %v7061_v51 }
0x1eb2   :  { %5918 = vmatmul.mubr.msk.f32.gmra.mrb[52].mxu0 %vm21_vm0, %v6839_v21  ;;  %5929 = vmatprep.subr.mxu1 %v6259_v30 }
0x1eb3   :  { %5920 = vmatprep.mubr.msk.f32.mxu0 %vm21_vm0, %v6861_v54 }
0x1eb6   :  { %5921 = vmatmul.mubr.msk.f32.gmra.mrb[54].mxu0 %vm21_vm0, %v6866_v46 }
0x1eb7   :  { %5923 = vmatprep.mubr.msk.f32.mxu0 %vm21_vm0, %v6871_v36 }
0x1eba   :  { %5924 = vmatmul.mubr.msk.f32.gmra.mrb[56].mxu0 %vm21_vm0, %v6882_v42 }
0x1ebb   :  { %5926 = vmatprep.mubr.msk.f32.mxu0 %vm21_vm0, %v6921_v40 }
0x1ebe   :  { %5927 = vmatmul.mubr.msk.f32.gmra.mrb[58].mxu0 %vm21_vm0, %v6926_v16 }
0x1ebf   :  { %5956 = vmatprep.mubr.msk.f32.mxu0 %vm6260_vm1, %v6259_v30 }
0x1f71   :  { %v3128_v21 = vpop.f32.mrb[42].mxu0 }
0x1f72   :  { %3517 = vxpose.xlu0.b32.cont [2/4] (short) (narrow) %v3128_v21, 8  ;;  %v5877_v54 = vpop.f32.mrb[43].mxu0 }
0x1f75   :  { %v3320_v46 = vpop.f32.mrb[44].mxu0 }
0x1f76   :  { %3518 = vxpose.xlu0.b32.cont [3/4] (short) (narrow) %v3320_v46, 8  ;;  %v5887_v36 = vpop.f32.mrb[45].mxu0 }
0x1f79   :  { %v3512_v42 = vpop.f32.mrb[46].mxu0 }
0x1f7a   :  { %3519 = vxpose.xlu0.b32.end [4/4] (short) (narrow) %v3512_v42, 8  ;;  %v5897_v40 = vpop.f32.mrb[47].mxu0 }
0x1f7d   :  { %v5913_v16 = vpop.f32.mrb[48].mxu0 }
0x1f7e   :  { %v3690_v3 = vpop.f32.mrb[49].mxu0  ;;  %v3696_v62 = vadd.f32 %v5913_v16, %v6908_v13 }
0x1f7f   :  { %v3691_v8 = vadd.f32 %v3690_v3, %v6843_v9 }
0x1f81   :  { %v5916_v38 = vpop.f32.mrb[50].mxu0  ;;  %3749 = vxpose.xlu1.b32.start.end [1/1] (short) (narrow) %v3691_v8, 8  ;;  %v5451_v8 = vld [vmem:[%s7328_s3 + $0x9] ss:$0 sm:$0xff] }
0x1f82   :  { %v7067_v41 = vpop.f32.mrb[51].mxu0  ;;  %v3706_v4 = vadd.f32 %v5916_v38, %v6911_v43 }
0x1f83   :  { %v3701_v54 = vadd.f32 %v7067_v41, %v6915_v15 }
0x1f85   :  { %v5919_v17 = vpop.f32.mrb[52].mxu0 }
0x1f86   :  { %v3710_v18 = vpop.f32.mrb[53].mxu0  ;;  %v3716_v19 = vadd.f32 %v5919_v17, %v6936_v25 }
0x1f87   :  { %v3711_v45 = vadd.f32 %v3710_v18, %v6848_v31 }
0x1f89   :  { %v7069_v23 = vpop.f32.mrb[54].mxu0 }
0x1f8a   :  { %v7071_v27 = vpop.f32.mrb[55].mxu0  ;;  %v3726_v15 = vadd.f32 %v7069_v23, %v6940_v55 }
0x1f8b   :  { %v3721_v16 = vadd.f32 %v7071_v27, %v6938_v28 }
0x1f8d   :  { %v7073_v35 = vpop.f32.mrb[56].mxu0 }
0x1f8e   :  { %v3730_v34 = vpop.f32.mrb[57].mxu0  ;;  %v3736_v40 = vadd.f32 %v7073_v35, %v6991_v7 }
0x1f8f   :  { %v3731_v53 = vadd.f32 %v3730_v34, %v6934_v20 }
0x1f91   :  { %v7075_v29 = vpop.f32.mrb[58].mxu0 }
0x1f92   :  { %v7077_v32 = vpop.f32.mrb[59].mxu0 }
0x1fee   :  { %v3532_v9 = vpop.trf.xlu0 }
0x1fef   :  { %5907 = vmatmul.mubr.msk.f32.vlgmr.msra.gmra.mrb[44].mxu1 %vm21_vm0, %v3532_v9 }
0x1ff0   :  { %5930 = vmatpush3.msra.mxu1 %v3711_v45  ;;  %5931 = vmatprep.mubr.msk.f32.mxu1 %vm6260_vm1, %v6259_v30 }
0x1ff1   :  { %5934 = vmatprep.subr.mxu1 %v6259_v30 }
0x2001   :  { %v3765_v48 = vpop.trf.xlu1 }
0x2002   :  { %5932 = vmatmul.mubr.msk.f32.vlgmr.msra.gmra.mrb[46].mxu1 %vm371_vm2, %v3765_v48 }
0x2003   :  { %5936 = vmatprep.mubr.msk.f32.mxu1 %vm6260_vm1, %v6259_v30 }
0x20c2   :  { %v7087_v50 = vpop.f32.mrb[44].mxu1 }
0x20c3   :  { %v5908_v52 = vpop.f32.mrb[45].mxu1  ;;  %v4626_v18 = vadd.f32 %v5451_v8, %v7087_v50 }
0x20c5   :  { %v4628_v34 = vadd.f32 %v4626_v18, %v6801_v58  ;;  %v2506_v18 = vld [vmem:[%s7327_s1 + $0x148] sm:$0xff] }
0x20c7   :  { %v4630_v45 = vsel %vm21_vm0, %v4628_v34, 0.0 }
0x20d5   :  { %v3850_v57 = vpop.f32.mrb[46].mxu1 }
0x20d6   :  { %v3851_v31 = vadd.f32 %v3850_v57, %v6301_v6  ;;  %v5933_v24 = vpop.f32.mrb[47].mxu1 }
0x20d8   :  { %v3854_v59 = vsel %vm371_vm2, %v3851_v31, -inf }
0x20d9   :  { %3855 = vmax.xlane.f32.xlu0 %v3854_v59 }
0x2166   :  { %v3856_v60 = vpop.xlane.xlu0 %3855 }
0x2167   :  { %v3857_v61 = vsub.f32 %v3851_v31, %v3856_v60 }
0x2169   :  { %v3858_v0 = vmul.f32 1.442695, %v3857_v61 }
0x216b   :  { %6228 = vpow2.f32 %v3858_v0 }
0x2175   :  { %v6229_v1 = vpop.eup %6228 }
0x2176   :  { %v3860_v2 = vsel %vm371_vm2, %v6229_v1, 0.0 }
0x2177   :  { %3861 = vadd.xlane.f32.xlu1 %v3860_v2 }
0x21aa   :  { %3941 = vxpose.xlu1.b32.start.end [1/1] (short) (narrow) %v3696_v62, 8  ;;  %v3741_v62 = vadd.f32 %v7077_v32, %v6989_v47 }
0x21ae   :  { %4325 = vxpose.xlu1.b32.start.end [1/1] (short) (narrow) %v3706_v4, 8 }
0x2204   :  { %v3862_v5 = vpop.xlane.xlu1 %3861 }
0x2205   :  { %6230 = vrcp.f32 %v3862_v5  ;;  %v3746_v5 = vadd.f32 %v7075_v29, %v7003_v22 }
0x220f   :  { %v6231_v44 = vpop.eup %6230 }
0x2210   :  { %v3864_v12 = vmul.f32 %v6231_v44, %v6229_v1 }
0x2212   :  { %5935 = vmatpush3.xpose.msk.msra.mxu1 %vm371_vm2, %v3864_v12 }
0x2213   :  { %5939 = vmatprep.subr.mxu1 %v6259_v30 }
0x2215   :  { %5937 = vmatmul.mubr.msk.f32.vlgmr.msra.gmra.mrb[48].mxu1 %vm371_vm2, %v3731_v53 }
0x2216   :  { %5940 = vmatpush3.msra.mxu1 %v3716_v19  ;;  %5941 = vmatprep.mubr.msk.f32.mxu1 %vm6260_vm1, %v6259_v30 }
0x2217   :  { %5944 = vmatprep.subr.mxu1 %v6259_v30 }
0x222a   :  { %v3957_v13 = vpop.trf.xlu1 }
0x222b   :  { %5942 = vmatmul.mubr.msk.f32.vlgmr.msra.gmra.mrb[50].mxu1 %vm371_vm2, %v3957_v13 }
0x222c   :  { %5946 = vmatprep.mubr.msk.f32.mxu1 %vm6260_vm1, %v6259_v30 }
0x222e   :  { %v4341_v7 = vpop.trf.xlu1 }
0x22e8   :  { %v7105_v43 = vpop.f32.mrb[48].mxu1 }
0x22e9   :  { %v5938_v20 = vpop.f32.mrb[49].mxu1 }
0x22fe   :  { %v4042_v10 = vpop.f32.mrb[50].mxu1 }
0x22ff   :  { %v4043_v25 = vadd.f32 %v4042_v10, %v6301_v6  ;;  %v5943_v14 = vpop.f32.mrb[51].mxu1 }
0x2301   :  { %v4046_v37 = vsel %vm371_vm2, %v4043_v25, -inf }
0x2302   :  { %4047 = vmax.xlane.f32.xlu0 %v4046_v37 }
0x238f   :  { %v4048_v11 = vpop.xlane.xlu0 %4047 }
0x2390   :  { %v4049_v39 = vsub.f32 %v4043_v25, %v4048_v11 }
0x2392   :  { %v4050_v33 = vmul.f32 1.442695, %v4049_v39 }
0x2394   :  { %6232 = vpow2.f32 %v4050_v33 }
0x239e   :  { %v6233_v49 = vpop.eup %6232 }
0x239f   :  { %v4052_v21 = vsel %vm371_vm2, %v6233_v49, 0.0 }
0x23a0   :  { %4053 = vadd.xlane.f32.xlu0 %v4052_v21 }
0x23cd   :  { %4133 = vxpose.xlu0.b32.start.end [1/1] (short) (narrow) %v3701_v54, 8 }
0x242d   :  { %v4054_v46 = vpop.xlane.xlu0 %4053 }
0x242e   :  { %6234 = vrcp.f32 %v4054_v46 }
0x2438   :  { %v6235_v36 = vpop.eup %6234 }
0x2439   :  { %v4056_v42 = vmul.f32 %v6235_v36, %v6233_v49 }
0x243b   :  { %5945 = vmatpush3.xpose.msk.msra.mxu1 %vm371_vm2, %v4056_v42 }
0x243c   :  { %5949 = vmatprep.subr.mxu1 %v6259_v30 }
0x243e   :  { %5947 = vmatmul.mubr.msk.f32.vlgmr.msra.gmra.mrb[52].mxu1 %vm371_vm2, %v3736_v40 }
0x243f   :  { %5950 = vmatpush3.msra.mxu1 %v3721_v16  ;;  %5951 = vmatprep.mubr.msk.f32.mxu1 %vm6260_vm1, %v6259_v30  ;;  %v5453_v16 = vld [vmem:[%s7328_s3 + $0xb] ss:$0 sm:$0xff] }
0x2440   :  { %5959 = vmatprep.subr.mxu1 %v6259_v30 }
0x244d   :  { %v4149_v3 = vpop.trf.xlu0 }
0x244e   :  { %5952 = vmatmul.mubr.msk.f32.vlgmr.msra.gmra.mrb[54].mxu1 %vm371_vm2, %v4149_v3 }
0x244f   :  { %5960 = vmatpush3.msra.mxu1 %v3726_v15  ;;  %5961 = vmatprep.mubr.msk.f32.mxu1 %vm6260_vm1, %v6259_v30 }
0x2450   :  { %6103 = vmatprep.subr.bf16.mxu1 %v6261_v26 }
0x2452   :  { %5962 = vmatmul.mubr.msk.f32.vlgmr.msra.gmra.mrb[56].mxu1 %vm371_vm2, %v4341_v7  ;;  %v2513_v7 = vld [vmem:[%s7329_s2 + $0x20] sm:$0xff] }
0x2453   :  { %6105 = vmatpush3.bf16.msra.mxu1 %v7055_v56  ;;  %5977 = vmatprep.mubr.msk.f32.mxu1 %vm6260_vm1, %v6259_v30 }
0x2454   :  { %6106 = vmatprep.subr.bf16.mxu1 %v6261_v26 }
0x2457   :  { %6108 = vmatpush3.bf16.msra.mxu1 %v7061_v51 }
0x2511   :  { %v4129_v28 = vpop.f32.mrb[52].mxu1 }
0x2512   :  { %v5948_v55 = vpop.f32.mrb[53].mxu1 }
0x2521   :  { %v4234_v38 = vpop.f32.mrb[54].mxu1 }
0x2522   :  { %v4235_v41 = vadd.f32 %v4234_v38, %v6301_v6  ;;  %v5953_v17 = vpop.f32.mrb[55].mxu1  ;;  %v2516_v38 = vld [vmem:[%s7329_s2 + $0x38] sm:$0xff] }
0x2523   :  { %v2505_v17 = vld [vmem:[%s7327_s1 + $0x140] sm:$0xff] }
0x2524   :  { %v4238_v56 = vsel %vm371_vm2, %v4235_v41, -inf }
0x2525   :  { %4239 = vmax.xlane.f32.xlu1 %v4238_v56  ;;  %v4426_v23 = vpop.f32.mrb[56].mxu1  ;;  %v2507_v56 = vld [vmem:[%s7327_s1 + $0x150] sm:$0xff] }
0x2526   :  { %v4427_v27 = vadd.f32 %v4426_v23, %v6301_v6  ;;  %v5963_v35 = vpop.f32.mrb[57].mxu1  ;;  %v6117_v23 = vpack.c.bf16 %v2506_v18, %v2505_v17 }
0x2528   :  { %v4430_v51 = vsel %vm371_vm2, %v4427_v27, -inf  ;;  %6118 = vmatprep.subr.bf16.mxu1 %v6117_v23 }
0x2529   :  { %4431 = vmax.xlane.f32.xlu0 %v4430_v51  ;;  %v2509_v51 = vld [vmem:[%s7327_s1 + $0x160] sm:$0xff] }
0x252d   :  { %4631 = vadd.xlane.f32.xlu0 %v4630_v45 }
0x25b2   :  { %v4240_v9 = vpop.xlane.xlu1 %4239 }
0x25b3   :  { %v4241_v48 = vsub.f32 %v4235_v41, %v4240_v9 }
0x25b5   :  { %v4242_v52 = vmul.f32 1.442695, %v4241_v48 }
0x25b6   :  { %v4432_v57 = vpop.xlane.xlu0 %4431 }
0x25b7   :  { %6236 = vpow2.f32 %v4242_v52  ;;  %v4433_v50 = vsub.f32 %v4427_v27, %v4432_v57  ;;  %v2508_v27 = vld [vmem:[%s7327_s1 + $0x158] sm:$0xff] }
0x25b8   :  { %v6121_v35 = vpack.c.bf16 %v2508_v27, %v2507_v56  ;;  %v5461_v56 = vld [vmem:[%s7328_s3 + $0xf] ss:$0 sm:$0xff] }
0x25b9   :  { %v4434_v31 = vmul.f32 1.442695, %v4433_v50 }
0x25ba   :  { %v4632_v19 = vpop.xlane.xlu0 %4631 }
0x25bb   :  { %6238 = vpow2.f32 %v4434_v31  ;;  %v4636_v13 = vmul.f32 0.03125, %v4632_v19 }
0x25bd   :  { %v4638_v20 = vsub.f32 %v4628_v34, %v4636_v13  ;;  %v2510_v34 = vld [vmem:[%s7327_s1 + $0x168] sm:$0xff] }
0x25be   :  { %v6125_v45 = vpack.c.bf16 %v2510_v34, %v2509_v51  ;;  %v63_v34 = vld [vmem:[%s7326_s0 + $0x1a] sm:$0x3] }
0x25bf   :  { %v4640_v29 = vmul.f32 %v4638_v20, %v4638_v20 }
0x25c1   :  { %v6237_v24 = vpop.eup %6236  ;;  %v4642_v37 = vsel %vm21_vm0, %v4640_v29, 0.0 }
0x25c2   :  { %v4244_v6 = vsel %vm371_vm2, %v6237_v24, 0.0 }
0x25c3   :  { %4245 = vadd.xlane.f32.xlu1 %v4244_v6  ;;  %v2511_v6 = vld [vmem:[%s7327_s1 + $0x170] sm:$0xff] }
0x25c5   :  { %v6239_v59 = vpop.eup %6238 }
0x25c6   :  { %v4436_v60 = vsel %vm371_vm2, %v6239_v59, 0.0 }
0x25c7   :  { %4437 = vadd.xlane.f32.xlu1 %v4436_v60 }
0x25fa   :  { %4517 = vxpose.xlu1.b32.start [1/4] (short) (narrow) %v7105_v43, 8 }
0x25fe   :  { %4518 = vxpose.xlu1.b32.cont [2/4] (short) (narrow) %v4129_v28, 8  ;;  %v2514_v28 = vld [vmem:[%s7329_s2 + $0x28] sm:$0xff] }
0x25ff   :  { %v6109_v55 = vpack.c.bf16 %v2514_v28, %v2513_v7 }
0x2650   :  { %v4246_v58 = vpop.xlane.xlu1 %4245 }
0x2651   :  { %6240 = vrcp.f32 %v4246_v58  ;;  %v5454_v58 = vld [vmem:[%s7328_s3 + $0xc] ss:$0 sm:$0xff] }
0x2654   :  { %v4438_v61 = vpop.xlane.xlu1 %4437 }
0x2655   :  { %6242 = vrcp.f32 %v4438_v61 }
0x265b   :  { %v6241_v0 = vpop.eup %6240 }
0x265c   :  { %v4248_v1 = vmul.f32 %v6241_v0, %v6237_v24 }
0x265e   :  { %5955 = vmatpush3.xpose.msk.msra.mxu0 %vm371_vm2, %v4248_v1 }
0x265f   :  { %v6243_v2 = vpop.eup %6242  ;;  %5964 = vmatprep.subr.mxu0 %v6259_v30 }
0x2660   :  { %v4440_v4 = vmul.f32 %v6243_v2, %v6239_v59  ;;  %v2512_v59 = vld [vmem:[%s7327_s1 + $0x178] sm:$0xff] }
0x2661   :  { %5957 = vmatmul.mubr.msk.f32.vlgmr.msra.gmra.mrb[60].mxu0 %vm371_vm2, %v3741_v62  ;;  %v6129_v60 = vpack.c.bf16 %v2512_v59, %v2511_v6  ;;  %v4966_v6 = vld [vmem:[%s7327_s1 + $0x1c0] sm:$0xff]  ;;  %v4967_v59 = vld [vmem:[%s7327_s1 + $0x1c8] sm:$0xff] }
0x2662   :  { %5965 = vmatpush3.xpose.msk.msra.mxu0 %vm371_vm2, %v4440_v4  ;;  %5966 = vmatprep.mubr.msk.f32.mxu0 %vm6260_vm1, %v6259_v30 }
0x2663   :  { %6110 = vmatprep.subr.bf16.mxu0 %v6109_v55 }
0x2665   :  { %5967 = vmatmul.mubr.msk.f32.vlgmr.msra.gmra.mrb[62].mxu0 %vm371_vm2, %v3746_v5  ;;  %v5457_v5 = vld [vmem:[%s7328_s3 + $0xd] ss:$0 sm:$0xff] }
0x2666   :  { %6112 = vmatpush3.bf16.msra.mxu0 %v6109_v55 }
0x2734   :  { %v4321_v44 = vpop.f32.mrb[60].mxu0 }
0x2735   :  { %v5958_v12 = vpop.f32.mrb[61].mxu0  ;;  %4519 = vxpose.xlu1.b32.cont [3/4] (short) (narrow) %v4321_v44, 8 }
0x2738   :  { %v4513_v53 = vpop.f32.mrb[62].mxu0 }
0x2739   :  { %4520 = vxpose.xlu1.b32.end [4/4] (short) (narrow) %v4513_v53, 8  ;;  %v5968_v47 = vpop.f32.mrb[63].mxu0 }
0x27ad   :  { %v4533_v32 = vpop.trf.xlu1 }
0x27ae   :  { %5978 = vmatmul.mubr.msk.f32.vlgmr.msra.gmra.mrb[58].mxu1 %vm21_vm0, %v4533_v32 }
0x27af   :  { %6120 = vmatpush3.bf16.msra.mxu1 %v6117_v23 }
0x27b0   :  { %6122 = vmatprep.subr.bf16.mxu1 %v6121_v35 }
0x27b3   :  { %6124 = vmatpush3.bf16.msra.mxu1 %v6121_v35 }
0x27b4   :  { %6126 = vmatprep.subr.bf16.mxu1 %v6125_v45 }
0x27b7   :  { %6128 = vmatpush3.bf16.msra.mxu1 %v6125_v45  ;;  %v4962_v45 = vld [vmem:[%s7327_s1 + $0x1a0] sm:$0xff] }
0x27b8   :  { %6130 = vmatprep.subr.bf16.mxu1 %v6129_v60 }
0x27bb   :  { %6132 = vmatpush3.bf16.msra.mxu1 %v6129_v60  ;;  %v6144_v60 = vpack.c.bf16 %v4967_v59, %v4966_v6 }
0x27bc   :  { %6149 = vmatprep.subr.bf16.mxu1 %v6261_v26 }
0x2881   :  { %v4618_v43 = vpop.f32.mrb[58].mxu1 }
0x2882   :  { %v4627_v10 = vadd.f32 %v5451_v8, %v4618_v43  ;;  %v5979_v25 = vpop.f32.mrb[59].mxu1  ;;  %v2515_v8 = vld [vmem:[%s7329_s2 + $0x30] sm:$0xff] }
0x2883   :  { %v6113_v41 = vpack.c.bf16 %v2516_v38, %v2515_v8  ;;  %v5460_v38 = vld [vmem:[%s7328_s3 + $0xe] ss:$0 sm:$0xff] }
0x2884   :  { %v4629_v14 = vadd.f32 %v4627_v10, %v7007_v63  ;;  %v5452_v63 = vld [vmem:[%s7328_s3 + $0xa] ss:$0 sm:$0xff] }
0x2885   :  { %6114 = vmatprep.subr.bf16.mxu0 %v6113_v41 }
0x2886   :  { %v4633_v22 = vsel %vm21_vm0, %v4629_v14, 0.0  ;;  %6116 = vmatpush3.bf16.msra.mxu0 %v6113_v41 }
0x2887   :  { %4634 = vadd.xlane.f32.xlu0 %v4633_v22 }
0x288b   :  { %4643 = vadd.xlane.f32.xlu0 %v4642_v37 }
0x2914   :  { %v4635_v11 = vpop.xlane.xlu0 %4634 }
0x2915   :  { %v4637_v39 = vmul.f32 0.03125, %v4635_v11 }
0x2917   :  { %v4639_v33 = vsub.f32 %v4629_v14, %v4637_v39 }
0x2918   :  { %v4644_v49 = vpop.xlane.xlu0 %4643 }
0x2919   :  { %v4648_v21 = vmul.f32 0.03125, %v4644_v49  ;;  %v4641_v54 = vmul.f32 %v4639_v33, %v4639_v33  ;;  %v62_v49 = vld [vmem:[%s7326_s0 + $0x12] sm:$0xff] }
0x291b   :  { %v4650_v46 = vadd.f32 1e-05, %v4648_v21  ;;  %v4645_v36 = vsel %vm21_vm0, %v4641_v54, 0.0  ;;  %v5127_v21 = vld [vmem:[%s7327_s1 + $0x180] sm:$0xff]  ;;  %v5128_v54 = vld [vmem:[%s7327_s1 + $0x188] sm:$0xff] }
0x291c   :  { %4646 = vadd.xlane.f32.xlu0 %v4645_v36  ;;  %v6150_v36 = vpack.c.bf16 %v5128_v54, %v5127_v21  ;;  %v5466_v54 = vld [vmem:[%s7328_s3 + $0x15] ss:$0 sm:$0xff] }
0x291d   :  { %6244 = vrsqrt.f32 %v4650_v46  ;;  %v5129_v46 = vld [vmem:[%s7327_s1 + $0x190] sm:$0xff] }
0x2927   :  { %v6245_v42 = vpop.eup %6244 }
0x2928   :  { %v4654_v40 = vmul.f32 %v6245_v42, %v4638_v20  ;;  %v5130_v42 = vld [vmem:[%s7327_s1 + $0x198] sm:$0xff] }
0x292a   :  { %v4660_v15 = vmul.f32 %v5452_v63, %v4654_v40 }
0x292c   :  { %v4666_v3 = vadd.f32 %v5453_v16, %v4660_v15 }
0x292e   :  { %5988 = vmatprep.mubr.msk.f32.mxu0 %vm21_vm0, %v4666_v3 }
0x29a9   :  { %v4647_v9 = vpop.xlane.xlu0 %4646 }
0x29aa   :  { %v4649_v48 = vmul.f32 0.03125, %v4647_v9  ;;  %v4963_v9 = vld [vmem:[%s7327_s1 + $0x1a8] sm:$0xff] }
0x29ac   :  { %v4651_v52 = vadd.f32 1e-05, %v4649_v48  ;;  %v6138_v48 = vpack.c.bf16 %v4963_v9, %v4962_v45 }
0x29ae   :  { %6246 = vrsqrt.f32 %v4651_v52  ;;  %v4964_v52 = vld [vmem:[%s7327_s1 + $0x1b0] sm:$0xff] }
0x29b8   :  { %v6247_v57 = vpop.eup %6246 }
0x29b9   :  { %v4655_v50 = vmul.f32 %v6247_v57, %v4639_v33  ;;  %v4965_v57 = vld [vmem:[%s7327_s1 + $0x1b8] sm:$0xff] }
0x29bb   :  { %v4661_v31 = vmul.f32 %v5452_v63, %v4655_v50  ;;  %v6153_v63 = vpack.c.bf16 %v5130_v42, %v5129_v46  ;;  %v6141_v50 = vpack.c.bf16 %v4965_v57, %v4964_v52 }
0x29bd   :  { %v4667_v24 = vadd.f32 %v5453_v16, %v4661_v31 }
0x29bf   :  { %5989 = vmatmul.mubr.msk.f32.vlgmr.msra.gmra.mrb[64].mxu0 %vm21_vm0, %v4667_v24 }
0x29c0   :  { %6014 = vmatprep.mubr.msk.f32.mxu0 %vm4880_vm4, %v62_v49  ;;  %v5134_v49 = vld [vmem:[%s7329_s2 + $0x58] sm:$0xff] }
0x2a92   :  { %v5990_v61 = vpop.f32.mrb[64].mxu0 }
0x2a93   :  { %v4750_v0 = vadd.f32 %v5990_v61, %v5454_v58  ;;  %v4744_v1 = vpop.f32.mrb[65].mxu0  ;;  %v4969_v61 = vld [vmem:[%s7327_s1 + $0x1d8] sm:$0xff] }
0x2a94   :  { %v4745_v2 = vadd.f32 %v5454_v58, %v4744_v1  ;;  %v4968_v58 = vld [vmem:[%s7327_s1 + $0x1d0] sm:$0xff] }
0x2a95   :  { %v4754_v4 = vmax.f32 %v4750_v0, 0.0  ;;  %v6147_v0 = vpack.c.bf16 %v4969_v61, %v4968_v58  ;;  %v5464_v1 = vld [vmem:[%s7328_s3 + $0x14] ss:$0 sm:$0xff] }
0x2a96   :  { %v4753_v62 = vmax.f32 %v4745_v2, 0.0  ;;  %v5468_v2 = vld [vmem:[%s7328_s3 + $0x10] ss:$0 sm:$0xff] }
0x2a98   :  { %6007 = vmatprep.mubr.msk.f32.mxu1 %vm2355_vm3, %v4753_v62 }
0x2a99   :  { %6008 = vmatmul.mubr.msk.f32.vlgmr.msra.gmra.mrb[60].mxu1 %vm2355_vm3, %v4754_v4 }
0x2a9a   :  { %6047 = vmatprep.mubr.msk.f32.mxu1 %vm6260_vm1, %v6259_v30  ;;  %6151 = vmatpush3.bf16.msra.mxu1 %v6150_v36 }
0x2a9b   :  { %6152 = vmatprep.subr.bf16.mxu1 %v6261_v26 }
0x2a9e   :  { %6154 = vmatpush3.bf16.msra.mxu1 %v6153_v63 }
0x2b6c   :  { %v6009_v44 = vpop.f32.mrb[60].mxu1 }
0x2b6d   :  { %v4831_v12 = vpop.f32.mrb[61].mxu1  ;;  %v4837_v53 = vadd.f32 %v6009_v44, %v5457_v5 }
0x2b6e   :  { %v4832_v47 = vadd.f32 %v5457_v5, %v4831_v12 }
0x2b6f   :  { %v4841_v19 = vadd.f32 %v4837_v53, %v4667_v24 }
0x2b70   :  { %v4840_v32 = vadd.f32 %v4832_v47, %v4666_v3 }
0x2b71   :  { %v4845_v43 = vsel %vm21_vm0, %v4841_v19, 0.0 }
0x2b72   :  { %v4842_v13 = vsel %vm21_vm0, %v4840_v32, 0.0 }
0x2b73   :  { %4843 = vadd.xlane.f32.xlu0 %v4842_v13 }
0x2b77   :  { %4846 = vadd.xlane.f32.xlu0 %v4845_v43 }
0x2c00   :  { %v4844_v20 = vpop.xlane.xlu0 %4843 }
0x2c01   :  { %v4848_v10 = vmul.f32 0.03125, %v4844_v20 }
0x2c03   :  { %v4850_v25 = vsub.f32 %v4840_v32, %v4848_v10 }
0x2c04   :  { %v4847_v14 = vpop.xlane.xlu0 %4846 }
0x2c05   :  { %v4849_v22 = vmul.f32 0.03125, %v4847_v14  ;;  %v4852_v29 = vmul.f32 %v4850_v25, %v4850_v25 }
0x2c07   :  { %v4851_v37 = vsub.f32 %v4841_v19, %v4849_v22  ;;  %v4854_v11 = vsel %vm21_vm0, %v4852_v29, 0.0 }
0x2c08   :  { %4855 = vadd.xlane.f32.xlu0 %v4854_v11  ;;  %v5131_v11 = vld [vmem:[%s7329_s2 + $0x40] sm:$0xff] }
0x2c09   :  { %v4853_v39 = vmul.f32 %v4851_v37, %v4851_v37 }
0x2c0b   :  { %v4857_v33 = vsel %vm21_vm0, %v4853_v39, 0.0 }
0x2c0c   :  { %4858 = vadd.xlane.f32.xlu0 %v4857_v33  ;;  %v5133_v33 = vld [vmem:[%s7329_s2 + $0x50] sm:$0xff] }
0x2c0d   :  { %v6159_v21 = vpack.c.bf16 %v5134_v49, %v5133_v33 }
0x2c95   :  { %v4856_v40 = vpop.xlane.xlu0 %4855 }
0x2c96   :  { %v4860_v16 = vmul.f32 0.03125, %v4856_v40 }
0x2c98   :  { %v4862_v15 = vadd.f32 1e-05, %v4860_v16 }
0x2c99   :  { %v4859_v3 = vpop.xlane.xlu0 %4858 }
0x2c9a   :  { %6248 = vrsqrt.f32 %v4862_v15  ;;  %v4861_v7 = vmul.f32 0.03125, %v4859_v3 }
0x2c9c   :  { %v4863_v28 = vadd.f32 1e-05, %v4861_v7  ;;  %v5470_v7 = vld [vmem:[%s7328_s3 + $0x11] ss:$0 sm:$0xff] }
0x2c9e   :  { %6250 = vrsqrt.f32 %v4863_v28 }
0x2ca4   :  { %v6249_v55 = vpop.eup %6248 }
0x2ca5   :  { %v4866_v8 = vmul.f32 %v6249_v55, %v4850_v25  ;;  %v5471_v55 = vld [vmem:[%s7328_s3 + $0x12] ss:$0 sm:$0xff] }
0x2ca7   :  { %v4872_v18 = vmul.f32 %v5460_v38, %v4866_v8 }
0x2ca8   :  { %v6251_v41 = vpop.eup %6250 }
0x2ca9   :  { %v4867_v17 = vmul.f32 %v6251_v41, %v4851_v37  ;;  %v4878_v27 = vadd.f32 %v5461_v56, %v4872_v18  ;;  %v5472_v41 = vld [vmem:[%s7328_s3 + $0x13] ss:$0 sm:$0xff] }
0x2cab   :  { %v4873_v23 = vmul.f32 %v5460_v38, %v4867_v17 }
0x2cad   :  { %v4879_v35 = vadd.f32 %v5461_v56, %v4873_v23 }
0x2caf   :  { %v6133_v51 = vpack.c.bf16 %v4879_v35, %v4878_v27 }
0x2cb1   :  { %6134 = vmatprep.subr.bf16.mxu0 %v6133_v51 }
0x2cb2   :  { %6136 = vmatpush3.bf16.msra.mxu0 %v6133_v51 }
0x2cb3   :  { %6137 = vmatprep.subr.bf16.mxu0 %v6261_v26 }
0x2cb5   :  { %6015 = vmatmul.mubr.msk.f32.vlgmr.msra.gmra.mrb[66].mxu0 %vm4880_vm4, %v63_v34 }
0x2cb6   :  { %6025 = vmatprep.mubr.msk.f32.mxu0 %vm6260_vm1, %v6259_v30  ;;  %6139 = vmatpush3.bf16.msra.mxu0 %v6138_v48 }
0x2cb7   :  { %6140 = vmatprep.subr.bf16.mxu0 %v6261_v26 }
0x2cba   :  { %6142 = vmatpush3.bf16.msra.mxu0 %v6141_v50 }
0x2cbb   :  { %6143 = vmatprep.subr.bf16.mxu0 %v6261_v26 }
0x2d88   :  { %v6016_v31 = vpop.f32.mrb[66].mxu0 }
0x2d89   :  { %v4953_v24 = vpop.f32.mrb[67].mxu0  ;;  %6026 = vmatmul.mubr.msk.f32.vlgmr.msra.gmra.mrb[68].mxu0 %vm21_vm0, %v6016_v31 }
0x2d8a   :  { %6048 = vmatmul.mubr.msk.f32.vlgmr.msra.gmra.mrb[62].mxu1 %vm21_vm0, %v4953_v24  ;;  %6036 = vmatprep.mubr.msk.f32.mxu0 %vm6260_vm1, %v6259_v30 }
0x2d8b   :  { %6145 = vmatpush3.bf16.msra.mxu0 %v6144_v60 }
0x2d8c   :  { %6146 = vmatprep.subr.bf16.mxu0 %v6261_v26 }
0x2d8f   :  { %6148 = vmatpush3.bf16.msra.mxu0 %v6147_v0 }
0x2d90   :  { %6155 = vmatprep.subr.bf16.mxu0 %v6261_v26 }
0x2e5c   :  { %v5044_v62 = vpop.f32.mrb[68].mxu0 }
0x2e5d   :  { %v5209_v4 = vpop.f32.mrb[62].mxu1  ;;  %v5045_v5 = vadd.f32 %v5464_v1, %v5044_v62  ;;  %v6027_v44 = vpop.f32.mrb[69].mxu0 }
0x2e5e   :  { %v5210_v12 = vadd.f32 %v5468_v2, %v5209_v4  ;;  %v6049_v53 = vpop.f32.mrb[63].mxu1 }
0x2e5f   :  { %6252 = vtanh.f32 %v5045_v5 }
0x2e60   :  { %v5214_v47 = vmul.f32 0.70710677, %v5210_v12  ;;  %v5213_v13 = vmul.f32 0.5, %v5210_v12 }
0x2e62   :  { %6254 = verf.f32 %v5214_v47 }
0x2e69   :  { %v6253_v32 = vpop.eup %6252 }
0x2e6a   :  { %6037 = vmatmul.mubr.msk.f32.vlgmr.msra.gmra.mrb[70].mxu0 %vm21_vm0, %v6253_v32 }
0x2e6b   :  { %6058 = vmatprep.mubr.msk.f32.mxu0 %vm6260_vm1, %v6259_v30  ;;  %v5132_v30 = vld [vmem:[%s7329_s2 + $0x48] sm:$0xff] }
0x2e6c   :  { %v6255_v19 = vpop.eup %6254  ;;  %v6156_v39 = vpack.c.bf16 %v5132_v30, %v5131_v11 }
0x2e6d   :  { %v5216_v43 = vadd.f32 1.0, %v6255_v19 }
0x2e6e   :  { %6157 = vmatpush3.bf16.msra.mxu0 %v6156_v39 }
0x2e6f   :  { %v5217_v20 = vmul.f32 %v5216_v43, %v5213_v13  ;;  %6158 = vmatprep.subr.bf16.mxu0 %v6261_v26 }
0x2e71   :  { %v5220_v10 = vsel %vm21_vm0, %v5217_v20, 0.0 }
0x2e72   :  { %5221 = vadd.xlane.f32.xlu0 %v5220_v10  ;;  %6160 = vmatpush3.bf16.msra.mxu0 %v6159_v21 }
0x2eff   :  { %v5222_v25 = vpop.xlane.xlu0 %5221 }
0x2f00   :  { %v5223_v14 = vmul.f32 0.03125, %v5222_v25 }
0x2f02   :  { %v5224_v22 = vsub.f32 %v5217_v20, %v5223_v14 }
0x2f04   :  { %v5225_v29 = vmul.f32 %v5224_v22, %v5224_v22 }
0x2f06   :  { %v5226_v37 = vsel %vm21_vm0, %v5225_v29, 0.0 }
0x2f07   :  { %5227 = vadd.xlane.f32.xlu0 %v5226_v37 }
0x2f3d   :  { %v5123_v46 = vpop.f32.mrb[70].mxu0 }
0x2f3e   :  { %v5124_v36 = vadd.f32 %v5466_v54, %v5123_v46  ;;  %v6038_v42 = vpop.f32.mrb[71].mxu0 }
0x2f40   :  { %v5321_v63 = vsel %vm21_vm0, %v5124_v36, 0.0 }
0x2f41   :  { %v5323_v40 = vsel %vm5322_vm5, %v5321_v63, 0.0 }
0x2f42   :  { %5325 = vrot.lane.b32.xlu0 %v5323_v40, %s6262_s19 }
0x2f94   :  { %v5228_v16 = vpop.xlane.xlu0 %5227 }
0x2f95   :  { %v5229_v15 = vmul.f32 0.03125, %v5228_v16 }
0x2f97   :  { %v5230_v3 = vadd.f32 1e-05, %v5229_v15 }
0x2f99   :  { %6256 = vrsqrt.f32 %v5230_v3 }
0x2fa3   :  { %v6257_v26 = vpop.eup %6256 }
0x2fa4   :  { %v5232_v28 = vmul.f32 %v6257_v26, %v5224_v22 }
0x2fa6   :  { %v5237_v8 = vmul.f32 %v5470_v7, %v5232_v28 }
0x2fa8   :  { %v5242_v38 = vadd.f32 %v5471_v55, %v5237_v8 }
0x2faa   :  { %6059 = vmatmul.mubr.msk.f32.vlgmr.msra.gmra.mrb[72].mxu0 %vm21_vm0, %v5242_v38 }
0x2fb4   :  { %v5326_v23 = vpop.permute.xlu0 %5325 }
0x307d   :  { %v5317_v17 = vpop.f32.mrb[72].mxu0 }
0x307e   :  { %v5318_v18 = vadd.f32 %v5472_v41, %v5317_v17  ;;  %v6060_v56 = vpop.f32.mrb[73].mxu0 }
0x3080   :  { %v5328_v27 = vsel %vm2355_vm3, %v5318_v18, %v5326_v23 }
0x3081   :  { %5329 = vst [vmem:[%s7330_s4] sm:$0xff] %v5328_v27 }

</bundles_post_ra>
